<compile_context>
chip_gen: v6e
topology: v6e:2x2x1
jax: 0.10.0
libtpu: 0.0.40
codegen_flags: <defaults>
</compile_context>

<pallas_src>
import functools
import math

import jax
import jax.numpy as jnp
from jax.experimental import pallas as pl
from jax.experimental.pallas import tpu as pltpu

# ------------------------------ helpers -------------------------------------


def _default_vmem_limit():
    # Generation-aware VMEM budget: ~3/4 of physical capacity, capped so that
    # v5e/v6e (128 MiB) do not over-commit and v7x (64 MiB) is not exceeded.
    cap = 64 * 1024 * 1024
    try:
        info = pltpu.get_tpu_info()
        cap = int(getattr(info, "vmem_capacity_bytes", cap))
    except Exception:
        pass
    return max(32 * 1024 * 1024, min(cap * 3 // 4, 96 * 1024 * 1024))


_VMEM_LIMIT = _default_vmem_limit()

_K_NOTILE_MAX = 2048  # weight column [K, tn] comfortably VMEM-resident below this


def _pick_tile(dim, prefs):
    """Largest preferred tile that divides `dim`; ragged dims fall back to the
    largest preference (partial boundary block handled by cdiv grid)."""
    for p in prefs:
        if dim % p == 0:
            return p
    if dim > prefs[0]:
        return prefs[0]
    return dim


def _pick_slab_rows(H, W, Cout, budget=2 * 1024 * 1024):
    """Row-slab height for the 3x3 conv: divides H, keeps the f32 accumulator
    under `budget`, and prefers >= 2 slabs (parallel axis / bounded live f32)."""
    for th in (64, 32, 16, 8, 4, 2, 1):
        if th <= H and H % th == 0 and th * W * Cout * 4 <= budget and H // th >= 2:
            return th
    return H


# ----------------------------- Pallas kernels ------------------------------


def _gemm_kernel(x_ref, w_ref, b_ref, *rest, relu, has_res, has_mask):
    """y = epilogue(x @ w + bias).  Weight-resident path (K untiled).

    rest = [res_ref?, mask_ref?, o_ref].  mask_ref selects per-output-column
    relu (used for the fused downsample|conv1 GEMM of the first block)."""
    idx = 0
    r_ref = None
    m_ref = None
    if has_res:
        r_ref = rest[idx]
        idx += 1
    if has_mask:
        m_ref = rest[idx]
        idx += 1
    o_ref = rest[idx]

    y = jnp.dot(x_ref[...], w_ref[...], preferred_element_type=jnp.float32)
    y = y + b_ref[...]
    if has_res:
        y = y + r_ref[...].astype(jnp.float32)
    if has_mask:
        y = jnp.where(m_ref[...] > 0.0, jnp.maximum(y, 0.0), y)
    elif relu:
        y = jnp.maximum(y, 0.0)
    o_ref[...] = y.astype(o_ref.dtype)


def _gemm_ktiled_kernel(x_ref, w_ref, b_ref, *rest, relu, has_res):
    """K-tiled fallback (very large K) with f32 accumulator scratch."""
    acc_ref = rest[-1]
    o_ref = rest[-2]
    r_ref = rest[0] if has_res else None

    @pl.when(pl.program_id(2) == 0)
    def _():
        acc_ref[...] = jnp.zeros_like(acc_ref)

    acc_ref[...] += jnp.dot(x_ref[...], w_ref[...],
                            preferred_element_type=jnp.float32)

    @pl.when(pl.program_id(2) == pl.num_programs(2) - 1)
    def _():
        y = acc_ref[...] + b_ref[...]
        if has_res:
            y = y + r_ref[...].astype(jnp.float32)
        if relu:
            y = jnp.maximum(y, 0.0)
        o_ref[...] = y.astype(o_ref.dtype)


def _conv3x3_kernel(x_ref, w_ref, b_ref, o_ref, acc_ref, *, relu, th):
    # x_ref : [1, H+2, W+2, C]  whole padded image (constant across the slab axis
    #         -> DMA'd into VMEM once per image by the pipeline)
    # w_ref : [9, C, Cout] (BN scale pre-folded), b_ref: [1, Cout]
    # o_ref : [1, th, W, Cout]  output row-slab
    # acc_ref: [th*W, Cout] f32 VMEM scratch (bounded live accumulator)
    h = pl.program_id(1)
    row0 = pl.multiple_of(h * th, th)
    _, _, W, Cout = o_ref.shape
    C = x_ref.shape[3]

    slab = x_ref[0, pl.ds(row0, th + 2), :, :]          # (th+2, W+2, C)
    first = True
    for kx in range(3):
        # Only the 3 kx shifts move the sublane start (relayout copy); the ky
        # shifts below are cheap leading-dim offsets reused across taps.
        xk = slab[:, kx:kx + W, :]                      # (th+2, W, C)
        for ky in range(3):
            patch = xk[ky:ky + th].reshape(th * W, C)
            contrib = jnp.dot(patch, w_ref[ky * 3 + kx],
                              preferred_element_type=jnp.float32)
            if first:
                acc_ref[...] = contrib
                first = False
            else:
                acc_ref[...] += contrib

    y = acc_ref[...] + b_ref[...]
    if relu:
        y = jnp.maximum(y, 0.0)
    o_ref[...] = y.reshape(1, th, W, Cout).astype(o_ref.dtype)


# --------------------------- Pallas call wrappers ----------------------------


def fused_matmul(x, w, bias, residual=None, relu=True, relu_mask=None,
                 out_dtype=jnp.bfloat16):
    """epilogue((x @ w) + bias [+ residual]) as one tiled Pallas call.

    x: [M, K] bf16, w: [K, N] bf16 (BN pre-folded), bias: [N] f32.
    relu_mask: optional [N] f32 (1 -> relu column, 0 -> linear column).
    """
    M, K = x.shape
    N = w.shape[1]
    bias2 = bias.reshape(1, N).astype(jnp.float32)

    tm = _pick_tile(M, (512, 256, 128))
    tn = _pick_tile(N, (512, 256, 128))

    tk = None
    if K > _K_NOTILE_MAX:
        for p in (2048, 1024, 512, 256):
            if K % p == 0:
                tk = p
                break

    if tk is None:
        # Weight-resident path: grid (N, M) with M innermost, so the [K, tn]
        # weight column block index is constant over the inner M sweep and is
        # DMA'd from HBM exactly once per N column.
        has_res = residual is not None
        has_mask = relu_mask is not None
        in_specs = [pl.BlockSpec((tm, K), lambda j, i: (i, 0)),
                    pl.BlockSpec((K, tn), lambda j, i: (0, j)),
                    pl.BlockSpec((1, tn), lambda j, i: (0, j))]
        args = [x, w, bias2]
        if has_res:
            in_specs.append(pl.BlockSpec((tm, tn), lambda j, i: (i, j)))
            args.append(residual)
        if has_mask:
            in_specs.append(pl.BlockSpec((1, tn), lambda j, i: (0, j)))
            args.append(relu_mask.reshape(1, N).astype(jnp.float32))
        kernel = functools.partial(_gemm_kernel, relu=relu,
                                   has_res=has_res, has_mask=has_mask)
        return pl.pallas_call(
            kernel,
            out_shape=jax.ShapeDtypeStruct((M, N), out_dtype),
            grid=(pl.cdiv(N, tn), pl.cdiv(M, tm)),
            in_specs=in_specs,
            out_specs=pl.BlockSpec((tm, tn), lambda j, i: (i, j)),
            compiler_params=pltpu.CompilerParams(
                dimension_semantics=("parallel", "parallel"),
                vmem_limit_bytes=_VMEM_LIMIT),
        )(*args)

    # K-tiled fallback for very large K (f32 accumulator across the K axis).
    assert relu_mask is None, "relu_mask only supported on the weight-resident path"
    has_res = residual is not None
    in_specs = [pl.BlockSpec((tm, tk), lambda i, j, k: (i, k)),
                pl.BlockSpec((tk, tn), lambda i, j, k: (k, j)),
                pl.BlockSpec((1, tn), lambda i, j, k: (0, j))]
    args = [x, w, bias2]
    if has_res:
        in_specs.append(pl.BlockSpec((tm, tn), lambda i, j, k: (i, j)))
        args.append(residual)
    kernel = functools.partial(_gemm_ktiled_kernel, relu=relu, has_res=has_res)
    return pl.pallas_call(
        kernel,
        out_shape=jax.ShapeDtypeStruct((M, N), out_dtype),
        grid=(pl.cdiv(M, tm), pl.cdiv(N, tn), K // tk),
        in_specs=in_specs,
        out_specs=pl.BlockSpec((tm, tn), lambda i, j, k: (i, j)),
        scratch_shapes=[pltpu.VMEM((tm, tn), jnp.float32)],
        compiler_params=pltpu.CompilerParams(
            dimension_semantics=("parallel", "parallel", "arbitrary"),
            vmem_limit_bytes=_VMEM_LIMIT),
    )(*args)


def conv1x1(x_nhwc, w_km, bias, residual=None, relu=True, out_dtype=jnp.bfloat16):
    """1x1 conv with pre-transposed/folded weight [Cin, Cout] + bias + relu."""
    N, H, W, C = x_nhwc.shape
    Cout = w_km.shape[1]
    x2 = x_nhwc.reshape(N * H * W, C)
    r2 = None if residual is None else residual.reshape(N * H * W, Cout)
    y = fused_matmul(x2, w_km, bias, residual=r2, relu=relu, out_dtype=out_dtype)
    return y.reshape(N, H, W, Cout)


def conv3x3(x_nhwc, w9, bias, relu=True, out_dtype=jnp.bfloat16):
    """3x3 conv, stride 1, pad 1: 9-tap GEMM accumulation in row slabs with an
    f32 VMEM scratch accumulator (no im2col, no whole-image f32 live value)."""
    N, H, W, C = x_nhwc.shape
    Cout = w9.shape[2]
    # TODO(synk): avoid this pad (one extra HBM round-trip of the activation)
    #             by writing the preceding 1x1 conv into a pre-padded buffer or
    #             masking the boundary taps in-kernel.
    xp = jnp.pad(x_nhwc, ((0, 0), (1, 1), (1, 1), (0, 0)))
    th = _pick_slab_rows(H, W, Cout)
    bias2 = bias.reshape(1, Cout).astype(jnp.float32)
    kernel = functools.partial(_conv3x3_kernel, relu=relu, th=th)
    return pl.pallas_call(
        kernel,
        out_shape=jax.ShapeDtypeStruct((N, H, W, Cout), out_dtype),
        grid=(N, H // th),
        in_specs=[pl.BlockSpec((1, H + 2, W + 2, C), lambda n, h: (n, 0, 0, 0)),
                  pl.BlockSpec((9, C, Cout), lambda n, h: (0, 0, 0)),
                  pl.BlockSpec((1, Cout), lambda n, h: (0, 0))],
        out_specs=pl.BlockSpec((1, th, W, Cout), lambda n, h: (n, h, 0, 0)),
        scratch_shapes=[pltpu.VMEM((th * W, Cout), jnp.float32)],
        compiler_params=pltpu.CompilerParams(
            dimension_semantics=("parallel", "parallel"),
            vmem_limit_bytes=_VMEM_LIMIT),
    )(xp, w9, bias2)


def bottleneck_block(x_nhwc, p):
    N, H, W, C = x_nhwc.shape
    if "wcat" in p:
        # Downsample-1x1 and conv1-1x1 concatenated along N at prepare time:
        # one N-tiled GEMM, x read from HBM once, relu applied per column mask.
        x2 = x_nhwc.reshape(N * H * W, C)
        y = fused_matmul(x2, p["wcat"], p["bcat"], relu=False,
                         relu_mask=p["mcat"])
        na = p["w3"].shape[1]                       # block output channels
        identity = y[:, :na].reshape(N, H, W, na)
        out = y[:, na:].reshape(N, H, W, y.shape[1] - na)
    else:
        identity = x_nhwc
        out = conv1x1(x_nhwc, p["w1"], p["b1"], relu=True)
    out = conv3x3(out, p["w2"], p["b2"], relu=True)
    # conv3 + folded-BN bias + residual add + relu fused in one Pallas call.
    out = conv1x1(out, p["w3"], p["b3"], residual=identity, relu=True)
    return out


# ------------------------------- ROIAlign -----------------------------------
# Gather-free formulation on NHWC features: per-ROI interpolation matrices turn
# bilinear sampling into two small matmuls (bf16 inputs, f32 accumulation).
# TODO(synk): implement as a Pallas kernel (PrefetchScalarGridSpec with per-ROI
#             scalar-prefetched row indices + DMA of only the needed rows).


def roi_align(feat_nhwc, rois, out_size, spatial_scale, sampling_ratio):
    """maskrcnn-benchmark ROIAlign (aligned=False). feat [N,H,W,C], rois [R,5].
    Returns [R, C, oh, ow] (PyTorch channel-major pooled layout)."""
    N, H, W, C = feat_nhwc.shape
    oh, ow = out_size
    sr = sampling_ratio

    def interp_matrix(coords, size):
        # coords [P] -> [P, size] bilinear weights (legacy clamping semantics).
        valid = (coords >= -1.0) & (coords <= float(size))
        v = jnp.maximum(coords, 0.0)
        lo0 = jnp.floor(v).astype(jnp.int32)
        hi_cond = lo0 >= size - 1
        lo = jnp.where(hi_cond, size - 1, lo0)
        hi = jnp.where(hi_cond, size - 1, lo0 + 1)
        v = jnp.where(hi_cond, jnp.float32(size - 1), v)
        frac = v - lo.astype(jnp.float32)
        idx = jnp.arange(size, dtype=jnp.int32)[None, :]
        wmat = ((idx == lo[:, None]).astype(jnp.float32) * (1.0 - frac)[:, None]
                + (idx == hi[:, None]).astype(jnp.float32) * frac[:, None])
        return wmat * valid[:, None].astype(jnp.float32)

    def one_roi(roi):
        b = roi[0].astype(jnp.int32)
        x1 = roi[1] * spatial_scale
        y1 = roi[2] * spatial_scale
        x2 = roi[3] * spatial_scale
        y2 = roi[4] * spatial_scale
        roi_w = jnp.maximum(x2 - x1, 1.0)
        roi_h = jnp.maximum(y2 - y1, 1.0)
        bw = roi_w / ow
        bh = roi_h / oh
        ys = (y1 + jnp.arange(oh, dtype=jnp.float32)[:, None] * bh
              + (jnp.arange(sr, dtype=jnp.float32)[None, :] + 0.5) * bh / sr).reshape(-1)
        xs = (x1 + jnp.arange(ow, dtype=jnp.float32)[:, None] * bw
              + (jnp.arange(sr, dtype=jnp.float32)[None, :] + 0.5) * bw / sr).reshape(-1)
        wy = interp_matrix(ys, H)                      # [oh*sr, H] f32
        wx = interp_matrix(xs, W)                      # [ow*sr, W] f32
        fb = feat_nhwc[b]                              # [H, W, C] bf16 (no upcast pass)
        t = jnp.einsum("ph,hwc->pwc", wy.astype(fb.dtype), fb,
                       preferred_element_type=jnp.float32)   # [oh*sr, W, C]
        val = jnp.einsum("qw,pwc->pqc", wx, t)               # [oh*sr, ow*sr, C]
        val = val.reshape(oh, sr, ow, sr, C).mean(axis=(1, 3))  # [oh, ow, C]
        return jnp.transpose(val, (2, 0, 1))                 # [C, oh, ow]

    return jax.vmap(one_roi)(rois)


# ------------------------------ parameters -----------------------------------

# Scaled-down config (real: head 1024->512->2048, reduce->256, res=7, rep=1024)
HEAD_IN = 16        # res4 output channels (head input)
BOTTLENECK = 8      # bottleneck channels
HEAD_OUT = 32       # res5 output channels
REDUCE_OUT = 16     # new_conv output channels (REDUCE_CHANNEL=True)
POOL = 4            # POOLER_RESOLUTION
SPATIAL_SCALE = 0.25  # POOLER_SCALES (single level)
SAMPLING_RATIO = 2    # POOLER_SAMPLING_RATIO
REP = 32            # MLP_HEAD_DIM


def init_params(key):
    keys = iter(jax.random.split(key, 128))

    def conv_w(cout, cin, kh, kw):
        fan_in = cin * kh * kw
        return jax.random.normal(next(keys), (cout, cin, kh, kw), jnp.float32) / math.sqrt(fan_in)

    def frozen_bn(c):
        w = 1.0 + 0.1 * jax.random.normal(next(keys), (c,), jnp.float32)
        b = 0.1 * jax.random.normal(next(keys), (c,), jnp.float32)
        rm = 0.1 * jax.random.normal(next(keys), (c,), jnp.float32)
        rv = jax.random.uniform(next(keys), (c,), jnp.float32, minval=0.5, maxval=1.5)
        scale = w * jax.lax.rsqrt(rv)
        bias = b - rm * scale
        return scale, bias

    def block(cin, cb, cout, downsample):
        p = {}
        if downsample:
            p["wd"] = conv_w(cout, cin, 1, 1)
            p["sd"], p["bd"] = frozen_bn(cout)
        p["w1"] = conv_w(cb, cin, 1, 1)
        p["s1"], p["b1"] = frozen_bn(cb)
        p["w2"] = conv_w(cb, cb, 3, 3)
        p["s2"], p["b2"] = frozen_bn(cb)
        p["w3"] = conv_w(cout, cb, 1, 1)
        p["s3"], p["b3"] = frozen_bn(cout)
        return p

    params = {
        "head": [
            block(HEAD_IN, BOTTLENECK, HEAD_OUT, downsample=True),
            block(HEAD_OUT, BOTTLENECK, HEAD_OUT, downsample=False),
            block(HEAD_OUT, BOTTLENECK, HEAD_OUT, downsample=False),
        ],
        "conv": {
            "w": conv_w(REDUCE_OUT, HEAD_OUT, 1, 1),
            "b": jnp.zeros((REDUCE_OUT,), jnp.float32),
        },
        "fc6": {
            "w": jax.random.normal(next(keys), (REP, REDUCE_OUT * POOL * POOL), jnp.float32)
            / math.sqrt(REDUCE_OUT * POOL * POOL),
            "b": jnp.zeros((REP,), jnp.float32),
        },
        "fc7": {
            "w": jax.random.normal(next(keys), (REP, REP), jnp.float32) / math.sqrt(REP),
            "b": jnp.zeros((REP,), jnp.float32),
        },
    }
    return params


def prepare_params(params):
    """One-time weight prep: fold FrozenBN scale into weights, pre-transpose to
    kernel layout ([K, Cout] for 1x1/fc, [9, Cin, Cout] for 3x3), cast to bf16.
    First block: concatenate downsample|conv1 weights (one GEMM, relu mask)."""
    # TODO(synk): for the tiny synthetic channel counts, zero-pad channel dims
    #             to 128 lanes end-to-end for unmasked vst; skipped to keep the
    #             pipeline layout identical to the reference module.

    def fold1x1(w, scale, bias):
        cout, cin = w.shape[0], w.shape[1]
        wm = w.reshape(cout, cin).T * scale[None, :]
        return wm.astype(jnp.bfloat16), bias.astype(jnp.float32)

    def fold3x3(w, scale, bias):
        cout, cin = w.shape[0], w.shape[1]
        # (Cout,Cin,kh,kw) -> (kh,kw,Cin,Cout) -> (9,Cin,Cout); tap k = ky*3+kx.
        wm = jnp.transpose(w, (2, 3, 1, 0)).reshape(9, cin, cout) * scale[None, None, :]
        return wm.astype(jnp.bfloat16), bias.astype(jnp.float32)

    prep = {"head": []}
    for blk in params["head"]:
        q = {}
        if "wd" in blk:
            wd, bd = fold1x1(blk["wd"], blk["sd"], blk["bd"])
            w1, b1 = fold1x1(blk["w1"], blk["s1"], blk["b1"])
            q["wcat"] = jnp.concatenate([wd, w1], axis=1)           # [Cin, Na+Nb]
            q["bcat"] = jnp.concatenate([bd, b1])
            q["mcat"] = jnp.concatenate([jnp.zeros_like(bd),        # no relu on identity
                                         jnp.ones_like(b1)])        # relu on conv1
        else:
            q["w1"], q["b1"] = fold1x1(blk["w1"], blk["s1"], blk["b1"])
        q["w2"], q["b2"] = fold3x3(blk["w2"], blk["s2"], blk["b2"])
        q["w3"], q["b3"] = fold1x1(blk["w3"], blk["s3"], blk["b3"])
        prep["head"].append(q)

    pc = params["conv"]
    cout, cin = pc["w"].shape[0], pc["w"].shape[1]
    prep["conv"] = {"w": pc["w"].reshape(cout, cin).T.astype(jnp.bfloat16),
                    "b": pc["b"].astype(jnp.float32)}
    prep["fc6"] = {"w": params["fc6"]["w"].T.astype(jnp.bfloat16),
                   "b": params["fc6"]["b"].astype(jnp.float32)}
    prep["fc7"] = {"w": params["fc7"]["w"].T.astype(jnp.bfloat16),
                   "b": params["fc7"]["b"].astype(jnp.float32)}
    return prep


# -------------------------------- forward ------------------------------------


def forward(prep, x_nchw, rois):
    # head(x[0]): NCHW -> NHWC internal layout, bf16 activations.
    x = jnp.transpose(x_nchw, (0, 2, 3, 1)).astype(jnp.bfloat16)
    for blk in prep["head"]:
        x = bottleneck_block(x, blk)
    # relu(conv(x))  (1x1 reduce conv, bias, no BN)
    x = conv1x1(x, prep["conv"]["w"], prep["conv"]["b"], relu=True)
    # pooler(x, proposals) directly on NHWC features (no NCHW relayout pass)
    pooled = roi_align(x, rois, (POOL, POOL), SPATIAL_SCALE, SAMPLING_RATIO)
    flat = pooled.reshape(pooled.shape[0], -1).astype(jnp.bfloat16)
    # relu(fc6), relu(fc7)
    h = fused_matmul(flat, prep["fc6"]["w"], prep["fc6"]["b"], relu=True,
                     out_dtype=jnp.bfloat16)
    h = fused_matmul(h, prep["fc7"]["w"], prep["fc7"]["b"], relu=True,
                     out_dtype=jnp.float32)
    return h


# ---------------------------------- main --------------------------------------

if __name__ == "__main__":
    key = jax.random.PRNGKey(0)
    k_params, k_x = jax.random.split(key)
    params = init_params(k_params)
    prep = prepare_params(params)  # one-time fold/concat/transpose/bf16-cast

    # x[0]: res4 feature map, NCHW
    x = jax.random.normal(k_x, (2, HEAD_IN, 16, 16), jnp.float32)
    # proposals: [R, 5] = (batch_index, x1, y1, x2, y2) in image coords (~64x64)
    rois = jnp.array(
        [
            [0.0, 4.0, 4.0, 40.0, 40.0],
            [0.0, 10.0, 2.0, 30.0, 50.0],
            [0.0, 0.0, 0.0, 63.0, 63.0],
            [1.0, 8.0, 8.0, 20.0, 20.0],
            [1.0, 2.0, 16.0, 60.0, 48.0],
            [1.0, 5.0, 5.0, 55.0, 60.0],
        ],
        dtype=jnp.float32,
    )

    out = jax.jit(forward)(prep, x, rois)
    out = jax.block_until_ready(out)
    assert out.shape == (rois.shape[0], REP), out.shape
    assert out.dtype == jnp.float32
    assert bool(jnp.all(jnp.isfinite(out)))
    print("KERNEL_OK")
</pallas_src>

<mosaic_0001>
module attributes {stable_mosaic.version = 11 : i64} {
  func.func @_gemm_kernel(%arg0: i32, %arg1: i32, %arg2: memref<512x16xbf16, #tpu.memory_space<vmem>>, %arg3: memref<16x40xbf16, #tpu.memory_space<vmem>>, %arg4: memref<1x40xf32, #tpu.memory_space<vmem>>, %arg5: memref<1x40xf32, #tpu.memory_space<vmem>>, %arg6: memref<512x40xbf16, #tpu.memory_space<vmem>>) attributes {dimension_semantics = [#tpu.dimension_semantics<parallel>, #tpu.dimension_semantics<parallel>], iteration_bounds = array<i64: 1, 1>, scalar_prefetch = 0 : i64, scratch_operands = 0 : i64, tpu.core_type = #tpu.core_type<tc>, window_params = [{transform_indices = @transform_0, window_bounds = array<i64: 512, 16>}, {transform_indices = @transform_1, window_bounds = array<i64: 16, 40>}, {transform_indices = @transform_2, window_bounds = array<i64: 1, 40>}, {transform_indices = @transform_3, window_bounds = array<i64: 1, 40>}, {transform_indices = @transform_4, window_bounds = array<i64: 512, 40>}]} {
    %c0 = arith.constant 0 : index
    %c0_0 = arith.constant 0 : index
    %0 = vector.load %arg2[%c0, %c0_0] : memref<512x16xbf16, #tpu.memory_space<vmem>>, vector<512x16xbf16>
    %c0_1 = arith.constant 0 : index
    %c0_2 = arith.constant 0 : index
    %1 = vector.load %arg3[%c0_1, %c0_2] : memref<16x40xbf16, #tpu.memory_space<vmem>>, vector<16x40xbf16>
    %cst = arith.constant dense<0.000000e+00> : vector<512x40xf32>
    %2 = tpu.matmul %0, %1, %cst {dimension_numbers = #tpu.dot_dimension_numbers<[1], [0], [0], [1], [0, 0, 1, 1], [], []>} : vector<512x16xbf16>, vector<16x40xbf16>, vector<512x40xf32> -> vector<512x40xf32>
    %c0_3 = arith.constant 0 : index
    %c0_4 = arith.constant 0 : index
    %3 = vector.load %arg4[%c0_3, %c0_4] : memref<1x40xf32, #tpu.memory_space<vmem>>, vector<1x40xf32>
    %4 = vector.broadcast %3 : vector<1x40xf32> to vector<512x40xf32>
    %5 = arith.addf %2, %4 : vector<512x40xf32>
    %c0_5 = arith.constant 0 : index
    %c0_6 = arith.constant 0 : index
    %6 = vector.load %arg5[%c0_5, %c0_6] : memref<1x40xf32, #tpu.memory_space<vmem>>, vector<1x40xf32>
    %cst_7 = arith.constant 0.000000e+00 : f32
    %7 = vector.broadcast %cst_7 : f32 to vector<1x40xf32>
    %8 = arith.cmpf ogt, %6, %7 : vector<1x40xf32>
    %cst_8 = arith.constant 0.000000e+00 : f32
    %9 = vector.broadcast %cst_8 : f32 to vector<512x40xf32>
    %10 = arith.maximumf %5, %9 : vector<512x40xf32>
    %11 = vector.shape_cast %8 : vector<1x40xi1> to vector<1x40xi1>
    %12 = vector.broadcast %11 : vector<1x40xi1> to vector<512x40xi1>
    %13 = arith.select %12, %10, %5 : vector<512x40xi1>, vector<512x40xf32>
    %14 = arith.truncf %13 : vector<512x40xf32> to vector<512x40xbf16>
    %c0_9 = arith.constant 0 : index
    %c0_10 = arith.constant 0 : index
    %15 = vector.load %arg6[%c0_9, %c0_10] : memref<512x40xbf16, #tpu.memory_space<vmem>>, vector<512x40xbf16>
    tpu.vector_store %arg6[%c0_9, %c0_10], %14 {strides = array<i32>} : memref<512x40xbf16, #tpu.memory_space<vmem>>, vector<512x40xbf16>,
    return
  }
  func.func @transform_0(%arg0: i32, %arg1: i32) -> (i32, i32) {
    %c0_i32 = arith.constant 0 : i32
    %c0_i32_0 = arith.constant 0 : i32
    return %arg1, %c0_i32 : i32, i32
  }
  func.func @transform_1(%arg0: i32, %arg1: i32) -> (i32, i32) {
    %c0_i32 = arith.constant 0 : i32
    %c0_i32_0 = arith.constant 0 : i32
    return %c0_i32, %arg0 : i32, i32
  }
  func.func @transform_2(%arg0: i32, %arg1: i32) -> (i32, i32) {
    %c0_i32 = arith.constant 0 : i32
    %c0_i32_0 = arith.constant 0 : i32
    return %c0_i32, %arg0 : i32, i32
  }
  func.func @transform_3(%arg0: i32, %arg1: i32) -> (i32, i32) {
    %c0_i32 = arith.constant 0 : i32
    %c0_i32_0 = arith.constant 0 : i32
    return %c0_i32, %arg0 : i32, i32
  }
  func.func @transform_4(%arg0: i32, %arg1: i32) -> (i32, i32) {
    %c0_i32 = arith.constant 0 : i32
    return %arg1, %arg0 : i32, i32
  }
}

module attributes {stable_mosaic.version = 11 : i64} {
  func.func @_gemm_kernel(%arg0: i32, %arg1: i32, %arg2: memref<512x8xbf16, #tpu.memory_space<vmem>>, %arg3: memref<8x32xbf16, #tpu.memory_space<vmem>>, %arg4: memref<1x32xf32, #tpu.memory_space<vmem>>, %arg5: memref<512x32xbf16, #tpu.memory_space<vmem>>, %arg6: memref<512x32xbf16, #tpu.memory_space<vmem>>) attributes {dimension_semantics = [#tpu.dimension_semantics<parallel>, #tpu.dimension_semantics<parallel>], iteration_bounds = array<i64: 1, 1>, scalar_prefetch = 0 : i64, scratch_operands = 0 : i64, tpu.core_type = #tpu.core_type<tc>, window_params = [{transform_indices = @transform_0, window_bounds = array<i64: 512, 8>}, {transform_indices = @transform_1, window_bounds = array<i64: 8, 32>}, {transform_indices = @transform_2, window_bounds = array<i64: 1, 32>}, {transform_indices = @transform_3, window_bounds = array<i64: 512, 32>}, {transform_indices = @transform_4, window_bounds = array<i64: 512, 32>}]} {
    %c0 = arith.constant 0 : index
    %c0_0 = arith.constant 0 : index
    %0 = vector.load %arg2[%c0, %c0_0] : memref<512x8xbf16, #tpu.memory_space<vmem>>, vector<512x8xbf16>
    %c0_1 = arith.constant 0 : index
    %c0_2 = arith.constant 0 : index
    %1 = vector.load %arg3[%c0_1, %c0_2] : memref<8x32xbf16, #tpu.memory_space<vmem>>, vector<8x32xbf16>
    %cst = arith.constant dense<0.000000e+00> : vector<512x32xf32>
    %2 = tpu.matmul %0, %1, %cst {dimension_numbers = #tpu.dot_dimension_numbers<[1], [0], [0], [1], [0, 0, 1, 1], [], []>} : vector<512x8xbf16>, vector<8x32xbf16>, vector<512x32xf32> -> vector<512x32xf32>
    %c0_3 = arith.constant 0 : index
    %c0_4 = arith.constant 0 : index
    %3 = vector.load %arg4[%c0_3, %c0_4] : memref<1x32xf32, #tpu.memory_space<vmem>>, vector<1x32xf32>
    %4 = vector.broadcast %3 : vector<1x32xf32> to vector<512x32xf32>
    %5 = arith.addf %2, %4 : vector<512x32xf32>
    %c0_5 = arith.constant 0 : index
    %c0_6 = arith.constant 0 : index
    %6 = vector.load %arg5[%c0_5, %c0_6] : memref<512x32xbf16, #tpu.memory_space<vmem>>, vector<512x32xbf16>
    %7 = arith.extf %6 : vector<512x32xbf16> to vector<512x32xf32>
    %8 = arith.addf %5, %7 : vector<512x32xf32>
    %cst_7 = arith.constant 0.000000e+00 : f32
    %9 = vector.broadcast %cst_7 : f32 to vector<512x32xf32>
    %10 = arith.maximumf %8, %9 : vector<512x32xf32>
    %11 = arith.truncf %10 : vector<512x32xf32> to vector<512x32xbf16>
    %c0_8 = arith.constant 0 : index
    %c0_9 = arith.constant 0 : index
    %12 = vector.load %arg6[%c0_8, %c0_9] : memref<512x32xbf16, #tpu.memory_space<vmem>>, vector<512x32xbf16>
    tpu.vector_store %arg6[%c0_8, %c0_9], %11 {strides = array<i32>} : memref<512x32xbf16, #tpu.memory_space<vmem>>, vector<512x32xbf16>,
    return
  }
  func.func @transform_0(%arg0: i32, %arg1: i32) -> (i32, i32) {
    %c0_i32 = arith.constant 0 : i32
    %c0_i32_0 = arith.constant 0 : i32
    return %arg1, %c0_i32 : i32, i32
  }
  func.func @transform_1(%arg0: i32, %arg1: i32) -> (i32, i32) {
    %c0_i32 = arith.constant 0 : i32
    %c0_i32_0 = arith.constant 0 : i32
    return %c0_i32, %arg0 : i32, i32
  }
  func.func @transform_2(%arg0: i32, %arg1: i32) -> (i32, i32) {
    %c0_i32 = arith.constant 0 : i32
    %c0_i32_0 = arith.constant 0 : i32
    return %c0_i32, %arg0 : i32, i32
  }
  func.func @transform_3(%arg0: i32, %arg1: i32) -> (i32, i32) {
    %c0_i32 = arith.constant 0 : i32
    return %arg1, %arg0 : i32, i32
  }
  func.func @transform_4(%arg0: i32, %arg1: i32) -> (i32, i32) {
    %c0_i32 = arith.constant 0 : i32
    return %arg1, %arg0 : i32, i32
  }
}

module attributes {stable_mosaic.version = 11 : i64} {
  func.func @_conv3x3_kernel(%arg0: i32, %arg1: i32, %arg2: memref<1x18x18x8xbf16, #tpu.memory_space<vmem>>, %arg3: memref<9x8x8xbf16, #tpu.memory_space<vmem>>, %arg4: memref<1x8xf32, #tpu.memory_space<vmem>>, %arg5: memref<1x8x16x8xbf16, #tpu.memory_space<vmem>>, %arg6: memref<128x8xf32, #tpu.memory_space<vmem>>) attributes {dimension_semantics = [#tpu.dimension_semantics<parallel>, #tpu.dimension_semantics<parallel>], iteration_bounds = array<i64: 2, 2>, scalar_prefetch = 0 : i64, scratch_operands = 1 : i64, tpu.core_type = #tpu.core_type<tc>, window_params = [{transform_indices = @transform_0, window_bounds = array<i64: 1, 18, 18, 8>}, {pipeline_mode = #tpu.pipeline_mode<synchronous>, transform_indices = @transform_1, window_bounds = array<i64: 9, 8, 8>}, {pipeline_mode = #tpu.pipeline_mode<synchronous>, transform_indices = @transform_2, window_bounds = array<i64: 1, 8>}, {transform_indices = @transform_3, window_bounds = array<i64: 1, 8, 16, 8>}]} {
    %c8_i32 = arith.constant 8 : i32
    %0 = arith.muli %arg1, %c8_i32 : i32
    %1 = tpu.assume_multiple %0, 8 : i32
    %c0 = arith.constant 0 : index
    %2 = arith.index_cast %1 : i32 to index
    %c0_0 = arith.constant 0 : index
    %c0_1 = arith.constant 0 : index
    %3 = vector.load %arg2[%c0, %2, %c0_0, %c0_1] : memref<1x18x18x8xbf16, #tpu.memory_space<vmem>>, vector<1x10x18x8xbf16>
    %4 = vector.shape_cast %3 : vector<1x10x18x8xbf16> to vector<10x18x8xbf16>
    %5 = vector.extract_strided_slice %4 {offsets = [0, 0, 0], sizes = [10, 16, 8], strides = [1, 1, 1]} : vector<10x18x8xbf16> to vector<10x16x8xbf16>
    %6 = vector.extract_strided_slice %5 {offsets = [0, 0, 0], sizes = [8, 16, 8], strides = [1, 1, 1]} : vector<10x16x8xbf16> to vector<8x16x8xbf16>
    %7 = vector.shape_cast %6 : vector<8x16x8xbf16> to vector<128x8xbf16>
    %c0_2 = arith.constant 0 : index
    %c0_3 = arith.constant 0 : index
    %c0_4 = arith.constant 0 : index
    %8 = vector.load %arg3[%c0_2, %c0_3, %c0_4] : memref<9x8x8xbf16, #tpu.memory_space<vmem>>, vector<1x8x8xbf16>
    %9 = vector.shape_cast %8 : vector<1x8x8xbf16> to vector<8x8xbf16>
    %cst = arith.constant dense<0.000000e+00> : vector<128x8xf32>
    %10 = tpu.matmul %7, %9, %cst {dimension_numbers = #tpu.dot_dimension_numbers<[1], [0], [0], [1], [0, 0, 1, 1], [], []>} : vector<128x8xbf16>, vector<8x8xbf16>, vector<128x8xf32> -> vector<128x8xf32>
    %c0_5 = arith.constant 0 : index
    %c0_6 = arith.constant 0 : index
    %11 = vector.load %arg6[%c0_5, %c0_6] : memref<128x8xf32, #tpu.memory_space<vmem>>, vector<128x8xf32>
    tpu.vector_store %arg6[%c0_5, %c0_6], %10 {strides = array<i32>} : memref<128x8xf32, #tpu.memory_space<vmem>>, vector<128x8xf32>,
    %12 = vector.extract_strided_slice %5 {offsets = [1, 0, 0], sizes = [8, 16, 8], strides = [1, 1, 1]} : vector<10x16x8xbf16> to vector<8x16x8xbf16>
    %13 = vector.shape_cast %12 : vector<8x16x8xbf16> to vector<128x8xbf16>
    %c3 = arith.constant 3 : index
    %c0_7 = arith.constant 0 : index
    %c0_8 = arith.constant 0 : index
    %14 = vector.load %arg3[%c3, %c0_7, %c0_8] : memref<9x8x8xbf16, #tpu.memory_space<vmem>>, vector<1x8x8xbf16>
    %15 = vector.shape_cast %14 : vector<1x8x8xbf16> to vector<8x8xbf16>
    %cst_9 = arith.constant dense<0.000000e+00> : vector<128x8xf32>
    %16 = tpu.matmul %13, %15, %cst_9 {dimension_numbers = #tpu.dot_dimension_numbers<[1], [0], [0], [1], [0, 0, 1, 1], [], []>} : vector<128x8xbf16>, vector<8x8xbf16>, vector<128x8xf32> -> vector<128x8xf32>
    %c0_10 = arith.constant 0 : index
    %c0_11 = arith.constant 0 : index
    %17 = vector.load %arg6[%c0_10, %c0_11] : memref<128x8xf32, #tpu.memory_space<vmem>>, vector<128x8xf32>
    %18 = arith.addf %17, %16 : vector<128x8xf32>
    %c0_12 = arith.constant 0 : index
    %c0_13 = arith.constant 0 : index
    %19 = vector.load %arg6[%c0_12, %c0_13] : memref<128x8xf32, #tpu.memory_space<vmem>>, vector<128x8xf32>
    tpu.vector_store %arg6[%c0_12, %c0_13], %18 {strides = array<i32>} : memref<128x8xf32, #tpu.memory_space<vmem>>, vector<128x8xf32>,
    %20 = vector.extract_strided_slice %5 {offsets = [2, 0, 0], sizes = [8, 16, 8], strides = [1, 1, 1]} : vector<10x16x8xbf16> to vector<8x16x8xbf16>
    %21 = vector.shape_cast %20 : vector<8x16x8xbf16> to vector<128x8xbf16>
    %c6 = arith.constant 6 : index
    %c0_14 = arith.constant 0 : index
    %c0_15 = arith.constant 0 : index
    %22 = vector.load %arg3[%c6, %c0_14, %c0_15] : memref<9x8x8xbf16, #tpu.memory_space<vmem>>, vector<1x8x8xbf16>
    %23 = vector.shape_cast %22 : vector<1x8x8xbf16> to vector<8x8xbf16>
    %cst_16 = arith.constant dense<0.000000e+00> : vector<128x8xf32>
    %24 = tpu.matmul %21, %23, %cst_16 {dimension_numbers = #tpu.dot_dimension_numbers<[1], [0], [0], [1], [0, 0, 1, 1], [], []>} : vector<128x8xbf16>, vector<8x8xbf16>, vector<128x8xf32> -> vector<128x8xf32>
    %c0_17 = arith.constant 0 : index
    %c0_18 = arith.constant 0 : index
    %25 = vector.load %arg6[%c0_17, %c0_18] : memref<128x8xf32, #tpu.memory_space<vmem>>, vector<128x8xf32>
    %26 = arith.addf %25, %24 : vector<128x8xf32>
    %c0_19 = arith.constant 0 : index
    %c0_20 = arith.constant 0 : index
    %27 = vector.load %arg6[%c0_19, %c0_20] : memref<128x8xf32, #tpu.memory_space<vmem>>, vector<128x8xf32>
    tpu.vector_store %arg6[%c0_19, %c0_20], %26 {strides = array<i32>} : memref<128x8xf32, #tpu.memory_space<vmem>>, vector<128x8xf32>,
    %28 = vector.extract_strided_slice %4 {offsets = [0, 1, 0], sizes = [10, 16, 8], strides = [1, 1, 1]} : vector<10x18x8xbf16> to vector<10x16x8xbf16>
    %29 = vector.extract_strided_slice %28 {offsets = [0, 0, 0], sizes = [8, 16, 8], strides = [1, 1, 1]} : vector<10x16x8xbf16> to vector<8x16x8xbf16>
    %30 = vector.shape_cast %29 : vector<8x16x8xbf16> to vector<128x8xbf16>
    %c1 = arith.constant 1 : index
    %c0_21 = arith.constant 0 : index
    %c0_22 = arith.constant 0 : index
    %31 = vector.load %arg3[%c1, %c0_21, %c0_22] : memref<9x8x8xbf16, #tpu.memory_space<vmem>>, vector<1x8x8xbf16>
    %32 = vector.shape_cast %31 : vector<1x8x8xbf16> to vector<8x8xbf16>
    %cst_23 = arith.constant dense<0.000000e+00> : vector<128x8xf32>
    %33 = tpu.matmul %30, %32, %cst_23 {dimension_numbers = #tpu.dot_dimension_numbers<[1], [0], [0], [1], [0, 0, 1, 1], [], []>} : vector<128x8xbf16>, vector<8x8xbf16>, vector<128x8xf32> -> vector<128x8xf32>
    %c0_24 = arith.constant 0 : index
    %c0_25 = arith.constant 0 : index
    %34 = vector.load %arg6[%c0_24, %c0_25] : memref<128x8xf32, #tpu.memory_space<vmem>>, vector<128x8xf32>
    %35 = arith.addf %34, %33 : vector<128x8xf32>
    %c0_26 = arith.constant 0 : index
    %c0_27 = arith.constant 0 : index
    %36 = vector.load %arg6[%c0_26, %c0_27] : memref<128x8xf32, #tpu.memory_space<vmem>>, vector<128x8xf32>
    tpu.vector_store %arg6[%c0_26, %c0_27], %35 {strides = array<i32>} : memref<128x8xf32, #tpu.memory_space<vmem>>, vector<128x8xf32>,
    %37 = vector.extract_strided_slice %28 {offsets = [1, 0, 0], sizes = [8, 16, 8], strides = [1, 1, 1]} : vector<10x16x8xbf16> to vector<8x16x8xbf16>
    %38 = vector.shape_cast %37 : vector<8x16x8xbf16> to vector<128x8xbf16>
    %c4 = arith.constant 4 : index
    %c0_28 = arith.constant 0 : index
    %c0_29 = arith.constant 0 : index
    %39 = vector.load %arg3[%c4, %c0_28, %c0_29] : memref<9x8x8xbf16, #tpu.memory_space<vmem>>, vector<1x8x8xbf16>
    %40 = vector.shape_cast %39 : vector<1x8x8xbf16> to vector<8x8xbf16>
    %cst_30 = arith.constant dense<0.000000e+00> : vector<128x8xf32>
    %41 = tpu.matmul %38, %40, %cst_30 {dimension_numbers = #tpu.dot_dimension_numbers<[1], [0], [0], [1], [0, 0, 1, 1], [], []>} : vector<128x8xbf16>, vector<8x8xbf16>, vector<128x8xf32> -> vector<128x8xf32>
    %c0_31 = arith.constant 0 : index
    %c0_32 = arith.constant 0 : index
    %42 = vector.load %arg6[%c0_31, %c0_32] : memref<128x8xf32, #tpu.memory_space<vmem>>, vector<128x8xf32>
    %43 = arith.addf %42, %41 : vector<128x8xf32>
    %c0_33 = arith.constant 0 : index
    %c0_34 = arith.constant 0 : index
    %44 = vector.load %arg6[%c0_33, %c0_34] : memref<128x8xf32, #tpu.memory_space<vmem>>, vector<128x8xf32>
    tpu.vector_store %arg6[%c0_33, %c0_34], %43 {strides = array<i32>} : memref<128x8xf32, #tpu.memory_space<vmem>>, vector<128x8xf32>,
    %45 = vector.extract_strided_slice %28 {offsets = [2, 0, 0], sizes = [8, 16, 8], strides = [1, 1, 1]} : vector<10x16x8xbf16> to vector<8x16x8xbf16>
    %46 = vector.shape_cast %45 : vector<8x16x8xbf16> to vector<128x8xbf16>
    %c7 = arith.constant 7 : index
    %c0_35 = arith.constant 0 : index
    %c0_36 = arith.constant 0 : index
    %47 = vector.load %arg3[%c7, %c0_35, %c0_36] : memref<9x8x8xbf16, #tpu.memory_space<vmem>>, vector<1x8x8xbf16>
    %48 = vector.shape_cast %47 : vector<1x8x8xbf16> to vector<8x8xbf16>
    %cst_37 = arith.constant dense<0.000000e+00> : vector<128x8xf32>
    %49 = tpu.matmul %46, %48, %cst_37 {dimension_numbers = #tpu.dot_dimension_numbers<[1], [0], [0], [1], [0, 0, 1, 1], [], []>} : vector<128x8xbf16>, vector<8x8xbf16>, vector<128x8xf32> -> vector<128x8xf32>
    %c0_38 = arith.constant 0 : index
    %c0_39 = arith.constant 0 : index
    %50 = vector.load %arg6[%c0_38, %c0_39] : memref<128x8xf32, #tpu.memory_space<vmem>>, vector<128x8xf32>
    %51 = arith.addf %50, %49 : vector<128x8xf32>
    %c0_40 = arith.constant 0 : index
    %c0_41 = arith.constant 0 : index
    %52 = vector.load %arg6[%c0_40, %c0_41] : memref<128x8xf32, #tpu.memory_space<vmem>>, vector<128x8xf32>
    tpu.vector_store %arg6[%c0_40, %c0_41], %51 {strides = array<i32>} : memref<128x8xf32, #tpu.memory_space<vmem>>, vector<128x8xf32>,
    %53 = vector.extract_strided_slice %4 {offsets = [0, 2, 0], sizes = [10, 16, 8], strides = [1, 1, 1]} : vector<10x18x8xbf16> to vector<10x16x8xbf16>
    %54 = vector.extract_strided_slice %53 {offsets = [0, 0, 0], sizes = [8, 16, 8], strides = [1, 1, 1]} : vector<10x16x8xbf16> to vector<8x16x8xbf16>
    %55 = vector.shape_cast %54 : vector<8x16x8xbf16> to vector<128x8xbf16>
    %c2 = arith.constant 2 : index
    %c0_42 = arith.constant 0 : index
    %c0_43 = arith.constant 0 : index
    %56 = vector.load %arg3[%c2, %c0_42, %c0_43] : memref<9x8x8xbf16, #tpu.memory_space<vmem>>, vector<1x8x8xbf16>
    %57 = vector.shape_cast %56 : vector<1x8x8xbf16> to vector<8x8xbf16>
    %cst_44 = arith.constant dense<0.000000e+00> : vector<128x8xf32>
    %58 = tpu.matmul %55, %57, %cst_44 {dimension_numbers = #tpu.dot_dimension_numbers<[1], [0], [0], [1], [0, 0, 1, 1], [], []>} : vector<128x8xbf16>, vector<8x8xbf16>, vector<128x8xf32> -> vector<128x8xf32>
    %c0_45 = arith.constant 0 : index
    %c0_46 = arith.constant 0 : index
    %59 = vector.load %arg6[%c0_45, %c0_46] : memref<128x8xf32, #tpu.memory_space<vmem>>, vector<128x8xf32>
    %60 = arith.addf %59, %58 : vector<128x8xf32>
    %c0_47 = arith.constant 0 : index
    %c0_48 = arith.constant 0 : index
    %61 = vector.load %arg6[%c0_47, %c0_48] : memref<128x8xf32, #tpu.memory_space<vmem>>, vector<128x8xf32>
    tpu.vector_store %arg6[%c0_47, %c0_48], %60 {strides = array<i32>} : memref<128x8xf32, #tpu.memory_space<vmem>>, vector<128x8xf32>,
    %62 = vector.extract_strided_slice %53 {offsets = [1, 0, 0], sizes = [8, 16, 8], strides = [1, 1, 1]} : vector<10x16x8xbf16> to vector<8x16x8xbf16>
    %63 = vector.shape_cast %62 : vector<8x16x8xbf16> to vector<128x8xbf16>
    %c5 = arith.constant 5 : index
    %c0_49 = arith.constant 0 : index
    %c0_50 = arith.constant 0 : index
    %64 = vector.load %arg3[%c5, %c0_49, %c0_50] : memref<9x8x8xbf16, #tpu.memory_space<vmem>>, vector<1x8x8xbf16>
    %65 = vector.shape_cast %64 : vector<1x8x8xbf16> to vector<8x8xbf16>
    %cst_51 = arith.constant dense<0.000000e+00> : vector<128x8xf32>
    %66 = tpu.matmul %63, %65, %cst_51 {dimension_numbers = #tpu.dot_dimension_numbers<[1], [0], [0], [1], [0, 0, 1, 1], [], []>} : vector<128x8xbf16>, vector<8x8xbf16>, vector<128x8xf32> -> vector<128x8xf32>
    %c0_52 = arith.constant 0 : index
    %c0_53 = arith.constant 0 : index
    %67 = vector.load %arg6[%c0_52, %c0_53] : memref<128x8xf32, #tpu.memory_space<vmem>>, vector<128x8xf32>
    %68 = arith.addf %67, %66 : vector<128x8xf32>
    %c0_54 = arith.constant 0 : index
    %c0_55 = arith.constant 0 : index
    %69 = vector.load %arg6[%c0_54, %c0_55] : memref<128x8xf32, #tpu.memory_space<vmem>>, vector<128x8xf32>
    tpu.vector_store %arg6[%c0_54, %c0_55], %68 {strides = array<i32>} : memref<128x8xf32, #tpu.memory_space<vmem>>, vector<128x8xf32>,
    %70 = vector.extract_strided_slice %53 {offsets = [2, 0, 0], sizes = [8, 16, 8], strides = [1, 1, 1]} : vector<10x16x8xbf16> to vector<8x16x8xbf16>
    %71 = vector.shape_cast %70 : vector<8x16x8xbf16> to vector<128x8xbf16>
    %c8 = arith.constant 8 : index
    %c0_56 = arith.constant 0 : index
    %c0_57 = arith.constant 0 : index
    %72 = vector.load %arg3[%c8, %c0_56, %c0_57] : memref<9x8x8xbf16, #tpu.memory_space<vmem>>, vector<1x8x8xbf16>
    %73 = vector.shape_cast %72 : vector<1x8x8xbf16> to vector<8x8xbf16>
    %cst_58 = arith.constant dense<0.000000e+00> : vector<128x8xf32>
    %74 = tpu.matmul %71, %73, %cst_58 {dimension_numbers = #tpu.dot_dimension_numbers<[1], [0], [0], [1], [0, 0, 1, 1], [], []>} : vector<128x8xbf16>, vector<8x8xbf16>, vector<128x8xf32> -> vector<128x8xf32>
    %c0_59 = arith.constant 0 : index
    %c0_60 = arith.constant 0 : index
    %75 = vector.load %arg6[%c0_59, %c0_60] : memref<128x8xf32, #tpu.memory_space<vmem>>, vector<128x8xf32>
    %76 = arith.addf %75, %74 : vector<128x8xf32>
    %c0_61 = arith.constant 0 : index
    %c0_62 = arith.constant 0 : index
    %77 = vector.load %arg6[%c0_61, %c0_62] : memref<128x8xf32, #tpu.memory_space<vmem>>, vector<128x8xf32>
    tpu.vector_store %arg6[%c0_61, %c0_62], %76 {strides = array<i32>} : memref<128x8xf32, #tpu.memory_space<vmem>>, vector<128x8xf32>,
    %c0_63 = arith.constant 0 : index
    %c0_64 = arith.constant 0 : index
    %78 = vector.load %arg6[%c0_63, %c0_64] : memref<128x8xf32, #tpu.memory_space<vmem>>, vector<128x8xf32>
    %c0_65 = arith.constant 0 : index
    %c0_66 = arith.constant 0 : index
    %79 = vector.load %arg4[%c0_65, %c0_66] : memref<1x8xf32, #tpu.memory_space<vmem>>, vector<1x8xf32>
    %80 = vector.broadcast %79 : vector<1x8xf32> to vector<128x8xf32>
    %81 = arith.addf %78, %80 : vector<128x8xf32>
    %cst_67 = arith.constant 0.000000e+00 : f32
    %82 = vector.broadcast %cst_67 : f32 to vector<128x8xf32>
    %83 = arith.maximumf %81, %82 : vector<128x8xf32>
    %84 = vector.shape_cast %83 : vector<128x8xf32> to vector<1x8x16x8xf32>
    %85 = arith.truncf %84 : vector<1x8x16x8xf32> to vector<1x8x16x8xbf16>
    %c0_68 = arith.constant 0 : index
    %c0_69 = arith.constant 0 : index
    %c0_70 = arith.constant 0 : index
    %c0_71 = arith.constant 0 : index
    %86 = vector.load %arg5[%c0_68, %c0_69, %c0_70, %c0_71] : memref<1x8x16x8xbf16, #tpu.memory_space<vmem>>, vector<1x8x16x8xbf16>
    tpu.vector_store %arg5[%c0_68, %c0_69, %c0_70, %c0_71], %85 {strides = array<i32>} : memref<1x8x16x8xbf16, #tpu.memory_space<vmem>>, vector<1x8x16x8xbf16>,
    return
  }
  func.func @transform_0(%arg0: i32, %arg1: i32) -> (i32, i32, i32, i32) {
    %c0_i32 = arith.constant 0 : i32
    %c0_i32_0 = arith.constant 0 : i32
    %c0_i32_1 = arith.constant 0 : i32
    %c0_i32_2 = arith.constant 0 : i32
    return %arg0, %c0_i32, %c0_i32_0, %c0_i32_1 : i32, i32, i32, i32
  }
  func.func @transform_1(%arg0: i32, %arg1: i32) -> (i32, i32, i32) {
    %c0_i32 = arith.constant 0 : i32
    %c0_i32_0 = arith.constant 0 : i32
    %c0_i32_1 = arith.constant 0 : i32
    %c0_i32_2 = arith.constant 0 : i32
    return %c0_i32, %c0_i32_0, %c0_i32_1 : i32, i32, i32
  }
  func.func @transform_2(%arg0: i32, %arg1: i32) -> (i32, i32) {
    %c0_i32 = arith.constant 0 : i32
    %c0_i32_0 = arith.constant 0 : i32
    %c0_i32_1 = arith.constant 0 : i32
    return %c0_i32, %c0_i32_0 : i32, i32
  }
  func.func @transform_3(%arg0: i32, %arg1: i32) -> (i32, i32, i32, i32) {
    %c0_i32 = arith.constant 0 : i32
    %c0_i32_0 = arith.constant 0 : i32
    %c0_i32_1 = arith.constant 0 : i32
    return %arg0, %arg1, %c0_i32, %c0_i32_0 : i32, i32, i32, i32
  }
}

module attributes {stable_mosaic.version = 11 : i64} {
  func.func @_gemm_kernel(%arg0: i32, %arg1: i32, %arg2: memref<512x32xbf16, #tpu.memory_space<vmem>>, %arg3: memref<32x8xbf16, #tpu.memory_space<vmem>>, %arg4: memref<1x8xf32, #tpu.memory_space<vmem>>, %arg5: memref<512x8xbf16, #tpu.memory_space<vmem>>) attributes {dimension_semantics = [#tpu.dimension_semantics<parallel>, #tpu.dimension_semantics<parallel>], iteration_bounds = array<i64: 1, 1>, scalar_prefetch = 0 : i64, scratch_operands = 0 : i64, tpu.core_type = #tpu.core_type<tc>, window_params = [{transform_indices = @transform_0, window_bounds = array<i64: 512, 32>}, {transform_indices = @transform_1, window_bounds = array<i64: 32, 8>}, {transform_indices = @transform_2, window_bounds = array<i64: 1, 8>}, {transform_indices = @transform_3, window_bounds = array<i64: 512, 8>}]} {
    %c0 = arith.constant 0 : index
    %c0_0 = arith.constant 0 : index
    %0 = vector.load %arg2[%c0, %c0_0] : memref<512x32xbf16, #tpu.memory_space<vmem>>, vector<512x32xbf16>
    %c0_1 = arith.constant 0 : index
    %c0_2 = arith.constant 0 : index
    %1 = vector.load %arg3[%c0_1, %c0_2] : memref<32x8xbf16, #tpu.memory_space<vmem>>, vector<32x8xbf16>
    %cst = arith.constant dense<0.000000e+00> : vector<512x8xf32>
    %2 = tpu.matmul %0, %1, %cst {dimension_numbers = #tpu.dot_dimension_numbers<[1], [0], [0], [1], [0, 0, 1, 1], [], []>} : vector<512x32xbf16>, vector<32x8xbf16>, vector<512x8xf32> -> vector<512x8xf32>
    %c0_3 = arith.constant 0 : index
    %c0_4 = arith.constant 0 : index
    %3 = vector.load %arg4[%c0_3, %c0_4] : memref<1x8xf32, #tpu.memory_space<vmem>>, vector<1x8xf32>
    %4 = vector.broadcast %3 : vector<1x8xf32> to vector<512x8xf32>
    %5 = arith.addf %2, %4 : vector<512x8xf32>
    %cst_5 = arith.constant 0.000000e+00 : f32
    %6 = vector.broadcast %cst_5 : f32 to vector<512x8xf32>
    %7 = arith.maximumf %5, %6 : vector<512x8xf32>
    %8 = arith.truncf %7 : vector<512x8xf32> to vector<512x8xbf16>
    %c0_6 = arith.constant 0 : index
    %c0_7 = arith.constant 0 : index
    %9 = vector.load %arg5[%c0_6, %c0_7] : memref<512x8xbf16, #tpu.memory_space<vmem>>, vector<512x8xbf16>
    tpu.vector_store %arg5[%c0_6, %c0_7], %8 {strides = array<i32>} : memref<512x8xbf16, #tpu.memory_space<vmem>>, vector<512x8xbf16>,
    return
  }
  func.func @transform_0(%arg0: i32, %arg1: i32) -> (i32, i32) {
    %c0_i32 = arith.constant 0 : i32
    %c0_i32_0 = arith.constant 0 : i32
    return %arg1, %c0_i32 : i32, i32
  }
  func.func @transform_1(%arg0: i32, %arg1: i32) -> (i32, i32) {
    %c0_i32 = arith.constant 0 : i32
    %c0_i32_0 = arith.constant 0 : i32
    return %c0_i32, %arg0 : i32, i32
  }
  func.func @transform_2(%arg0: i32, %arg1: i32) -> (i32, i32) {
    %c0_i32 = arith.constant 0 : i32
    %c0_i32_0 = arith.constant 0 : i32
    return %c0_i32, %arg0 : i32, i32
  }
  func.func @transform_3(%arg0: i32, %arg1: i32) -> (i32, i32) {
    %c0_i32 = arith.constant 0 : i32
    return %arg1, %arg0 : i32, i32
  }
}

module attributes {stable_mosaic.version = 11 : i64} {
  func.func @_gemm_kernel(%arg0: i32, %arg1: i32, %arg2: memref<512x32xbf16, #tpu.memory_space<vmem>>, %arg3: memref<32x16xbf16, #tpu.memory_space<vmem>>, %arg4: memref<1x16xf32, #tpu.memory_space<vmem>>, %arg5: memref<512x16xbf16, #tpu.memory_space<vmem>>) attributes {dimension_semantics = [#tpu.dimension_semantics<parallel>, #tpu.dimension_semantics<parallel>], iteration_bounds = array<i64: 1, 1>, scalar_prefetch = 0 : i64, scratch_operands = 0 : i64, tpu.core_type = #tpu.core_type<tc>, window_params = [{transform_indices = @transform_0, window_bounds = array<i64: 512, 32>}, {transform_indices = @transform_1, window_bounds = array<i64: 32, 16>}, {transform_indices = @transform_2, window_bounds = array<i64: 1, 16>}, {transform_indices = @transform_3, window_bounds = array<i64: 512, 16>}]} {
    %c0 = arith.constant 0 : index
    %c0_0 = arith.constant 0 : index
    %0 = vector.load %arg2[%c0, %c0_0] : memref<512x32xbf16, #tpu.memory_space<vmem>>, vector<512x32xbf16>
    %c0_1 = arith.constant 0 : index
    %c0_2 = arith.constant 0 : index
    %1 = vector.load %arg3[%c0_1, %c0_2] : memref<32x16xbf16, #tpu.memory_space<vmem>>, vector<32x16xbf16>
    %cst = arith.constant dense<0.000000e+00> : vector<512x16xf32>
    %2 = tpu.matmul %0, %1, %cst {dimension_numbers = #tpu.dot_dimension_numbers<[1], [0], [0], [1], [0, 0, 1, 1], [], []>} : vector<512x32xbf16>, vector<32x16xbf16>, vector<512x16xf32> -> vector<512x16xf32>
    %c0_3 = arith.constant 0 : index
    %c0_4 = arith.constant 0 : index
    %3 = vector.load %arg4[%c0_3, %c0_4] : memref<1x16xf32, #tpu.memory_space<vmem>>, vector<1x16xf32>
    %4 = vector.broadcast %3 : vector<1x16xf32> to vector<512x16xf32>
    %5 = arith.addf %2, %4 : vector<512x16xf32>
    %cst_5 = arith.constant 0.000000e+00 : f32
    %6 = vector.broadcast %cst_5 : f32 to vector<512x16xf32>
    %7 = arith.maximumf %5, %6 : vector<512x16xf32>
    %8 = arith.truncf %7 : vector<512x16xf32> to vector<512x16xbf16>
    %c0_6 = arith.constant 0 : index
    %c0_7 = arith.constant 0 : index
    %9 = vector.load %arg5[%c0_6, %c0_7] : memref<512x16xbf16, #tpu.memory_space<vmem>>, vector<512x16xbf16>
    tpu.vector_store %arg5[%c0_6, %c0_7], %8 {strides = array<i32>} : memref<512x16xbf16, #tpu.memory_space<vmem>>, vector<512x16xbf16>,
    return
  }
  func.func @transform_0(%arg0: i32, %arg1: i32) -> (i32, i32) {
    %c0_i32 = arith.constant 0 : i32
    %c0_i32_0 = arith.constant 0 : i32
    return %arg1, %c0_i32 : i32, i32
  }
  func.func @transform_1(%arg0: i32, %arg1: i32) -> (i32, i32) {
    %c0_i32 = arith.constant 0 : i32
    %c0_i32_0 = arith.constant 0 : i32
    return %c0_i32, %arg0 : i32, i32
  }
  func.func @transform_2(%arg0: i32, %arg1: i32) -> (i32, i32) {
    %c0_i32 = arith.constant 0 : i32
    %c0_i32_0 = arith.constant 0 : i32
    return %c0_i32, %arg0 : i32, i32
  }
  func.func @transform_3(%arg0: i32, %arg1: i32) -> (i32, i32) {
    %c0_i32 = arith.constant 0 : i32
    return %arg1, %arg0 : i32, i32
  }
}

module attributes {stable_mosaic.version = 11 : i64} {
  func.func @_gemm_kernel(%arg0: i32, %arg1: i32, %arg2: memref<6x256xbf16, #tpu.memory_space<vmem>>, %arg3: memref<256x32xbf16, #tpu.memory_space<vmem>>, %arg4: memref<1x32xf32, #tpu.memory_space<vmem>>, %arg5: memref<6x32xbf16, #tpu.memory_space<vmem>>) attributes {dimension_semantics = [#tpu.dimension_semantics<parallel>, #tpu.dimension_semantics<parallel>], iteration_bounds = array<i64: 1, 1>, scalar_prefetch = 0 : i64, scratch_operands = 0 : i64, tpu.core_type = #tpu.core_type<tc>, window_params = [{transform_indices = @transform_0, window_bounds = array<i64: 6, 256>}, {transform_indices = @transform_1, window_bounds = array<i64: 256, 32>}, {transform_indices = @transform_2, window_bounds = array<i64: 1, 32>}, {transform_indices = @transform_3, window_bounds = array<i64: 6, 32>}]} {
    %c0 = arith.constant 0 : index
    %c0_0 = arith.constant 0 : index
    %0 = vector.load %arg2[%c0, %c0_0] : memref<6x256xbf16, #tpu.memory_space<vmem>>, vector<6x256xbf16>
    %c0_1 = arith.constant 0 : index
    %c0_2 = arith.constant 0 : index
    %1 = vector.load %arg3[%c0_1, %c0_2] : memref<256x32xbf16, #tpu.memory_space<vmem>>, vector<256x32xbf16>
    %cst = arith.constant dense<0.000000e+00> : vector<6x32xf32>
    %2 = tpu.matmul %0, %1, %cst {dimension_numbers = #tpu.dot_dimension_numbers<[1], [0], [0], [1], [0, 0, 1, 1], [], []>} : vector<6x256xbf16>, vector<256x32xbf16>, vector<6x32xf32> -> vector<6x32xf32>
    %c0_3 = arith.constant 0 : index
    %c0_4 = arith.constant 0 : index
    %3 = vector.load %arg4[%c0_3, %c0_4] : memref<1x32xf32, #tpu.memory_space<vmem>>, vector<1x32xf32>
    %4 = vector.broadcast %3 : vector<1x32xf32> to vector<6x32xf32>
    %5 = arith.addf %2, %4 : vector<6x32xf32>
    %cst_5 = arith.constant 0.000000e+00 : f32
    %6 = vector.broadcast %cst_5 : f32 to vector<6x32xf32>
    %7 = arith.maximumf %5, %6 : vector<6x32xf32>
    %8 = arith.truncf %7 : vector<6x32xf32> to vector<6x32xbf16>
    %c0_6 = arith.constant 0 : index
    %c0_7 = arith.constant 0 : index
    %9 = vector.load %arg5[%c0_6, %c0_7] : memref<6x32xbf16, #tpu.memory_space<vmem>>, vector<6x32xbf16>
    tpu.vector_store %arg5[%c0_6, %c0_7], %8 {strides = array<i32>} : memref<6x32xbf16, #tpu.memory_space<vmem>>, vector<6x32xbf16>,
    return
  }
  func.func @transform_0(%arg0: i32, %arg1: i32) -> (i32, i32) {
    %c0_i32 = arith.constant 0 : i32
    %c0_i32_0 = arith.constant 0 : i32
    return %arg1, %c0_i32 : i32, i32
  }
  func.func @transform_1(%arg0: i32, %arg1: i32) -> (i32, i32) {
    %c0_i32 = arith.constant 0 : i32
    %c0_i32_0 = arith.constant 0 : i32
    return %c0_i32, %arg0 : i32, i32
  }
  func.func @transform_2(%arg0: i32, %arg1: i32) -> (i32, i32) {
    %c0_i32 = arith.constant 0 : i32
    %c0_i32_0 = arith.constant 0 : i32
    return %c0_i32, %arg0 : i32, i32
  }
  func.func @transform_3(%arg0: i32, %arg1: i32) -> (i32, i32) {
    %c0_i32 = arith.constant 0 : i32
    return %arg1, %arg0 : i32, i32
  }
}

module attributes {stable_mosaic.version = 11 : i64} {
  func.func @_gemm_kernel(%arg0: i32, %arg1: i32, %arg2: memref<6x32xbf16, #tpu.memory_space<vmem>>, %arg3: memref<32x32xbf16, #tpu.memory_space<vmem>>, %arg4: memref<1x32xf32, #tpu.memory_space<vmem>>, %arg5: memref<6x32xf32, #tpu.memory_space<vmem>>) attributes {dimension_semantics = [#tpu.dimension_semantics<parallel>, #tpu.dimension_semantics<parallel>], iteration_bounds = array<i64: 1, 1>, scalar_prefetch = 0 : i64, scratch_operands = 0 : i64, tpu.core_type = #tpu.core_type<tc>, window_params = [{transform_indices = @transform_0, window_bounds = array<i64: 6, 32>}, {transform_indices = @transform_1, window_bounds = array<i64: 32, 32>}, {transform_indices = @transform_2, window_bounds = array<i64: 1, 32>}, {transform_indices = @transform_3, window_bounds = array<i64: 6, 32>}]} {
    %c0 = arith.constant 0 : index
    %c0_0 = arith.constant 0 : index
    %0 = vector.load %arg2[%c0, %c0_0] : memref<6x32xbf16, #tpu.memory_space<vmem>>, vector<6x32xbf16>
    %c0_1 = arith.constant 0 : index
    %c0_2 = arith.constant 0 : index
    %1 = vector.load %arg3[%c0_1, %c0_2] : memref<32x32xbf16, #tpu.memory_space<vmem>>, vector<32x32xbf16>
    %cst = arith.constant dense<0.000000e+00> : vector<6x32xf32>
    %2 = tpu.matmul %0, %1, %cst {dimension_numbers = #tpu.dot_dimension_numbers<[1], [0], [0], [1], [0, 0, 1, 1], [], []>} : vector<6x32xbf16>, vector<32x32xbf16>, vector<6x32xf32> -> vector<6x32xf32>
    %c0_3 = arith.constant 0 : index
    %c0_4 = arith.constant 0 : index
    %3 = vector.load %arg4[%c0_3, %c0_4] : memref<1x32xf32, #tpu.memory_space<vmem>>, vector<1x32xf32>
    %4 = vector.broadcast %3 : vector<1x32xf32> to vector<6x32xf32>
    %5 = arith.addf %2, %4 : vector<6x32xf32>
    %cst_5 = arith.constant 0.000000e+00 : f32
    %6 = vector.broadcast %cst_5 : f32 to vector<6x32xf32>
    %7 = arith.maximumf %5, %6 : vector<6x32xf32>
    %c0_6 = arith.constant 0 : index
    %c0_7 = arith.constant 0 : index
    %8 = vector.load %arg5[%c0_6, %c0_7] : memref<6x32xf32, #tpu.memory_space<vmem>>, vector<6x32xf32>
    tpu.vector_store %arg5[%c0_6, %c0_7], %7 {strides = array<i32>} : memref<6x32xf32, #tpu.memory_space<vmem>>, vector<6x32xf32>,
    return
  }
  func.func @transform_0(%arg0: i32, %arg1: i32) -> (i32, i32) {
    %c0_i32 = arith.constant 0 : i32
    %c0_i32_0 = arith.constant 0 : i32
    return %arg1, %c0_i32 : i32, i32
  }
  func.func @transform_1(%arg0: i32, %arg1: i32) -> (i32, i32) {
    %c0_i32 = arith.constant 0 : i32
    %c0_i32_0 = arith.constant 0 : i32
    return %c0_i32, %arg0 : i32, i32
  }
  func.func @transform_2(%arg0: i32, %arg1: i32) -> (i32, i32) {
    %c0_i32 = arith.constant 0 : i32
    %c0_i32_0 = arith.constant 0 : i32
    return %c0_i32, %arg0 : i32, i32
  }
  func.func @transform_3(%arg0: i32, %arg1: i32) -> (i32, i32) {
    %c0_i32 = arith.constant 0 : i32
    return %arg1, %arg0 : i32, i32
  }
}

</mosaic_0001>

<bundles_post_ra>
// kernel: forward.15
= control target key start
LH: loop header
LB: loop body
LE: loop exit
PB: predicated region body
PF: predicated region fallthrough
CT: control target
= control target key end

     0   :  { %vm262_vm0 = vcmask 261120   ;;  %vm968_vm1 = vcmask 60416   ;;  %s1851_s1 = inlined_call_operand.vmem [shape: bf16[32,8], index: 1, kind: input, shape index: {}]   ;;  %s1852_s0 = inlined_call_operand.vmem [shape: bf16[512,32], index: 0, kind: input, shape index: {}]   ;;  %s1853_s2 = inlined_call_operand.vmem [shape: f32[1,8], index: 2, kind: input, shape index: {}]   ;;  %s1854_s3 = inlined_call_operand.vmem [shape: bf16[512,8], index: 3, kind: output, shape index: {}]  }
   0x1   :  { %v1338_v0 = vld [vmem:[%s1851_s1 + $0x8] sm:$0xff]   ;;  %v1339_v1 = vld [vmem:[%s1851_s1] sm:$0xff]   ;;  %v1344_v6 = vld [vmem:[%s1852_s0 + $0x10] sm:$0xff]  }
   0x2   :  { %1266 = vmatprep.subr.bf16.mxu0 %v1338_v0  ;;  %1334 = vmatprep.subr.bf16.mxu1 %v1338_v0  ;;  %v1340_v2 = vld [vmem:[%s1852_s0] sm:$0xff]   ;;  %v1342_v4 = vld [vmem:[%s1852_s0 + $0x8] sm:$0xff]   ;;  %v1345_v7 = vld [vmem:[%s1852_s0 + $0x90] sm:$0xff]  }
   0x3   :  { %1267 = vmatpush3.bf16.msra.mxu0 %v1338_v0  ;;  %1336 = vmatpush3.bf16.msra.mxu1 %v1338_v0  ;;  %v1341_v3 = vld [vmem:[%s1852_s0 + $0x80] sm:$0xff]   ;;  %v1343_v5 = vld [vmem:[%s1852_s0 + $0x88] sm:$0xff]   ;;  %v1346_v8 = vld [vmem:[%s1852_s0 + $0x18] sm:$0xff]  }
   0x4   :  { %1268 = vmatprep.subr.bf16.mxu0 %v1339_v1  ;;  %1335 = vmatprep.subr.bf16.mxu1 %v1339_v1  ;;  %v1347_v9 = vld [vmem:[%s1852_s0 + $0x98] sm:$0xff]   ;;  %v1348_v10 = vld [vmem:[%s1852_s0 + $0x20] sm:$0xff]   ;;  %v1350_v12 = vld [vmem:[%s1852_s0 + $0x28] sm:$0xff]  }
   0x5   :  { %1270 = vmatprep.mubr.msk.bf16.mxu0 %vm262_vm0, %v1340_v2  ;;  %1302 = vmatprep.mubr.msk.bf16.mxu1 %vm262_vm0, %v1341_v3  ;;  %v1349_v11 = vld [vmem:[%s1852_s0 + $0xa0] sm:$0xff]   ;;  %v1351_v13 = vld [vmem:[%s1852_s0 + $0xa8] sm:$0xff]   ;;  %v1352_v14 = vld [vmem:[%s1852_s0 + $0x30] sm:$0xff]  }
   0x6   :  { %v1353_v15 = vld [vmem:[%s1852_s0 + $0xb0] sm:$0xff]   ;;  %v1354_v16 = vld [vmem:[%s1852_s0 + $0x38] sm:$0xff]   ;;  %v1356_v18 = vld [vmem:[%s1852_s0 + $0x40] sm:$0xff]  }
   0x7   :  { %1269 = vmatpush3.bf16.msra.mxu0 %v1339_v1  ;;  %1337 = vmatpush3.bf16.msra.mxu1 %v1339_v1  ;;  %v1355_v17 = vld [vmem:[%s1852_s0 + $0xb8] sm:$0xff]   ;;  %v1357_v19 = vld [vmem:[%s1852_s0 + $0xc0] sm:$0xff]   ;;  %v1358_v20 = vld [vmem:[%s1852_s0 + $0x48] sm:$0xff]  }
   0x8   :  { %v1359_v21 = vld [vmem:[%s1852_s0 + $0xc8] sm:$0xff]   ;;  %v1360_v22 = vld [vmem:[%s1852_s0 + $0x50] sm:$0xff]   ;;  %v1362_v24 = vld [vmem:[%s1852_s0 + $0x58] sm:$0xff]  }
   0x9   :  { %v1361_v23 = vld [vmem:[%s1852_s0 + $0xd0] sm:$0xff]   ;;  %v1363_v25 = vld [vmem:[%s1852_s0 + $0xd8] sm:$0xff]   ;;  %v1364_v26 = vld [vmem:[%s1852_s0 + $0x60] sm:$0xff]  }
   0xa   :  { %1271 = vmatmul.mubr.msk.bf16.vlgmr.msra.gmra.mxu0 %vm262_vm0, %v1342_v4  ;;  %1303 = vmatmul.mubr.msk.bf16.vlgmr.msra.gmra.mxu1 %vm262_vm0, %v1343_v5  ;;  %v1365_v27 = vld [vmem:[%s1852_s0 + $0xe0] sm:$0xff]   ;;  %v1366_v28 = vld [vmem:[%s1852_s0 + $0x68] sm:$0xff]   ;;  %v1368_v30 = vld [vmem:[%s1852_s0 + $0x70] sm:$0xff]  }
   0xb   :  { %1274 = vmatprep.mubr.msk.bf16.mxu0 %vm262_vm0, %v1344_v6  ;;  %1306 = vmatprep.mubr.msk.bf16.mxu1 %vm262_vm0, %v1345_v7  ;;  %v1367_v29 = vld [vmem:[%s1852_s0 + $0xe8] sm:$0xff]   ;;  %v1369_v31 = vld [vmem:[%s1852_s0 + $0xf0] sm:$0xff]   ;;  %v1370_v32 = vld [vmem:[%s1852_s0 + $0x78] sm:$0xff]  }
   0xc   :  { %v1371_v33 = vld [vmem:[%s1852_s0 + $0xf8] sm:$0xff]   ;;  %v1529_v34 = vld [vmem:[%s1853_s2] ss:$0 sm:$0xff] }
  0x12   :  { %1275 = vmatmul.mubr.msk.bf16.gmra.mxu0 %vm262_vm0, %v1346_v8  ;;  %1307 = vmatmul.mubr.msk.bf16.gmra.mxu1 %vm262_vm0, %v1347_v9 }
  0x13   :  { %1278 = vmatprep.mubr.msk.bf16.mxu0 %vm262_vm0, %v1348_v10  ;;  %1310 = vmatprep.mubr.msk.bf16.mxu1 %vm262_vm0, %v1349_v11 }
  0x1a   :  { %1279 = vmatmul.mubr.msk.bf16.gmra.mxu0 %vm262_vm0, %v1350_v12  ;;  %1311 = vmatmul.mubr.msk.bf16.gmra.mxu1 %vm262_vm0, %v1351_v13 }
  0x1b   :  { %1282 = vmatprep.mubr.msk.bf16.mxu0 %vm262_vm0, %v1352_v14  ;;  %1314 = vmatprep.mubr.msk.bf16.mxu1 %vm262_vm0, %v1353_v15 }
  0x22   :  { %1283 = vmatmul.mubr.msk.bf16.gmra.mxu0 %vm262_vm0, %v1354_v16  ;;  %1315 = vmatmul.mubr.msk.bf16.gmra.mxu1 %vm262_vm0, %v1355_v17 }
  0x23   :  { %1286 = vmatprep.mubr.msk.bf16.mxu0 %vm262_vm0, %v1356_v18  ;;  %1318 = vmatprep.mubr.msk.bf16.mxu1 %vm262_vm0, %v1357_v19 }
  0x2a   :  { %1287 = vmatmul.mubr.msk.bf16.gmra.mxu0 %vm262_vm0, %v1358_v20  ;;  %1319 = vmatmul.mubr.msk.bf16.gmra.mxu1 %vm262_vm0, %v1359_v21 }
  0x2b   :  { %1290 = vmatprep.mubr.msk.bf16.mxu0 %vm262_vm0, %v1360_v22  ;;  %1322 = vmatprep.mubr.msk.bf16.mxu1 %vm262_vm0, %v1361_v23 }
  0x32   :  { %1291 = vmatmul.mubr.msk.bf16.gmra.mxu0 %vm262_vm0, %v1362_v24  ;;  %1323 = vmatmul.mubr.msk.bf16.gmra.mxu1 %vm262_vm0, %v1363_v25 }
  0x33   :  { %1294 = vmatprep.mubr.msk.bf16.mxu0 %vm262_vm0, %v1364_v26  ;;  %1326 = vmatprep.mubr.msk.bf16.mxu1 %vm262_vm0, %v1365_v27 }
  0x3a   :  { %1295 = vmatmul.mubr.msk.bf16.gmra.mxu0 %vm262_vm0, %v1366_v28  ;;  %1327 = vmatmul.mubr.msk.bf16.gmra.mxu1 %vm262_vm0, %v1367_v29 }
  0x3b   :  { %1298 = vmatprep.mubr.msk.bf16.mxu0 %vm262_vm0, %v1368_v30  ;;  %1330 = vmatprep.mubr.msk.bf16.mxu1 %vm262_vm0, %v1369_v31 }
  0x42   :  { %1299 = vmatmul.mubr.msk.bf16.gmra.mxu0 %vm262_vm0, %v1370_v32  ;;  %1331 = vmatmul.mubr.msk.bf16.gmra.mxu1 %vm262_vm0, %v1371_v33 }
  0xca   :  { %v1272_v35 = vpop.f32.mrf.mxu0  ;;  %v1304_v36 = vpop.f32.mrf.mxu1 }
  0xcb   :  { %v402_v37 = vadd.f32 %v1272_v35, %v1529_v34  ;;  %v530_v38 = vadd.f32 %v1304_v36, %v1529_v34 }
  0xcc   :  { %v393_v39 = vpop.f32.mrf.mxu0  ;;  %v521_v40 = vpop.f32.mrf.mxu1 }
  0xcd   :  { %v650_v41 = vmax.f32 %v402_v37, 0.0  ;;  %v682_v42 = vmax.f32 %v530_v38, 0.0  ;;  %v394_v43 = vadd.f32 %v1529_v34, %v393_v39  ;;  %v522_v44 = vadd.f32 %v1529_v34, %v521_v40 }
  0xce   :  { %v1273_v45 = vpop.f32.mrf.mxu0  ;;  %v1305_v46 = vpop.f32.mrf.mxu1 }
  0xcf   :  { %v1170_v47 = vpack.c.bf16 %v650_v41, %v650_v41  ;;  %v1202_v48 = vpack.c.bf16 %v682_v42, %v682_v42  ;;  %v648_v49 = vmax.f32 %v394_v43, 0.0  ;;  %v680_v50 = vmax.f32 %v522_v44, 0.0 }
  0xd0   :  { %v405_v51 = vadd.f32 %v1273_v45, %v1529_v34  ;;  %v533_v52 = vadd.f32 %v1305_v46, %v1529_v34  ;;  %v396_v53 = vpop.f32.mrf.mxu0  ;;  %v524_v54 = vpop.f32.mrf.mxu1 }
  0xd1   :  { %971 = vst.msk [vmem:[%s1854_s3 + $0x8] sm:$0xf] %vm968_vm1, %v1170_v47  ;;  %1003 = vst.msk [vmem:[%s1854_s3 + $0x88] sm:$0xf] %vm968_vm1, %v1202_v48  ;;  %v1168_v55 = vpack.c.bf16 %v648_v49, %v648_v49  ;;  %v1200_v56 = vpack.c.bf16 %v680_v50, %v680_v50  ;;  %v397_v57 = vadd.f32 %v1529_v34, %v396_v53 }
  0xd2   :  { %v525_v58 = vadd.f32 %v1529_v34, %v524_v54  ;;  %v651_v59 = vmax.f32 %v405_v51, 0.0  ;;  %v683_v60 = vmax.f32 %v533_v52, 0.0  ;;  %v1276_v61 = vpop.f32.mrf.mxu0  ;;  %v1308_v62 = vpop.f32.mrf.mxu1 }
  0xd3   :  { %969 = vst.msk [vmem:[%s1854_s3] sm:$0xf] %vm968_vm1, %v1168_v55  ;;  %1001 = vst.msk [vmem:[%s1854_s3 + $0x80] sm:$0xf] %vm968_vm1, %v1200_v56  ;;  %v649_v63 = vmax.f32 %v397_v57, 0.0  ;;  %v418_v1 = vadd.f32 %v1276_v61, %v1529_v34  ;;  %v546_v2 = vadd.f32 %v1308_v62, %v1529_v34 }
  0xd4   :  { %v681_v0 = vmax.f32 %v525_v58, 0.0  ;;  %v1171_v3 = vpack.c.bf16 %v651_v59, %v651_v59  ;;  %v1203_v4 = vpack.c.bf16 %v683_v60, %v683_v60  ;;  %v409_v5 = vpop.f32.mrf.mxu0  ;;  %v537_v6 = vpop.f32.mrf.mxu1 }
  0xd5   :  { %v1169_v7 = vpack.c.bf16 %v649_v63, %v649_v63  ;;  %v654_v9 = vmax.f32 %v418_v1, 0.0  ;;  %v686_v10 = vmax.f32 %v546_v2, 0.0  ;;  %v410_v11 = vadd.f32 %v1529_v34, %v409_v5 }
  0xd6   :  { %v1201_v8 = vpack.c.bf16 %v681_v0, %v681_v0  ;;  %972 = vst.msk [vmem:[%s1854_s3 + $0xc] sm:$0xf] %vm968_vm1, %v1171_v3  ;;  %1004 = vst.msk [vmem:[%s1854_s3 + $0x8c] sm:$0xf] %vm968_vm1, %v1203_v4  ;;  %v538_v12 = vadd.f32 %v1529_v34, %v537_v6  ;;  %v1277_v13 = vpop.f32.mrf.mxu0  ;;  %v1309_v14 = vpop.f32.mrf.mxu1 }
  0xd7   :  { %970 = vst.msk [vmem:[%s1854_s3 + $0x4] sm:$0xf] %vm968_vm1, %v1169_v7  ;;  %v1174_v15 = vpack.c.bf16 %v654_v9, %v654_v9  ;;  %v1206_v16 = vpack.c.bf16 %v686_v10, %v686_v10  ;;  %v421_v17 = vadd.f32 %v1277_v13, %v1529_v34  ;;  %v549_v18 = vadd.f32 %v1309_v14, %v1529_v34 }
  0xd8   :  { %1002 = vst.msk [vmem:[%s1854_s3 + $0x84] sm:$0xf] %vm968_vm1, %v1201_v8  ;;  %v652_v19 = vmax.f32 %v410_v11, 0.0  ;;  %v684_v20 = vmax.f32 %v538_v12, 0.0  ;;  %v412_v21 = vpop.f32.mrf.mxu0  ;;  %v540_v22 = vpop.f32.mrf.mxu1 }
  0xd9   :  { %975 = vst.msk [vmem:[%s1854_s3 + $0x18] sm:$0xf] %vm968_vm1, %v1174_v15  ;;  %1007 = vst.msk [vmem:[%s1854_s3 + $0x98] sm:$0xf] %vm968_vm1, %v1206_v16  ;;  %v655_v23 = vmax.f32 %v421_v17, 0.0  ;;  %v687_v24 = vmax.f32 %v549_v18, 0.0  ;;  %v413_v25 = vadd.f32 %v1529_v34, %v412_v21  ;;  %v541_v26 = vadd.f32 %v1529_v34, %v540_v22 }
  0xda   :  { %v1172_v27 = vpack.c.bf16 %v652_v19, %v652_v19  ;;  %v1204_v28 = vpack.c.bf16 %v684_v20, %v684_v20  ;;  %v1280_v29 = vpop.f32.mrf.mxu0  ;;  %v1312_v30 = vpop.f32.mrf.mxu1 }
  0xdb   :  { %v1175_v31 = vpack.c.bf16 %v655_v23, %v655_v23  ;;  %v1207_v32 = vpack.c.bf16 %v687_v24, %v687_v24  ;;  %v653_v33 = vmax.f32 %v413_v25, 0.0  ;;  %v685_v35 = vmax.f32 %v541_v26, 0.0 }
  0xdc   :  { %973 = vst.msk [vmem:[%s1854_s3 + $0x10] sm:$0xf] %vm968_vm1, %v1172_v27  ;;  %1005 = vst.msk [vmem:[%s1854_s3 + $0x90] sm:$0xf] %vm968_vm1, %v1204_v28  ;;  %v434_v36 = vadd.f32 %v1280_v29, %v1529_v34  ;;  %v562_v37 = vadd.f32 %v1312_v30, %v1529_v34  ;;  %v425_v38 = vpop.f32.mrf.mxu0  ;;  %v553_v39 = vpop.f32.mrf.mxu1 }
  0xdd   :  { %976 = vst.msk [vmem:[%s1854_s3 + $0x1c] sm:$0xf] %vm968_vm1, %v1175_v31  ;;  %1008 = vst.msk [vmem:[%s1854_s3 + $0x9c] sm:$0xf] %vm968_vm1, %v1207_v32  ;;  %v1173_v40 = vpack.c.bf16 %v653_v33, %v653_v33  ;;  %v1205_v41 = vpack.c.bf16 %v685_v35, %v685_v35  ;;  %v426_v42 = vadd.f32 %v1529_v34, %v425_v38 }
  0xde   :  { %v554_v43 = vadd.f32 %v1529_v34, %v553_v39  ;;  %v658_v44 = vmax.f32 %v434_v36, 0.0  ;;  %v690_v45 = vmax.f32 %v562_v37, 0.0  ;;  %v1281_v46 = vpop.f32.mrf.mxu0  ;;  %v1313_v47 = vpop.f32.mrf.mxu1 }
  0xdf   :  { %974 = vst.msk [vmem:[%s1854_s3 + $0x14] sm:$0xf] %vm968_vm1, %v1173_v40  ;;  %1006 = vst.msk [vmem:[%s1854_s3 + $0x94] sm:$0xf] %vm968_vm1, %v1205_v41  ;;  %v656_v48 = vmax.f32 %v426_v42, 0.0  ;;  %v437_v50 = vadd.f32 %v1281_v46, %v1529_v34  ;;  %v565_v51 = vadd.f32 %v1313_v47, %v1529_v34 }
  0xe0   :  { %v688_v49 = vmax.f32 %v554_v43, 0.0  ;;  %v1178_v52 = vpack.c.bf16 %v658_v44, %v658_v44  ;;  %v1210_v53 = vpack.c.bf16 %v690_v45, %v690_v45  ;;  %v428_v54 = vpop.f32.mrf.mxu0  ;;  %v556_v55 = vpop.f32.mrf.mxu1 }
  0xe1   :  { %v1176_v56 = vpack.c.bf16 %v656_v48, %v656_v48  ;;  %v659_v58 = vmax.f32 %v437_v50, 0.0  ;;  %v691_v59 = vmax.f32 %v565_v51, 0.0  ;;  %v429_v60 = vadd.f32 %v1529_v34, %v428_v54 }
  0xe2   :  { %v1208_v57 = vpack.c.bf16 %v688_v49, %v688_v49  ;;  %979 = vst.msk [vmem:[%s1854_s3 + $0x28] sm:$0xf] %vm968_vm1, %v1178_v52  ;;  %1011 = vst.msk [vmem:[%s1854_s3 + $0xa8] sm:$0xf] %vm968_vm1, %v1210_v53  ;;  %v557_v61 = vadd.f32 %v1529_v34, %v556_v55  ;;  %v1284_v62 = vpop.f32.mrf.mxu0  ;;  %v1316_v63 = vpop.f32.mrf.mxu1 }
  0xe3   :  { %977 = vst.msk [vmem:[%s1854_s3 + $0x20] sm:$0xf] %vm968_vm1, %v1176_v56  ;;  %v1179_v0 = vpack.c.bf16 %v659_v58, %v659_v58  ;;  %v1211_v1 = vpack.c.bf16 %v691_v59, %v691_v59  ;;  %v450_v2 = vadd.f32 %v1284_v62, %v1529_v34  ;;  %v578_v3 = vadd.f32 %v1316_v63, %v1529_v34 }
  0xe4   :  { %1009 = vst.msk [vmem:[%s1854_s3 + $0xa0] sm:$0xf] %vm968_vm1, %v1208_v57  ;;  %v657_v4 = vmax.f32 %v429_v60, 0.0  ;;  %v689_v5 = vmax.f32 %v557_v61, 0.0  ;;  %v441_v6 = vpop.f32.mrf.mxu0  ;;  %v569_v7 = vpop.f32.mrf.mxu1 }
  0xe5   :  { %980 = vst.msk [vmem:[%s1854_s3 + $0x2c] sm:$0xf] %vm968_vm1, %v1179_v0  ;;  %1012 = vst.msk [vmem:[%s1854_s3 + $0xac] sm:$0xf] %vm968_vm1, %v1211_v1  ;;  %v662_v8 = vmax.f32 %v450_v2, 0.0  ;;  %v694_v9 = vmax.f32 %v578_v3, 0.0  ;;  %v442_v10 = vadd.f32 %v1529_v34, %v441_v6  ;;  %v570_v11 = vadd.f32 %v1529_v34, %v569_v7 }
  0xe6   :  { %v1177_v12 = vpack.c.bf16 %v657_v4, %v657_v4  ;;  %v1209_v13 = vpack.c.bf16 %v689_v5, %v689_v5  ;;  %v1285_v14 = vpop.f32.mrf.mxu0  ;;  %v1317_v15 = vpop.f32.mrf.mxu1 }
  0xe7   :  { %v1182_v16 = vpack.c.bf16 %v662_v8, %v662_v8  ;;  %v1214_v17 = vpack.c.bf16 %v694_v9, %v694_v9  ;;  %v660_v18 = vmax.f32 %v442_v10, 0.0  ;;  %v692_v19 = vmax.f32 %v570_v11, 0.0 }
  0xe8   :  { %978 = vst.msk [vmem:[%s1854_s3 + $0x24] sm:$0xf] %vm968_vm1, %v1177_v12  ;;  %1010 = vst.msk [vmem:[%s1854_s3 + $0xa4] sm:$0xf] %vm968_vm1, %v1209_v13  ;;  %v453_v20 = vadd.f32 %v1285_v14, %v1529_v34  ;;  %v581_v21 = vadd.f32 %v1317_v15, %v1529_v34  ;;  %v444_v22 = vpop.f32.mrf.mxu0  ;;  %v572_v23 = vpop.f32.mrf.mxu1 }
  0xe9   :  { %983 = vst.msk [vmem:[%s1854_s3 + $0x38] sm:$0xf] %vm968_vm1, %v1182_v16  ;;  %1015 = vst.msk [vmem:[%s1854_s3 + $0xb8] sm:$0xf] %vm968_vm1, %v1214_v17  ;;  %v1180_v24 = vpack.c.bf16 %v660_v18, %v660_v18  ;;  %v1212_v25 = vpack.c.bf16 %v692_v19, %v692_v19  ;;  %v445_v26 = vadd.f32 %v1529_v34, %v444_v22 }
  0xea   :  { %v573_v27 = vadd.f32 %v1529_v34, %v572_v23  ;;  %v663_v28 = vmax.f32 %v453_v20, 0.0  ;;  %v695_v29 = vmax.f32 %v581_v21, 0.0  ;;  %v1288_v30 = vpop.f32.mrf.mxu0  ;;  %v1320_v31 = vpop.f32.mrf.mxu1 }
  0xeb   :  { %981 = vst.msk [vmem:[%s1854_s3 + $0x30] sm:$0xf] %vm968_vm1, %v1180_v24  ;;  %1013 = vst.msk [vmem:[%s1854_s3 + $0xb0] sm:$0xf] %vm968_vm1, %v1212_v25  ;;  %v661_v32 = vmax.f32 %v445_v26, 0.0  ;;  %v466_v35 = vadd.f32 %v1288_v30, %v1529_v34  ;;  %v594_v36 = vadd.f32 %v1320_v31, %v1529_v34 }
  0xec   :  { %v693_v33 = vmax.f32 %v573_v27, 0.0  ;;  %v1183_v37 = vpack.c.bf16 %v663_v28, %v663_v28  ;;  %v1215_v38 = vpack.c.bf16 %v695_v29, %v695_v29  ;;  %v457_v39 = vpop.f32.mrf.mxu0  ;;  %v585_v40 = vpop.f32.mrf.mxu1 }
  0xed   :  { %v1181_v41 = vpack.c.bf16 %v661_v32, %v661_v32  ;;  %v666_v43 = vmax.f32 %v466_v35, 0.0  ;;  %v698_v44 = vmax.f32 %v594_v36, 0.0  ;;  %v458_v45 = vadd.f32 %v1529_v34, %v457_v39 }
  0xee   :  { %v1213_v42 = vpack.c.bf16 %v693_v33, %v693_v33  ;;  %984 = vst.msk [vmem:[%s1854_s3 + $0x3c] sm:$0xf] %vm968_vm1, %v1183_v37  ;;  %1016 = vst.msk [vmem:[%s1854_s3 + $0xbc] sm:$0xf] %vm968_vm1, %v1215_v38  ;;  %v586_v46 = vadd.f32 %v1529_v34, %v585_v40  ;;  %v1289_v47 = vpop.f32.mrf.mxu0  ;;  %v1321_v48 = vpop.f32.mrf.mxu1 }
  0xef   :  { %982 = vst.msk [vmem:[%s1854_s3 + $0x34] sm:$0xf] %vm968_vm1, %v1181_v41  ;;  %v1186_v49 = vpack.c.bf16 %v666_v43, %v666_v43  ;;  %v1218_v50 = vpack.c.bf16 %v698_v44, %v698_v44  ;;  %v469_v51 = vadd.f32 %v1289_v47, %v1529_v34  ;;  %v597_v52 = vadd.f32 %v1321_v48, %v1529_v34 }
  0xf0   :  { %1014 = vst.msk [vmem:[%s1854_s3 + $0xb4] sm:$0xf] %vm968_vm1, %v1213_v42  ;;  %v664_v53 = vmax.f32 %v458_v45, 0.0  ;;  %v696_v54 = vmax.f32 %v586_v46, 0.0  ;;  %v460_v55 = vpop.f32.mrf.mxu0  ;;  %v588_v56 = vpop.f32.mrf.mxu1 }
  0xf1   :  { %987 = vst.msk [vmem:[%s1854_s3 + $0x48] sm:$0xf] %vm968_vm1, %v1186_v49  ;;  %1019 = vst.msk [vmem:[%s1854_s3 + $0xc8] sm:$0xf] %vm968_vm1, %v1218_v50  ;;  %v667_v57 = vmax.f32 %v469_v51, 0.0  ;;  %v699_v58 = vmax.f32 %v597_v52, 0.0  ;;  %v461_v59 = vadd.f32 %v1529_v34, %v460_v55  ;;  %v589_v60 = vadd.f32 %v1529_v34, %v588_v56 }
  0xf2   :  { %v1184_v61 = vpack.c.bf16 %v664_v53, %v664_v53  ;;  %v1216_v62 = vpack.c.bf16 %v696_v54, %v696_v54  ;;  %v1292_v63 = vpop.f32.mrf.mxu0  ;;  %v1324_v0 = vpop.f32.mrf.mxu1 }
  0xf3   :  { %v1187_v1 = vpack.c.bf16 %v667_v57, %v667_v57  ;;  %v1219_v2 = vpack.c.bf16 %v699_v58, %v699_v58  ;;  %v665_v3 = vmax.f32 %v461_v59, 0.0  ;;  %v697_v4 = vmax.f32 %v589_v60, 0.0 }
  0xf4   :  { %985 = vst.msk [vmem:[%s1854_s3 + $0x40] sm:$0xf] %vm968_vm1, %v1184_v61  ;;  %1017 = vst.msk [vmem:[%s1854_s3 + $0xc0] sm:$0xf] %vm968_vm1, %v1216_v62  ;;  %v482_v5 = vadd.f32 %v1292_v63, %v1529_v34  ;;  %v610_v6 = vadd.f32 %v1324_v0, %v1529_v34  ;;  %v473_v7 = vpop.f32.mrf.mxu0  ;;  %v601_v8 = vpop.f32.mrf.mxu1 }
  0xf5   :  { %988 = vst.msk [vmem:[%s1854_s3 + $0x4c] sm:$0xf] %vm968_vm1, %v1187_v1  ;;  %1020 = vst.msk [vmem:[%s1854_s3 + $0xcc] sm:$0xf] %vm968_vm1, %v1219_v2  ;;  %v1185_v9 = vpack.c.bf16 %v665_v3, %v665_v3  ;;  %v1217_v10 = vpack.c.bf16 %v697_v4, %v697_v4  ;;  %v474_v11 = vadd.f32 %v1529_v34, %v473_v7 }
  0xf6   :  { %v602_v12 = vadd.f32 %v1529_v34, %v601_v8  ;;  %v670_v13 = vmax.f32 %v482_v5, 0.0  ;;  %v702_v14 = vmax.f32 %v610_v6, 0.0  ;;  %v1293_v15 = vpop.f32.mrf.mxu0  ;;  %v1325_v16 = vpop.f32.mrf.mxu1 }
  0xf7   :  { %986 = vst.msk [vmem:[%s1854_s3 + $0x44] sm:$0xf] %vm968_vm1, %v1185_v9  ;;  %1018 = vst.msk [vmem:[%s1854_s3 + $0xc4] sm:$0xf] %vm968_vm1, %v1217_v10  ;;  %v668_v17 = vmax.f32 %v474_v11, 0.0  ;;  %v485_v19 = vadd.f32 %v1293_v15, %v1529_v34  ;;  %v613_v20 = vadd.f32 %v1325_v16, %v1529_v34 }
  0xf8   :  { %v700_v18 = vmax.f32 %v602_v12, 0.0  ;;  %v1190_v21 = vpack.c.bf16 %v670_v13, %v670_v13  ;;  %v1222_v22 = vpack.c.bf16 %v702_v14, %v702_v14  ;;  %v476_v23 = vpop.f32.mrf.mxu0  ;;  %v604_v24 = vpop.f32.mrf.mxu1 }
  0xf9   :  { %v1188_v25 = vpack.c.bf16 %v668_v17, %v668_v17  ;;  %v671_v27 = vmax.f32 %v485_v19, 0.0  ;;  %v703_v28 = vmax.f32 %v613_v20, 0.0  ;;  %v477_v29 = vadd.f32 %v1529_v34, %v476_v23 }
  0xfa   :  { %v1220_v26 = vpack.c.bf16 %v700_v18, %v700_v18  ;;  %991 = vst.msk [vmem:[%s1854_s3 + $0x58] sm:$0xf] %vm968_vm1, %v1190_v21  ;;  %1023 = vst.msk [vmem:[%s1854_s3 + $0xd8] sm:$0xf] %vm968_vm1, %v1222_v22  ;;  %v605_v30 = vadd.f32 %v1529_v34, %v604_v24  ;;  %v1296_v31 = vpop.f32.mrf.mxu0  ;;  %v1328_v32 = vpop.f32.mrf.mxu1 }
  0xfb   :  { %989 = vst.msk [vmem:[%s1854_s3 + $0x50] sm:$0xf] %vm968_vm1, %v1188_v25  ;;  %v1191_v33 = vpack.c.bf16 %v671_v27, %v671_v27  ;;  %v1223_v35 = vpack.c.bf16 %v703_v28, %v703_v28  ;;  %v498_v36 = vadd.f32 %v1296_v31, %v1529_v34  ;;  %v626_v37 = vadd.f32 %v1328_v32, %v1529_v34 }
  0xfc   :  { %1021 = vst.msk [vmem:[%s1854_s3 + $0xd0] sm:$0xf] %vm968_vm1, %v1220_v26  ;;  %v669_v38 = vmax.f32 %v477_v29, 0.0  ;;  %v701_v39 = vmax.f32 %v605_v30, 0.0  ;;  %v489_v40 = vpop.f32.mrf.mxu0  ;;  %v617_v41 = vpop.f32.mrf.mxu1 }
  0xfd   :  { %992 = vst.msk [vmem:[%s1854_s3 + $0x5c] sm:$0xf] %vm968_vm1, %v1191_v33  ;;  %1024 = vst.msk [vmem:[%s1854_s3 + $0xdc] sm:$0xf] %vm968_vm1, %v1223_v35  ;;  %v674_v42 = vmax.f32 %v498_v36, 0.0  ;;  %v706_v43 = vmax.f32 %v626_v37, 0.0  ;;  %v490_v44 = vadd.f32 %v1529_v34, %v489_v40  ;;  %v618_v45 = vadd.f32 %v1529_v34, %v617_v41 }
  0xfe   :  { %v1189_v46 = vpack.c.bf16 %v669_v38, %v669_v38  ;;  %v1221_v47 = vpack.c.bf16 %v701_v39, %v701_v39  ;;  %v1297_v48 = vpop.f32.mrf.mxu0  ;;  %v1329_v49 = vpop.f32.mrf.mxu1 }
  0xff   :  { %v1194_v50 = vpack.c.bf16 %v674_v42, %v674_v42  ;;  %v1226_v51 = vpack.c.bf16 %v706_v43, %v706_v43  ;;  %v672_v52 = vmax.f32 %v490_v44, 0.0  ;;  %v704_v53 = vmax.f32 %v618_v45, 0.0 }
 0x100   :  { %990 = vst.msk [vmem:[%s1854_s3 + $0x54] sm:$0xf] %vm968_vm1, %v1189_v46  ;;  %1022 = vst.msk [vmem:[%s1854_s3 + $0xd4] sm:$0xf] %vm968_vm1, %v1221_v47  ;;  %v501_v54 = vadd.f32 %v1297_v48, %v1529_v34  ;;  %v629_v55 = vadd.f32 %v1329_v49, %v1529_v34  ;;  %v492_v56 = vpop.f32.mrf.mxu0  ;;  %v620_v57 = vpop.f32.mrf.mxu1 }
 0x101   :  { %995 = vst.msk [vmem:[%s1854_s3 + $0x68] sm:$0xf] %vm968_vm1, %v1194_v50  ;;  %1027 = vst.msk [vmem:[%s1854_s3 + $0xe8] sm:$0xf] %vm968_vm1, %v1226_v51  ;;  %v1192_v58 = vpack.c.bf16 %v672_v52, %v672_v52  ;;  %v1224_v59 = vpack.c.bf16 %v704_v53, %v704_v53  ;;  %v493_v60 = vadd.f32 %v1529_v34, %v492_v56 }
 0x102   :  { %v621_v61 = vadd.f32 %v1529_v34, %v620_v57  ;;  %v675_v62 = vmax.f32 %v501_v54, 0.0  ;;  %v707_v63 = vmax.f32 %v629_v55, 0.0  ;;  %v1300_v0 = vpop.f32.mrf.mxu0  ;;  %v1332_v1 = vpop.f32.mrf.mxu1 }
 0x103   :  { %993 = vst.msk [vmem:[%s1854_s3 + $0x60] sm:$0xf] %vm968_vm1, %v1192_v58  ;;  %1025 = vst.msk [vmem:[%s1854_s3 + $0xe0] sm:$0xf] %vm968_vm1, %v1224_v59  ;;  %v673_v2 = vmax.f32 %v493_v60, 0.0  ;;  %v514_v4 = vadd.f32 %v1300_v0, %v1529_v34  ;;  %v642_v5 = vadd.f32 %v1332_v1, %v1529_v34 }
 0x104   :  { %v705_v3 = vmax.f32 %v621_v61, 0.0  ;;  %v1195_v6 = vpack.c.bf16 %v675_v62, %v675_v62  ;;  %v1227_v7 = vpack.c.bf16 %v707_v63, %v707_v63  ;;  %v505_v8 = vpop.f32.mrf.mxu0  ;;  %v633_v9 = vpop.f32.mrf.mxu1 }
 0x105   :  { %v1193_v10 = vpack.c.bf16 %v673_v2, %v673_v2  ;;  %v678_v12 = vmax.f32 %v514_v4, 0.0  ;;  %v710_v13 = vmax.f32 %v642_v5, 0.0  ;;  %v506_v14 = vadd.f32 %v1529_v34, %v505_v8 }
 0x106   :  { %v1225_v11 = vpack.c.bf16 %v705_v3, %v705_v3  ;;  %996 = vst.msk [vmem:[%s1854_s3 + $0x6c] sm:$0xf] %vm968_vm1, %v1195_v6  ;;  %1028 = vst.msk [vmem:[%s1854_s3 + $0xec] sm:$0xf] %vm968_vm1, %v1227_v7  ;;  %v634_v15 = vadd.f32 %v1529_v34, %v633_v9  ;;  %v1301_v16 = vpop.f32.mrf.mxu0  ;;  %v1333_v17 = vpop.f32.mrf.mxu1 }
 0x107   :  { %994 = vst.msk [vmem:[%s1854_s3 + $0x64] sm:$0xf] %vm968_vm1, %v1193_v10  ;;  %v1198_v18 = vpack.c.bf16 %v678_v12, %v678_v12  ;;  %v1230_v19 = vpack.c.bf16 %v710_v13, %v710_v13  ;;  %v517_v20 = vadd.f32 %v1301_v16, %v1529_v34  ;;  %v645_v21 = vadd.f32 %v1333_v17, %v1529_v34 }
 0x108   :  { %1026 = vst.msk [vmem:[%s1854_s3 + $0xe4] sm:$0xf] %vm968_vm1, %v1225_v11  ;;  %v676_v22 = vmax.f32 %v506_v14, 0.0  ;;  %v708_v23 = vmax.f32 %v634_v15, 0.0  ;;  %v508_v24 = vpop.f32.mrf.mxu0  ;;  %v636_v25 = vpop.f32.mrf.mxu1 }
 0x109   :  { %999 = vst.msk [vmem:[%s1854_s3 + $0x78] sm:$0xf] %vm968_vm1, %v1198_v18  ;;  %1031 = vst.msk [vmem:[%s1854_s3 + $0xf8] sm:$0xf] %vm968_vm1, %v1230_v19  ;;  %v679_v26 = vmax.f32 %v517_v20, 0.0  ;;  %v711_v27 = vmax.f32 %v645_v21, 0.0  ;;  %v509_v28 = vadd.f32 %v1529_v34, %v508_v24  ;;  %v637_v29 = vadd.f32 %v1529_v34, %v636_v25 }
 0x10a   :  { %v1196_v30 = vpack.c.bf16 %v676_v22, %v676_v22  ;;  %v1228_v31 = vpack.c.bf16 %v708_v23, %v708_v23 }
 0x10b   :  { %v1199_v32 = vpack.c.bf16 %v679_v26, %v679_v26  ;;  %v1231_v33 = vpack.c.bf16 %v711_v27, %v711_v27  ;;  %v677_v35 = vmax.f32 %v509_v28, 0.0  ;;  %v709_v36 = vmax.f32 %v637_v29, 0.0 }
 0x10c   :  { %997 = vst.msk [vmem:[%s1854_s3 + $0x70] sm:$0xf] %vm968_vm1, %v1196_v30  ;;  %1029 = vst.msk [vmem:[%s1854_s3 + $0xf0] sm:$0xf] %vm968_vm1, %v1228_v31 }
 0x10d   :  { %1000 = vst.msk [vmem:[%s1854_s3 + $0x7c] sm:$0xf] %vm968_vm1, %v1199_v32  ;;  %1032 = vst.msk [vmem:[%s1854_s3 + $0xfc] sm:$0xf] %vm968_vm1, %v1231_v33  ;;  %v1197_v34 = vpack.c.bf16 %v677_v35, %v677_v35  ;;  %v1229_v37 = vpack.c.bf16 %v709_v36, %v709_v36 }
 0x10f   :  { %998 = vst.msk [vmem:[%s1854_s3 + $0x74] sm:$0xf] %vm968_vm1, %v1197_v34  ;;  %1030 = vst.msk [vmem:[%s1854_s3 + $0xf4] sm:$0xf] %vm968_vm1, %v1229_v37 }

// kernel: forward.12
= control target key start
LH: loop header
LB: loop body
LE: loop exit
PB: predicated region body
PF: predicated region fallthrough
CT: control target
= control target key end

     0   :  { %vm257_vm0 = vcmask 130048   ;;  %v710_v33 = vlaneseq  ;;  %v1433_v37 = vmov 0   ;;  %vm1035_vm3 = vcmask 322560   ;;  %s2049_s1 = inlined_call_operand.vmem [shape: bf16[16,40], index: 1, kind: input, shape index: {}]   ;;  %s2050_s0 = inlined_call_operand.vmem [shape: bf16[512,16], index: 0, kind: input, shape index: {}]   ;;  %s2051_s3 = inlined_call_operand.vmem [shape: f32[1,40], index: 3, kind: input, shape index: {}]   ;;  %s2052_s2 = inlined_call_operand.vmem [shape: f32[1,40], index: 2, kind: input, shape index: {}]   ;;  %s2053_s4 = inlined_call_operand.vmem [shape: bf16[512,40], index: 4, kind: output, shape index: {}]  }
   0x1   :  { %v1400_v0 = vld [vmem:[%s2049_s1] sm:$0xff]   ;;  %v1403_v3 = vld [vmem:[%s2050_s0 + $0x8] sm:$0xff]   ;;  %v1405_v5 = vld [vmem:[%s2050_s0 + $0x10] sm:$0xff]  }
   0x2   :  { %v1401_v1 = vld [vmem:[%s2050_s0] sm:$0xff]   ;;  %1331 = vmatprep.subr.bf16.mxu0 %v1400_v0  ;;  %1397 = vmatprep.subr.bf16.mxu1 %v1400_v0  ;;  %v1404_v4 = vld [vmem:[%s2050_s0 + $0x88] sm:$0xff]   ;;  %v1406_v6 = vld [vmem:[%s2050_s0 + $0x90] sm:$0xff]   ;;  %v711_v35 = vshrl.u32 %v710_v33, 7 }
   0x3   :  { %v1402_v2 = vld [vmem:[%s2050_s0 + $0x80] sm:$0xff]   ;;  %1332 = vmatpush3.bf16.msra.mxu0 %v1400_v0  ;;  %1398 = vmatpush3.bf16.msra.mxu1 %v1400_v0  ;;  %v1407_v7 = vld [vmem:[%s2050_s0 + $0x18] sm:$0xff]   ;;  %v1411_v11 = vld [vmem:[%s2050_s0 + $0x28] sm:$0xff]  }
   0x4   :  { %1333 = vmatprep.mubr.msk.bf16.mxu0 %vm257_vm0, %v1401_v1  ;;  %1365 = vmatprep.mubr.msk.bf16.mxu1 %vm257_vm0, %v1402_v2  ;;  %v1408_v8 = vld [vmem:[%s2050_s0 + $0x98] sm:$0xff]   ;;  %v1409_v9 = vld [vmem:[%s2050_s0 + $0x20] sm:$0xff]   ;;  %v1412_v12 = vld [vmem:[%s2050_s0 + $0xa8] sm:$0xff]   ;;  %v712_v36 = vsub.s32 0, %v711_v35 }
   0x5   :  { %v1410_v10 = vld [vmem:[%s2050_s0 + $0xa0] sm:$0xff]   ;;  %v1413_v13 = vld [vmem:[%s2050_s0 + $0x30] sm:$0xff]   ;;  %v1415_v15 = vld [vmem:[%s2050_s0 + $0x38] sm:$0xff]  }
   0x6   :  { %1334 = vmatmul.mubr.msk.bf16.vlgmr.msra.gmra.mxu0 %vm257_vm0, %v1403_v3  ;;  %1366 = vmatmul.mubr.msk.bf16.vlgmr.msra.gmra.mxu1 %vm257_vm0, %v1404_v4  ;;  %v1414_v14 = vld [vmem:[%s2050_s0 + $0xb0] sm:$0xff]   ;;  %v1416_v16 = vld [vmem:[%s2050_s0 + $0xb8] sm:$0xff]   ;;  %v1417_v17 = vld [vmem:[%s2050_s0 + $0x40] sm:$0xff]  }
   0x7   :  { %1337 = vmatprep.mubr.msk.bf16.mxu0 %vm257_vm0, %v1405_v5  ;;  %1369 = vmatprep.mubr.msk.bf16.mxu1 %vm257_vm0, %v1406_v6  ;;  %v1418_v18 = vld [vmem:[%s2050_s0 + $0xc0] sm:$0xff]   ;;  %v1419_v19 = vld [vmem:[%s2050_s0 + $0x48] sm:$0xff]   ;;  %v1421_v21 = vld [vmem:[%s2050_s0 + $0x50] sm:$0xff]  }
   0x8   :  { %v1420_v20 = vld [vmem:[%s2050_s0 + $0xc8] sm:$0xff]   ;;  %v1422_v22 = vld [vmem:[%s2050_s0 + $0xd0] sm:$0xff]   ;;  %v1423_v23 = vld [vmem:[%s2050_s0 + $0x58] sm:$0xff]  }
   0x9   :  { %v1424_v24 = vld [vmem:[%s2050_s0 + $0xd8] sm:$0xff]   ;;  %v1425_v25 = vld [vmem:[%s2050_s0 + $0x60] sm:$0xff]   ;;  %v1427_v27 = vld [vmem:[%s2050_s0 + $0x68] sm:$0xff]  }
   0xa   :  { %v1426_v26 = vld [vmem:[%s2050_s0 + $0xe0] sm:$0xff]   ;;  %v1428_v28 = vld [vmem:[%s2050_s0 + $0xe8] sm:$0xff]   ;;  %v1429_v29 = vld [vmem:[%s2050_s0 + $0x70] sm:$0xff]  }
   0xb   :  { %v1430_v30 = vld [vmem:[%s2050_s0 + $0xf0] sm:$0xff]   ;;  %v1431_v31 = vld [vmem:[%s2050_s0 + $0x78] sm:$0xff]   ;;  %v643_v34 = vld [vmem:[%s2051_s3] sm:$0x1] }
   0xc   :  { %v1432_v32 = vld [vmem:[%s2050_s0 + $0xf8] sm:$0xff]   ;;  %vm644_vm1 = vcmp.gt.f32.partialorder %v643_v34, 0.0  ;;  %v1596_v39 = vld [vmem:[%s2052_s2] ss:$0 sm:$0xff] }
   0xd   :  { %v709_v38 = vsel %vm644_vm1, 1, %v1433_v37 }
   0xe   :  { %1338 = vmatmul.mubr.msk.bf16.gmra.mxu0 %vm257_vm0, %v1407_v7  ;;  %1370 = vmatmul.mubr.msk.bf16.gmra.mxu1 %vm257_vm0, %v1408_v8  ;;  %v1598_v40 = vrot.slane %v709_v38, %v712_v36 }
   0xf   :  { %1341 = vmatprep.mubr.msk.bf16.mxu0 %vm257_vm0, %v1409_v9  ;;  %1373 = vmatprep.mubr.msk.bf16.mxu1 %vm257_vm0, %v1410_v10 }
  0x10   :  { %vm714_vm2 = vcmp.eq.s32.totalorder %v1598_v40, 1 }
  0x16   :  { %1342 = vmatmul.mubr.msk.bf16.gmra.mxu0 %vm257_vm0, %v1411_v11  ;;  %1374 = vmatmul.mubr.msk.bf16.gmra.mxu1 %vm257_vm0, %v1412_v12 }
  0x17   :  { %1345 = vmatprep.mubr.msk.bf16.mxu0 %vm257_vm0, %v1413_v13  ;;  %1377 = vmatprep.mubr.msk.bf16.mxu1 %vm257_vm0, %v1414_v14 }
  0x1e   :  { %1346 = vmatmul.mubr.msk.bf16.gmra.mxu0 %vm257_vm0, %v1415_v15  ;;  %1378 = vmatmul.mubr.msk.bf16.gmra.mxu1 %vm257_vm0, %v1416_v16 }
  0x1f   :  { %1349 = vmatprep.mubr.msk.bf16.mxu0 %vm257_vm0, %v1417_v17  ;;  %1381 = vmatprep.mubr.msk.bf16.mxu1 %vm257_vm0, %v1418_v18 }
  0x26   :  { %1350 = vmatmul.mubr.msk.bf16.gmra.mxu0 %vm257_vm0, %v1419_v19  ;;  %1382 = vmatmul.mubr.msk.bf16.gmra.mxu1 %vm257_vm0, %v1420_v20 }
  0x27   :  { %1353 = vmatprep.mubr.msk.bf16.mxu0 %vm257_vm0, %v1421_v21  ;;  %1385 = vmatprep.mubr.msk.bf16.mxu1 %vm257_vm0, %v1422_v22 }
  0x2e   :  { %1354 = vmatmul.mubr.msk.bf16.gmra.mxu0 %vm257_vm0, %v1423_v23  ;;  %1386 = vmatmul.mubr.msk.bf16.gmra.mxu1 %vm257_vm0, %v1424_v24 }
  0x2f   :  { %1357 = vmatprep.mubr.msk.bf16.mxu0 %vm257_vm0, %v1425_v25  ;;  %1389 = vmatprep.mubr.msk.bf16.mxu1 %vm257_vm0, %v1426_v26 }
  0x36   :  { %1358 = vmatmul.mubr.msk.bf16.gmra.mxu0 %vm257_vm0, %v1427_v27  ;;  %1390 = vmatmul.mubr.msk.bf16.gmra.mxu1 %vm257_vm0, %v1428_v28 }
  0x37   :  { %1361 = vmatprep.mubr.msk.bf16.mxu0 %vm257_vm0, %v1429_v29  ;;  %1393 = vmatprep.mubr.msk.bf16.mxu1 %vm257_vm0, %v1430_v30 }
  0x3e   :  { %1362 = vmatmul.mubr.msk.bf16.gmra.mxu0 %vm257_vm0, %v1431_v31  ;;  %1394 = vmatmul.mubr.msk.bf16.gmra.mxu1 %vm257_vm0, %v1432_v32 }
  0xc6   :  { %v1335_v41 = vpop.f32.mrf.mxu0  ;;  %v1367_v42 = vpop.f32.mrf.mxu1 }
  0xc7   :  { %v397_v43 = vadd.f32 %v1335_v41, %v1596_v39  ;;  %v525_v44 = vadd.f32 %v1367_v42, %v1596_v39 }
  0xc8   :  { %v388_v45 = vpop.f32.mrf.mxu0  ;;  %v516_v46 = vpop.f32.mrf.mxu1 }
  0xc9   :  { %v647_v47 = vmax.f32 %v397_v43, 0.0  ;;  %v679_v48 = vmax.f32 %v525_v44, 0.0  ;;  %v389_v49 = vadd.f32 %v1596_v39, %v388_v45  ;;  %v517_v50 = vadd.f32 %v1596_v39, %v516_v46 }
  0xca   :  { %v1336_v51 = vpop.f32.mrf.mxu0  ;;  %v1368_v52 = vpop.f32.mrf.mxu1 }
  0xcb   :  { %v717_v53 = vsel %vm714_vm2, %v647_v47, %v397_v43  ;;  %v749_v54 = vsel %vm714_vm2, %v679_v48, %v525_v44  ;;  %v645_v55 = vmax.f32 %v389_v49, 0.0  ;;  %v677_v56 = vmax.f32 %v517_v50, 0.0 }
  0xcc   :  { %v1236_v57 = vpack.c.bf16 %v717_v53, %v717_v53  ;;  %v1268_v58 = vpack.c.bf16 %v749_v54, %v749_v54  ;;  %v400_v59 = vadd.f32 %v1336_v51, %v1596_v39  ;;  %v528_v60 = vadd.f32 %v1368_v52, %v1596_v39  ;;  %v391_v61 = vpop.f32.mrf.mxu0  ;;  %v519_v62 = vpop.f32.mrf.mxu1 }
  0xcd   :  { %v715_v63 = vsel %vm714_vm2, %v645_v55, %v389_v49  ;;  %v747_v0 = vsel %vm714_vm2, %v677_v56, %v517_v50  ;;  %v392_v1 = vadd.f32 %v1596_v39, %v391_v61  ;;  %v520_v2 = vadd.f32 %v1596_v39, %v519_v62 }
  0xce   :  { %1038 = vst.msk [vmem:[%s2053_s4 + $0x8] sm:$0xf] %vm1035_vm3, %v1236_v57  ;;  %1070 = vst.msk [vmem:[%s2053_s4 + $0x88] sm:$0xf] %vm1035_vm3, %v1268_v58  ;;  %v1234_v3 = vpack.c.bf16 %v715_v63, %v715_v63  ;;  %v1266_v4 = vpack.c.bf16 %v747_v0, %v747_v0  ;;  %v648_v5 = vmax.f32 %v400_v59, 0.0  ;;  %v680_v6 = vmax.f32 %v528_v60, 0.0  ;;  %v1339_v7 = vpop.f32.mrf.mxu0  ;;  %v1371_v8 = vpop.f32.mrf.mxu1 }
  0xcf   :  { %v646_v9 = vmax.f32 %v392_v1, 0.0  ;;  %v678_v10 = vmax.f32 %v520_v2, 0.0  ;;  %v413_v11 = vadd.f32 %v1339_v7, %v1596_v39  ;;  %v541_v12 = vadd.f32 %v1371_v8, %v1596_v39 }
  0xd0   :  { %1036 = vst.msk [vmem:[%s2053_s4] sm:$0xf] %vm1035_vm3, %v1234_v3  ;;  %1068 = vst.msk [vmem:[%s2053_s4 + $0x80] sm:$0xf] %vm1035_vm3, %v1266_v4  ;;  %v718_v13 = vsel %vm714_vm2, %v648_v5, %v400_v59  ;;  %v750_v14 = vsel %vm714_vm2, %v680_v6, %v528_v60  ;;  %v404_v15 = vpop.f32.mrf.mxu0  ;;  %v532_v16 = vpop.f32.mrf.mxu1 }
  0xd1   :  { %v1237_v17 = vpack.c.bf16 %v718_v13, %v718_v13  ;;  %v1269_v18 = vpack.c.bf16 %v750_v14, %v750_v14  ;;  %v716_v19 = vsel %vm714_vm2, %v646_v9, %v392_v1  ;;  %v748_v20 = vsel %vm714_vm2, %v678_v10, %v520_v2 }
  0xd2   :  { %v1235_v21 = vpack.c.bf16 %v716_v19, %v716_v19  ;;  %v1267_v22 = vpack.c.bf16 %v748_v20, %v748_v20  ;;  %v651_v23 = vmax.f32 %v413_v11, 0.0  ;;  %v683_v24 = vmax.f32 %v541_v12, 0.0  ;;  %v1340_v25 = vpop.f32.mrf.mxu0  ;;  %v1372_v26 = vpop.f32.mrf.mxu1 }
  0xd3   :  { %1039 = vst.msk [vmem:[%s2053_s4 + $0xc] sm:$0xf] %vm1035_vm3, %v1237_v17  ;;  %1071 = vst.msk [vmem:[%s2053_s4 + $0x8c] sm:$0xf] %vm1035_vm3, %v1269_v18  ;;  %v405_v27 = vadd.f32 %v1596_v39, %v404_v15  ;;  %v533_v28 = vadd.f32 %v1596_v39, %v532_v16  ;;  %v416_v29 = vadd.f32 %v1340_v25, %v1596_v39 }
  0xd4   :  { %v544_v30 = vadd.f32 %v1372_v26, %v1596_v39  ;;  %1037 = vst.msk [vmem:[%s2053_s4 + $0x4] sm:$0xf] %vm1035_vm3, %v1235_v21  ;;  %1069 = vst.msk [vmem:[%s2053_s4 + $0x84] sm:$0xf] %vm1035_vm3, %v1267_v22  ;;  %v721_v31 = vsel %vm714_vm2, %v651_v23, %v413_v11  ;;  %v753_v32 = vsel %vm714_vm2, %v683_v24, %v541_v12  ;;  %v407_v33 = vpop.f32.mrf.mxu0  ;;  %v535_v34 = vpop.f32.mrf.mxu1 }
  0xd5   :  { %v1240_v35 = vpack.c.bf16 %v721_v31, %v721_v31  ;;  %v1272_v36 = vpack.c.bf16 %v753_v32, %v753_v32  ;;  %v649_v37 = vmax.f32 %v405_v27, 0.0  ;;  %v681_v38 = vmax.f32 %v533_v28, 0.0 }
  0xd6   :  { %v652_v41 = vmax.f32 %v416_v29, 0.0  ;;  %v684_v42 = vmax.f32 %v544_v30, 0.0  ;;  %v408_v43 = vadd.f32 %v1596_v39, %v407_v33  ;;  %v536_v44 = vadd.f32 %v1596_v39, %v535_v34  ;;  %v1343_v45 = vpop.f32.mrf.mxu0  ;;  %v1375_v46 = vpop.f32.mrf.mxu1 }
  0xd7   :  { %1042 = vst.msk [vmem:[%s2053_s4 + $0x18] sm:$0xf] %vm1035_vm3, %v1240_v35  ;;  %1074 = vst.msk [vmem:[%s2053_s4 + $0x98] sm:$0xf] %vm1035_vm3, %v1272_v36  ;;  %v719_v47 = vsel %vm714_vm2, %v649_v37, %v405_v27  ;;  %v751_v48 = vsel %vm714_vm2, %v681_v38, %v533_v28  ;;  %v429_v49 = vadd.f32 %v1343_v45, %v1596_v39 }
  0xd8   :  { %v557_v50 = vadd.f32 %v1375_v46, %v1596_v39  ;;  %v1238_v51 = vpack.c.bf16 %v719_v47, %v719_v47  ;;  %v1270_v52 = vpack.c.bf16 %v751_v48, %v751_v48  ;;  %v722_v53 = vsel %vm714_vm2, %v652_v41, %v416_v29  ;;  %v420_v55 = vpop.f32.mrf.mxu0  ;;  %v548_v56 = vpop.f32.mrf.mxu1 }
  0xd9   :  { %v754_v54 = vsel %vm714_vm2, %v684_v42, %v544_v30  ;;  %v1241_v57 = vpack.c.bf16 %v722_v53, %v722_v53  ;;  %v650_v59 = vmax.f32 %v408_v43, 0.0  ;;  %v682_v60 = vmax.f32 %v536_v44, 0.0 }
  0xda   :  { %v1273_v58 = vpack.c.bf16 %v754_v54, %v754_v54  ;;  %1040 = vst.msk [vmem:[%s2053_s4 + $0x10] sm:$0xf] %vm1035_vm3, %v1238_v51  ;;  %1072 = vst.msk [vmem:[%s2053_s4 + $0x90] sm:$0xf] %vm1035_vm3, %v1270_v52  ;;  %v655_v61 = vmax.f32 %v429_v49, 0.0  ;;  %v687_v62 = vmax.f32 %v557_v50, 0.0  ;;  %v421_v63 = vadd.f32 %v1596_v39, %v420_v55  ;;  %v1344_v1 = vpop.f32.mrf.mxu0  ;;  %v1376_v2 = vpop.f32.mrf.mxu1 }
  0xdb   :  { %v549_v0 = vadd.f32 %v1596_v39, %v548_v56  ;;  %1043 = vst.msk [vmem:[%s2053_s4 + $0x1c] sm:$0xf] %vm1035_vm3, %v1241_v57  ;;  %v720_v3 = vsel %vm714_vm2, %v650_v59, %v408_v43  ;;  %v752_v4 = vsel %vm714_vm2, %v682_v60, %v536_v44  ;;  %v432_v5 = vadd.f32 %v1344_v1, %v1596_v39 }
  0xdc   :  { %1075 = vst.msk [vmem:[%s2053_s4 + $0x9c] sm:$0xf] %vm1035_vm3, %v1273_v58  ;;  %v560_v6 = vadd.f32 %v1376_v2, %v1596_v39  ;;  %v1239_v7 = vpack.c.bf16 %v720_v3, %v720_v3  ;;  %v1271_v8 = vpack.c.bf16 %v752_v4, %v752_v4  ;;  %v725_v9 = vsel %vm714_vm2, %v655_v61, %v429_v49  ;;  %v423_v11 = vpop.f32.mrf.mxu0  ;;  %v551_v12 = vpop.f32.mrf.mxu1 }
  0xdd   :  { %v757_v10 = vsel %vm714_vm2, %v687_v62, %v557_v50  ;;  %v1244_v13 = vpack.c.bf16 %v725_v9, %v725_v9  ;;  %v653_v15 = vmax.f32 %v421_v63, 0.0  ;;  %v685_v16 = vmax.f32 %v549_v0, 0.0 }
  0xde   :  { %v1276_v14 = vpack.c.bf16 %v757_v10, %v757_v10  ;;  %1041 = vst.msk [vmem:[%s2053_s4 + $0x14] sm:$0xf] %vm1035_vm3, %v1239_v7  ;;  %1073 = vst.msk [vmem:[%s2053_s4 + $0x94] sm:$0xf] %vm1035_vm3, %v1271_v8  ;;  %v656_v17 = vmax.f32 %v432_v5, 0.0  ;;  %v688_v18 = vmax.f32 %v560_v6, 0.0  ;;  %v424_v19 = vadd.f32 %v1596_v39, %v423_v11  ;;  %v1347_v21 = vpop.f32.mrf.mxu0  ;;  %v1379_v22 = vpop.f32.mrf.mxu1 }
  0xdf   :  { %v552_v20 = vadd.f32 %v1596_v39, %v551_v12  ;;  %1046 = vst.msk [vmem:[%s2053_s4 + $0x28] sm:$0xf] %vm1035_vm3, %v1244_v13  ;;  %v723_v23 = vsel %vm714_vm2, %v653_v15, %v421_v63  ;;  %v755_v24 = vsel %vm714_vm2, %v685_v16, %v549_v0  ;;  %v445_v25 = vadd.f32 %v1347_v21, %v1596_v39 }
  0xe0   :  { %1078 = vst.msk [vmem:[%s2053_s4 + $0xa8] sm:$0xf] %vm1035_vm3, %v1276_v14  ;;  %v573_v26 = vadd.f32 %v1379_v22, %v1596_v39  ;;  %v1242_v27 = vpack.c.bf16 %v723_v23, %v723_v23  ;;  %v1274_v28 = vpack.c.bf16 %v755_v24, %v755_v24  ;;  %v726_v29 = vsel %vm714_vm2, %v656_v17, %v432_v5  ;;  %v436_v31 = vpop.f32.mrf.mxu0  ;;  %v564_v32 = vpop.f32.mrf.mxu1 }
  0xe1   :  { %v758_v30 = vsel %vm714_vm2, %v688_v18, %v560_v6  ;;  %v1245_v33 = vpack.c.bf16 %v726_v29, %v726_v29  ;;  %v654_v35 = vmax.f32 %v424_v19, 0.0  ;;  %v686_v36 = vmax.f32 %v552_v20, 0.0 }
  0xe2   :  { %v1277_v34 = vpack.c.bf16 %v758_v30, %v758_v30  ;;  %1044 = vst.msk [vmem:[%s2053_s4 + $0x20] sm:$0xf] %vm1035_vm3, %v1242_v27  ;;  %1076 = vst.msk [vmem:[%s2053_s4 + $0xa0] sm:$0xf] %vm1035_vm3, %v1274_v28  ;;  %v659_v37 = vmax.f32 %v445_v25, 0.0  ;;  %v691_v38 = vmax.f32 %v573_v26, 0.0  ;;  %v437_v41 = vadd.f32 %v1596_v39, %v436_v31  ;;  %v1348_v43 = vpop.f32.mrf.mxu0  ;;  %v1380_v44 = vpop.f32.mrf.mxu1 }
  0xe3   :  { %v565_v42 = vadd.f32 %v1596_v39, %v564_v32  ;;  %1047 = vst.msk [vmem:[%s2053_s4 + $0x2c] sm:$0xf] %vm1035_vm3, %v1245_v33  ;;  %v724_v45 = vsel %vm714_vm2, %v654_v35, %v424_v19  ;;  %v756_v46 = vsel %vm714_vm2, %v686_v36, %v552_v20  ;;  %v448_v47 = vadd.f32 %v1348_v43, %v1596_v39 }
  0xe4   :  { %1079 = vst.msk [vmem:[%s2053_s4 + $0xac] sm:$0xf] %vm1035_vm3, %v1277_v34  ;;  %v576_v48 = vadd.f32 %v1380_v44, %v1596_v39  ;;  %v1243_v49 = vpack.c.bf16 %v724_v45, %v724_v45  ;;  %v1275_v50 = vpack.c.bf16 %v756_v46, %v756_v46  ;;  %v729_v51 = vsel %vm714_vm2, %v659_v37, %v445_v25  ;;  %v439_v53 = vpop.f32.mrf.mxu0  ;;  %v567_v54 = vpop.f32.mrf.mxu1 }
  0xe5   :  { %v761_v52 = vsel %vm714_vm2, %v691_v38, %v573_v26  ;;  %v1248_v55 = vpack.c.bf16 %v729_v51, %v729_v51  ;;  %v657_v57 = vmax.f32 %v437_v41, 0.0  ;;  %v689_v58 = vmax.f32 %v565_v42, 0.0 }
  0xe6   :  { %v1280_v56 = vpack.c.bf16 %v761_v52, %v761_v52  ;;  %1045 = vst.msk [vmem:[%s2053_s4 + $0x24] sm:$0xf] %vm1035_vm3, %v1243_v49  ;;  %1077 = vst.msk [vmem:[%s2053_s4 + $0xa4] sm:$0xf] %vm1035_vm3, %v1275_v50  ;;  %v660_v59 = vmax.f32 %v448_v47, 0.0  ;;  %v692_v60 = vmax.f32 %v576_v48, 0.0  ;;  %v440_v61 = vadd.f32 %v1596_v39, %v439_v53  ;;  %v1351_v63 = vpop.f32.mrf.mxu0  ;;  %v1383_v0 = vpop.f32.mrf.mxu1 }
  0xe7   :  { %v568_v62 = vadd.f32 %v1596_v39, %v567_v54  ;;  %1050 = vst.msk [vmem:[%s2053_s4 + $0x38] sm:$0xf] %vm1035_vm3, %v1248_v55  ;;  %v727_v1 = vsel %vm714_vm2, %v657_v57, %v437_v41  ;;  %v759_v2 = vsel %vm714_vm2, %v689_v58, %v565_v42  ;;  %v461_v3 = vadd.f32 %v1351_v63, %v1596_v39 }
  0xe8   :  { %1082 = vst.msk [vmem:[%s2053_s4 + $0xb8] sm:$0xf] %vm1035_vm3, %v1280_v56  ;;  %v589_v4 = vadd.f32 %v1383_v0, %v1596_v39  ;;  %v1246_v5 = vpack.c.bf16 %v727_v1, %v727_v1  ;;  %v1278_v6 = vpack.c.bf16 %v759_v2, %v759_v2  ;;  %v730_v7 = vsel %vm714_vm2, %v660_v59, %v448_v47  ;;  %v452_v9 = vpop.f32.mrf.mxu0  ;;  %v580_v10 = vpop.f32.mrf.mxu1 }
  0xe9   :  { %v762_v8 = vsel %vm714_vm2, %v692_v60, %v576_v48  ;;  %v1249_v11 = vpack.c.bf16 %v730_v7, %v730_v7  ;;  %v658_v13 = vmax.f32 %v440_v61, 0.0  ;;  %v690_v14 = vmax.f32 %v568_v62, 0.0 }
  0xea   :  { %v1281_v12 = vpack.c.bf16 %v762_v8, %v762_v8  ;;  %1048 = vst.msk [vmem:[%s2053_s4 + $0x30] sm:$0xf] %vm1035_vm3, %v1246_v5  ;;  %1080 = vst.msk [vmem:[%s2053_s4 + $0xb0] sm:$0xf] %vm1035_vm3, %v1278_v6  ;;  %v663_v15 = vmax.f32 %v461_v3, 0.0  ;;  %v695_v16 = vmax.f32 %v589_v4, 0.0  ;;  %v453_v17 = vadd.f32 %v1596_v39, %v452_v9  ;;  %v1352_v19 = vpop.f32.mrf.mxu0  ;;  %v1384_v20 = vpop.f32.mrf.mxu1 }
  0xeb   :  { %v581_v18 = vadd.f32 %v1596_v39, %v580_v10  ;;  %1051 = vst.msk [vmem:[%s2053_s4 + $0x3c] sm:$0xf] %vm1035_vm3, %v1249_v11  ;;  %v728_v21 = vsel %vm714_vm2, %v658_v13, %v440_v61  ;;  %v760_v22 = vsel %vm714_vm2, %v690_v14, %v568_v62  ;;  %v464_v23 = vadd.f32 %v1352_v19, %v1596_v39 }
  0xec   :  { %1083 = vst.msk [vmem:[%s2053_s4 + $0xbc] sm:$0xf] %vm1035_vm3, %v1281_v12  ;;  %v592_v24 = vadd.f32 %v1384_v20, %v1596_v39  ;;  %v1247_v25 = vpack.c.bf16 %v728_v21, %v728_v21  ;;  %v1279_v26 = vpack.c.bf16 %v760_v22, %v760_v22  ;;  %v733_v27 = vsel %vm714_vm2, %v663_v15, %v461_v3  ;;  %v455_v29 = vpop.f32.mrf.mxu0  ;;  %v583_v30 = vpop.f32.mrf.mxu1 }
  0xed   :  { %v765_v28 = vsel %vm714_vm2, %v695_v16, %v589_v4  ;;  %v1252_v31 = vpack.c.bf16 %v733_v27, %v733_v27  ;;  %v661_v33 = vmax.f32 %v453_v17, 0.0  ;;  %v693_v34 = vmax.f32 %v581_v18, 0.0 }
  0xee   :  { %v1284_v32 = vpack.c.bf16 %v765_v28, %v765_v28  ;;  %1049 = vst.msk [vmem:[%s2053_s4 + $0x34] sm:$0xf] %vm1035_vm3, %v1247_v25  ;;  %1081 = vst.msk [vmem:[%s2053_s4 + $0xb4] sm:$0xf] %vm1035_vm3, %v1279_v26  ;;  %v664_v35 = vmax.f32 %v464_v23, 0.0  ;;  %v696_v36 = vmax.f32 %v592_v24, 0.0  ;;  %v456_v37 = vadd.f32 %v1596_v39, %v455_v29  ;;  %v1355_v41 = vpop.f32.mrf.mxu0  ;;  %v1387_v42 = vpop.f32.mrf.mxu1 }
  0xef   :  { %v584_v38 = vadd.f32 %v1596_v39, %v583_v30  ;;  %1054 = vst.msk [vmem:[%s2053_s4 + $0x48] sm:$0xf] %vm1035_vm3, %v1252_v31  ;;  %v731_v43 = vsel %vm714_vm2, %v661_v33, %v453_v17  ;;  %v763_v44 = vsel %vm714_vm2, %v693_v34, %v581_v18  ;;  %v477_v45 = vadd.f32 %v1355_v41, %v1596_v39 }
  0xf0   :  { %1086 = vst.msk [vmem:[%s2053_s4 + $0xc8] sm:$0xf] %vm1035_vm3, %v1284_v32  ;;  %v605_v46 = vadd.f32 %v1387_v42, %v1596_v39  ;;  %v1250_v47 = vpack.c.bf16 %v731_v43, %v731_v43  ;;  %v1282_v48 = vpack.c.bf16 %v763_v44, %v763_v44  ;;  %v734_v49 = vsel %vm714_vm2, %v664_v35, %v464_v23  ;;  %v468_v51 = vpop.f32.mrf.mxu0  ;;  %v596_v52 = vpop.f32.mrf.mxu1 }
  0xf1   :  { %v766_v50 = vsel %vm714_vm2, %v696_v36, %v592_v24  ;;  %v1253_v53 = vpack.c.bf16 %v734_v49, %v734_v49  ;;  %v662_v55 = vmax.f32 %v456_v37, 0.0  ;;  %v694_v56 = vmax.f32 %v584_v38, 0.0 }
  0xf2   :  { %v1285_v54 = vpack.c.bf16 %v766_v50, %v766_v50  ;;  %1052 = vst.msk [vmem:[%s2053_s4 + $0x40] sm:$0xf] %vm1035_vm3, %v1250_v47  ;;  %1084 = vst.msk [vmem:[%s2053_s4 + $0xc0] sm:$0xf] %vm1035_vm3, %v1282_v48  ;;  %v667_v57 = vmax.f32 %v477_v45, 0.0  ;;  %v699_v58 = vmax.f32 %v605_v46, 0.0  ;;  %v469_v59 = vadd.f32 %v1596_v39, %v468_v51  ;;  %v1356_v61 = vpop.f32.mrf.mxu0  ;;  %v1388_v62 = vpop.f32.mrf.mxu1 }
  0xf3   :  { %v597_v60 = vadd.f32 %v1596_v39, %v596_v52  ;;  %1055 = vst.msk [vmem:[%s2053_s4 + $0x4c] sm:$0xf] %vm1035_vm3, %v1253_v53  ;;  %v732_v63 = vsel %vm714_vm2, %v662_v55, %v456_v37  ;;  %v764_v0 = vsel %vm714_vm2, %v694_v56, %v584_v38  ;;  %v480_v1 = vadd.f32 %v1356_v61, %v1596_v39 }
  0xf4   :  { %1087 = vst.msk [vmem:[%s2053_s4 + $0xcc] sm:$0xf] %vm1035_vm3, %v1285_v54  ;;  %v608_v2 = vadd.f32 %v1388_v62, %v1596_v39  ;;  %v1251_v3 = vpack.c.bf16 %v732_v63, %v732_v63  ;;  %v1283_v4 = vpack.c.bf16 %v764_v0, %v764_v0  ;;  %v737_v5 = vsel %vm714_vm2, %v667_v57, %v477_v45  ;;  %v471_v7 = vpop.f32.mrf.mxu0  ;;  %v599_v8 = vpop.f32.mrf.mxu1 }
  0xf5   :  { %v769_v6 = vsel %vm714_vm2, %v699_v58, %v605_v46  ;;  %v1256_v9 = vpack.c.bf16 %v737_v5, %v737_v5  ;;  %v665_v11 = vmax.f32 %v469_v59, 0.0  ;;  %v697_v12 = vmax.f32 %v597_v60, 0.0 }
  0xf6   :  { %v1288_v10 = vpack.c.bf16 %v769_v6, %v769_v6  ;;  %1053 = vst.msk [vmem:[%s2053_s4 + $0x44] sm:$0xf] %vm1035_vm3, %v1251_v3  ;;  %1085 = vst.msk [vmem:[%s2053_s4 + $0xc4] sm:$0xf] %vm1035_vm3, %v1283_v4  ;;  %v668_v13 = vmax.f32 %v480_v1, 0.0  ;;  %v700_v14 = vmax.f32 %v608_v2, 0.0  ;;  %v472_v15 = vadd.f32 %v1596_v39, %v471_v7  ;;  %v1359_v17 = vpop.f32.mrf.mxu0  ;;  %v1391_v18 = vpop.f32.mrf.mxu1 }
  0xf7   :  { %v600_v16 = vadd.f32 %v1596_v39, %v599_v8  ;;  %1058 = vst.msk [vmem:[%s2053_s4 + $0x58] sm:$0xf] %vm1035_vm3, %v1256_v9  ;;  %v735_v19 = vsel %vm714_vm2, %v665_v11, %v469_v59  ;;  %v767_v20 = vsel %vm714_vm2, %v697_v12, %v597_v60  ;;  %v493_v21 = vadd.f32 %v1359_v17, %v1596_v39 }
  0xf8   :  { %1090 = vst.msk [vmem:[%s2053_s4 + $0xd8] sm:$0xf] %vm1035_vm3, %v1288_v10  ;;  %v621_v22 = vadd.f32 %v1391_v18, %v1596_v39  ;;  %v1254_v23 = vpack.c.bf16 %v735_v19, %v735_v19  ;;  %v1286_v24 = vpack.c.bf16 %v767_v20, %v767_v20  ;;  %v738_v25 = vsel %vm714_vm2, %v668_v13, %v480_v1  ;;  %v484_v27 = vpop.f32.mrf.mxu0  ;;  %v612_v28 = vpop.f32.mrf.mxu1 }
  0xf9   :  { %v770_v26 = vsel %vm714_vm2, %v700_v14, %v608_v2  ;;  %v1257_v29 = vpack.c.bf16 %v738_v25, %v738_v25  ;;  %v666_v31 = vmax.f32 %v472_v15, 0.0  ;;  %v698_v32 = vmax.f32 %v600_v16, 0.0 }
  0xfa   :  { %v1289_v30 = vpack.c.bf16 %v770_v26, %v770_v26  ;;  %1056 = vst.msk [vmem:[%s2053_s4 + $0x50] sm:$0xf] %vm1035_vm3, %v1254_v23  ;;  %1088 = vst.msk [vmem:[%s2053_s4 + $0xd0] sm:$0xf] %vm1035_vm3, %v1286_v24  ;;  %v671_v33 = vmax.f32 %v493_v21, 0.0  ;;  %v703_v34 = vmax.f32 %v621_v22, 0.0  ;;  %v485_v35 = vadd.f32 %v1596_v39, %v484_v27  ;;  %v1360_v37 = vpop.f32.mrf.mxu0  ;;  %v1392_v38 = vpop.f32.mrf.mxu1 }
  0xfb   :  { %v613_v36 = vadd.f32 %v1596_v39, %v612_v28  ;;  %1059 = vst.msk [vmem:[%s2053_s4 + $0x5c] sm:$0xf] %vm1035_vm3, %v1257_v29  ;;  %v736_v41 = vsel %vm714_vm2, %v666_v31, %v472_v15  ;;  %v768_v42 = vsel %vm714_vm2, %v698_v32, %v600_v16  ;;  %v496_v43 = vadd.f32 %v1360_v37, %v1596_v39 }
  0xfc   :  { %1091 = vst.msk [vmem:[%s2053_s4 + $0xdc] sm:$0xf] %vm1035_vm3, %v1289_v30  ;;  %v624_v44 = vadd.f32 %v1392_v38, %v1596_v39  ;;  %v1255_v45 = vpack.c.bf16 %v736_v41, %v736_v41  ;;  %v1287_v46 = vpack.c.bf16 %v768_v42, %v768_v42  ;;  %v741_v47 = vsel %vm714_vm2, %v671_v33, %v493_v21  ;;  %v487_v49 = vpop.f32.mrf.mxu0  ;;  %v615_v50 = vpop.f32.mrf.mxu1 }
  0xfd   :  { %v773_v48 = vsel %vm714_vm2, %v703_v34, %v621_v22  ;;  %v1260_v51 = vpack.c.bf16 %v741_v47, %v741_v47  ;;  %v669_v53 = vmax.f32 %v485_v35, 0.0  ;;  %v701_v54 = vmax.f32 %v613_v36, 0.0 }
  0xfe   :  { %v1292_v52 = vpack.c.bf16 %v773_v48, %v773_v48  ;;  %1057 = vst.msk [vmem:[%s2053_s4 + $0x54] sm:$0xf] %vm1035_vm3, %v1255_v45  ;;  %1089 = vst.msk [vmem:[%s2053_s4 + $0xd4] sm:$0xf] %vm1035_vm3, %v1287_v46  ;;  %v672_v55 = vmax.f32 %v496_v43, 0.0  ;;  %v704_v56 = vmax.f32 %v624_v44, 0.0  ;;  %v488_v57 = vadd.f32 %v1596_v39, %v487_v49  ;;  %v1363_v59 = vpop.f32.mrf.mxu0  ;;  %v1395_v60 = vpop.f32.mrf.mxu1 }
  0xff   :  { %v616_v58 = vadd.f32 %v1596_v39, %v615_v50  ;;  %1062 = vst.msk [vmem:[%s2053_s4 + $0x68] sm:$0xf] %vm1035_vm3, %v1260_v51  ;;  %v739_v61 = vsel %vm714_vm2, %v669_v53, %v485_v35  ;;  %v771_v62 = vsel %vm714_vm2, %v701_v54, %v613_v36  ;;  %v509_v63 = vadd.f32 %v1363_v59, %v1596_v39 }
 0x100   :  { %1094 = vst.msk [vmem:[%s2053_s4 + $0xe8] sm:$0xf] %vm1035_vm3, %v1292_v52  ;;  %v637_v0 = vadd.f32 %v1395_v60, %v1596_v39  ;;  %v1258_v1 = vpack.c.bf16 %v739_v61, %v739_v61  ;;  %v1290_v2 = vpack.c.bf16 %v771_v62, %v771_v62  ;;  %v742_v3 = vsel %vm714_vm2, %v672_v55, %v496_v43  ;;  %v500_v5 = vpop.f32.mrf.mxu0  ;;  %v628_v6 = vpop.f32.mrf.mxu1 }
 0x101   :  { %v774_v4 = vsel %vm714_vm2, %v704_v56, %v624_v44  ;;  %v1261_v7 = vpack.c.bf16 %v742_v3, %v742_v3  ;;  %v670_v9 = vmax.f32 %v488_v57, 0.0  ;;  %v702_v10 = vmax.f32 %v616_v58, 0.0 }
 0x102   :  { %v1293_v8 = vpack.c.bf16 %v774_v4, %v774_v4  ;;  %1060 = vst.msk [vmem:[%s2053_s4 + $0x60] sm:$0xf] %vm1035_vm3, %v1258_v1  ;;  %1092 = vst.msk [vmem:[%s2053_s4 + $0xe0] sm:$0xf] %vm1035_vm3, %v1290_v2  ;;  %v675_v11 = vmax.f32 %v509_v63, 0.0  ;;  %v707_v12 = vmax.f32 %v637_v0, 0.0  ;;  %v501_v13 = vadd.f32 %v1596_v39, %v500_v5  ;;  %v1364_v15 = vpop.f32.mrf.mxu0  ;;  %v1396_v16 = vpop.f32.mrf.mxu1 }
 0x103   :  { %v629_v14 = vadd.f32 %v1596_v39, %v628_v6  ;;  %1063 = vst.msk [vmem:[%s2053_s4 + $0x6c] sm:$0xf] %vm1035_vm3, %v1261_v7  ;;  %v740_v17 = vsel %vm714_vm2, %v670_v9, %v488_v57  ;;  %v772_v18 = vsel %vm714_vm2, %v702_v10, %v616_v58  ;;  %v512_v19 = vadd.f32 %v1364_v15, %v1596_v39 }
 0x104   :  { %1095 = vst.msk [vmem:[%s2053_s4 + $0xec] sm:$0xf] %vm1035_vm3, %v1293_v8  ;;  %v640_v20 = vadd.f32 %v1396_v16, %v1596_v39  ;;  %v1259_v21 = vpack.c.bf16 %v740_v17, %v740_v17  ;;  %v1291_v22 = vpack.c.bf16 %v772_v18, %v772_v18  ;;  %v745_v23 = vsel %vm714_vm2, %v675_v11, %v509_v63  ;;  %v503_v25 = vpop.f32.mrf.mxu0  ;;  %v631_v26 = vpop.f32.mrf.mxu1 }
 0x105   :  { %v777_v24 = vsel %vm714_vm2, %v707_v12, %v637_v0  ;;  %v1264_v27 = vpack.c.bf16 %v745_v23, %v745_v23  ;;  %v673_v29 = vmax.f32 %v501_v13, 0.0  ;;  %v705_v30 = vmax.f32 %v629_v14, 0.0 }
 0x106   :  { %v1296_v28 = vpack.c.bf16 %v777_v24, %v777_v24  ;;  %1061 = vst.msk [vmem:[%s2053_s4 + $0x64] sm:$0xf] %vm1035_vm3, %v1259_v21  ;;  %1093 = vst.msk [vmem:[%s2053_s4 + $0xe4] sm:$0xf] %vm1035_vm3, %v1291_v22  ;;  %v676_v31 = vmax.f32 %v512_v19, 0.0  ;;  %v708_v32 = vmax.f32 %v640_v20, 0.0  ;;  %v504_v33 = vadd.f32 %v1596_v39, %v503_v25 }
 0x107   :  { %v632_v34 = vadd.f32 %v1596_v39, %v631_v26  ;;  %1066 = vst.msk [vmem:[%s2053_s4 + $0x78] sm:$0xf] %vm1035_vm3, %v1264_v27  ;;  %v743_v35 = vsel %vm714_vm2, %v673_v29, %v501_v13  ;;  %v775_v36 = vsel %vm714_vm2, %v705_v30, %v629_v14 }
 0x108   :  { %1098 = vst.msk [vmem:[%s2053_s4 + $0xf8] sm:$0xf] %vm1035_vm3, %v1296_v28  ;;  %v1262_v37 = vpack.c.bf16 %v743_v35, %v743_v35  ;;  %v1294_v38 = vpack.c.bf16 %v775_v36, %v775_v36  ;;  %v746_v39 = vsel %vm714_vm2, %v676_v31, %v512_v19  ;;  %v778_v41 = vsel %vm714_vm2, %v708_v32, %v640_v20 }
 0x109   :  { %v1265_v42 = vpack.c.bf16 %v746_v39, %v746_v39  ;;  %v1297_v43 = vpack.c.bf16 %v778_v41, %v778_v41  ;;  %v674_v44 = vmax.f32 %v504_v33, 0.0  ;;  %v706_v45 = vmax.f32 %v632_v34, 0.0 }
 0x10a   :  { %1064 = vst.msk [vmem:[%s2053_s4 + $0x70] sm:$0xf] %vm1035_vm3, %v1262_v37  ;;  %1096 = vst.msk [vmem:[%s2053_s4 + $0xf0] sm:$0xf] %vm1035_vm3, %v1294_v38 }
 0x10b   :  { %1067 = vst.msk [vmem:[%s2053_s4 + $0x7c] sm:$0xf] %vm1035_vm3, %v1265_v42  ;;  %1099 = vst.msk [vmem:[%s2053_s4 + $0xfc] sm:$0xf] %vm1035_vm3, %v1297_v43  ;;  %v744_v46 = vsel %vm714_vm2, %v674_v44, %v504_v33  ;;  %v776_v47 = vsel %vm714_vm2, %v706_v45, %v632_v34 }
 0x10c   :  { %v1263_v48 = vpack.c.bf16 %v744_v46, %v744_v46  ;;  %v1295_v49 = vpack.c.bf16 %v776_v47, %v776_v47 }
 0x10e   :  { %1065 = vst.msk [vmem:[%s2053_s4 + $0x74] sm:$0xf] %vm1035_vm3, %v1263_v48  ;;  %1097 = vst.msk [vmem:[%s2053_s4 + $0xf4] sm:$0xf] %vm1035_vm3, %v1295_v49 }

// kernel: forward.14
= control target key start
LH: loop header
LB: loop body
LE: loop exit
PB: predicated region body
PF: predicated region fallthrough
CT: control target
= control target key end

     0   :  { %vm347_vm0 = vcmask 1043456   ;;  %vm250_vm1 = vcmask 64512   ;;  %vm1152_vm2 = vcmask 257024   ;;  %s2541_s1 = inlined_call_operand.vmem [shape: bf16[8,32], index: 1, kind: input, shape index: {}]   ;;  %s2542_s0 = inlined_call_operand.vmem [shape: bf16[512,8], index: 0, kind: input, shape index: {}]   ;;  %s2543_s3 = inlined_call_operand.vmem [shape: bf16[512,32], index: 3, kind: input, shape index: {}]   ;;  %s2544_s2 = inlined_call_operand.vmem [shape: f32[1,32], index: 2, kind: input, shape index: {}]   ;;  %s2545_s4 = inlined_call_operand.vmem [shape: bf16[512,32], index: 4, kind: output, shape index: {}]  }
   0x1   :  { %v82_v0 = vld [vmem:[%s2541_s1] sm:$0xf]  ;;  %v1678_v4 = vld [vmem:[%s2542_s0 + $0x8] sm:$0xff]   ;;  %v1680_v6 = vld [vmem:[%s2542_s0 + $0x10] sm:$0xff]  }
   0x2   :  { %1674 = vmatprep.subr.msk.bf16.mxu0 %vm347_vm0, %v82_v0  ;;  %1675 = vmatprep.subr.msk.bf16.mxu1 %vm347_vm0, %v82_v0  ;;  %v349_v1 = vsel %vm347_vm0, %v82_v0, 0  ;;  %v1676_v2 = vld [vmem:[%s2542_s0] sm:$0xff]   ;;  %v1679_v5 = vld [vmem:[%s2542_s0 + $0x88] sm:$0xff]   ;;  %v1681_v7 = vld [vmem:[%s2542_s0 + $0x90] sm:$0xff]  }
   0x3   :  { %1607 = vmatpush3.bf16.msra.mxu0 %v349_v1  ;;  %1673 = vmatpush3.bf16.msra.mxu1 %v349_v1  ;;  %v1677_v3 = vld [vmem:[%s2542_s0 + $0x80] sm:$0xff]   ;;  %v1682_v8 = vld [vmem:[%s2542_s0 + $0x18] sm:$0xff]   ;;  %v1686_v12 = vld [vmem:[%s2542_s0 + $0x28] sm:$0xff]  }
   0x4   :  { %1608 = vmatprep.mubr.msk.bf16.mxu0 %vm250_vm1, %v1676_v2  ;;  %1640 = vmatprep.mubr.msk.bf16.mxu1 %vm250_vm1, %v1677_v3  ;;  %v1683_v9 = vld [vmem:[%s2542_s0 + $0x98] sm:$0xff]   ;;  %v1684_v10 = vld [vmem:[%s2542_s0 + $0x20] sm:$0xff]   ;;  %v1687_v13 = vld [vmem:[%s2542_s0 + $0xa8] sm:$0xff]  }
   0x5   :  { %v1685_v11 = vld [vmem:[%s2542_s0 + $0xa0] sm:$0xff]   ;;  %v1688_v14 = vld [vmem:[%s2542_s0 + $0x30] sm:$0xff]   ;;  %v1690_v16 = vld [vmem:[%s2542_s0 + $0x38] sm:$0xff]  }
   0x6   :  { %1609 = vmatmul.mubr.msk.bf16.vlgmr.msra.gmra.mxu0 %vm250_vm1, %v1678_v4  ;;  %1641 = vmatmul.mubr.msk.bf16.vlgmr.msra.gmra.mxu1 %vm250_vm1, %v1679_v5  ;;  %v1689_v15 = vld [vmem:[%s2542_s0 + $0xb0] sm:$0xff]   ;;  %v1691_v17 = vld [vmem:[%s2542_s0 + $0xb8] sm:$0xff]   ;;  %v1692_v18 = vld [vmem:[%s2542_s0 + $0x40] sm:$0xff]  }
   0x7   :  { %1612 = vmatprep.mubr.msk.bf16.mxu0 %vm250_vm1, %v1680_v6  ;;  %1644 = vmatprep.mubr.msk.bf16.mxu1 %vm250_vm1, %v1681_v7  ;;  %v1693_v19 = vld [vmem:[%s2542_s0 + $0xc0] sm:$0xff]   ;;  %v1694_v20 = vld [vmem:[%s2542_s0 + $0x48] sm:$0xff]   ;;  %v1696_v22 = vld [vmem:[%s2542_s0 + $0x50] sm:$0xff]  }
   0x8   :  { %v1695_v21 = vld [vmem:[%s2542_s0 + $0xc8] sm:$0xff]   ;;  %v1697_v23 = vld [vmem:[%s2542_s0 + $0xd0] sm:$0xff]   ;;  %v1698_v24 = vld [vmem:[%s2542_s0 + $0x58] sm:$0xff]  }
   0x9   :  { %v1699_v25 = vld [vmem:[%s2542_s0 + $0xd8] sm:$0xff]   ;;  %v1700_v26 = vld [vmem:[%s2542_s0 + $0x60] sm:$0xff]   ;;  %v1702_v28 = vld [vmem:[%s2542_s0 + $0x68] sm:$0xff]  }
   0xa   :  { %v1701_v27 = vld [vmem:[%s2542_s0 + $0xe0] sm:$0xff]   ;;  %v1703_v29 = vld [vmem:[%s2542_s0 + $0xe8] sm:$0xff]   ;;  %v1704_v30 = vld [vmem:[%s2542_s0 + $0x70] sm:$0xff]  }
   0xb   :  { %v1705_v31 = vld [vmem:[%s2542_s0 + $0xf0] sm:$0xff]   ;;  %v1706_v32 = vld [vmem:[%s2542_s0 + $0x78] sm:$0xff]   ;;  %v1867_v34 = vld [vmem:[%s2543_s3 + $0x8] sm:$0xff]  }
   0xc   :  { %v1707_v33 = vld [vmem:[%s2542_s0 + $0xf8] sm:$0xff]   ;;  %v1872_v35 = vld [vmem:[%s2543_s3 + $0x88] sm:$0xff]   ;;  %v1877_v36 = vld [vmem:[%s2543_s3] sm:$0xff]   ;;  %v1420_v42 = vunpack.c.l.bf16 %v1867_v34  ;;  %v1421_v47 = vunpack.c.h.bf16 %v1867_v34 }
   0xd   :  { %v1882_v37 = vld [vmem:[%s2543_s3 + $0x80] sm:$0xff]   ;;  %v1887_v38 = vld [vmem:[%s2543_s3 + $0x18] sm:$0xff]   ;;  %v1897_v40 = vld [vmem:[%s2543_s3 + $0x10] sm:$0xff]   ;;  %v1484_v43 = vunpack.c.l.bf16 %v1872_v35  ;;  %v1416_v44 = vunpack.c.l.bf16 %v1877_v36  ;;  %v1485_v48 = vunpack.c.h.bf16 %v1872_v35  ;;  %v1417_v49 = vunpack.c.h.bf16 %v1877_v36 }
   0xe   :  { %1613 = vmatmul.mubr.msk.bf16.gmra.mxu0 %vm250_vm1, %v1682_v8  ;;  %1645 = vmatmul.mubr.msk.bf16.gmra.mxu1 %vm250_vm1, %v1683_v9  ;;  %v1892_v39 = vld [vmem:[%s2543_s3 + $0x98] sm:$0xff]   ;;  %v1902_v41 = vld [vmem:[%s2543_s3 + $0x90] sm:$0xff]   ;;  %v1480_v45 = vunpack.c.l.bf16 %v1882_v37  ;;  %v1911_v46 = vld [vmem:[%s2543_s3 + $0x28] sm:$0xff]   ;;  %v1481_v50 = vunpack.c.h.bf16 %v1882_v37  ;;  %v1428_v54 = vunpack.c.l.bf16 %v1887_v38  ;;  %v1424_v56 = vunpack.c.l.bf16 %v1897_v40 }
   0xf   :  { %1616 = vmatprep.mubr.msk.bf16.mxu0 %vm250_vm1, %v1684_v10  ;;  %1648 = vmatprep.mubr.msk.bf16.mxu1 %vm250_vm1, %v1685_v11  ;;  %v1920_v51 = vld [vmem:[%s2543_s3 + $0xa8] sm:$0xff]   ;;  %v1925_v52 = vld [vmem:[%s2543_s3 + $0x20] sm:$0xff]   ;;  %v1492_v55 = vunpack.c.l.bf16 %v1892_v39  ;;  %v1488_v57 = vunpack.c.l.bf16 %v1902_v41  ;;  %v1939_v58 = vld [vmem:[%s2543_s3 + $0x38] sm:$0xff]   ;;  %v1429_v59 = vunpack.c.h.bf16 %v1887_v38  ;;  %v1493_v60 = vunpack.c.h.bf16 %v1892_v39 }
  0x10   :  { %v1930_v53 = vld [vmem:[%s2543_s3 + $0xa0] sm:$0xff]   ;;  %v1425_v61 = vunpack.c.h.bf16 %v1897_v40  ;;  %v1948_v63 = vld [vmem:[%s2543_s3 + $0xb8] sm:$0xff]   ;;  %v1953_v0 = vld [vmem:[%s2543_s3 + $0x30] sm:$0xff]  }
  0x11   :  { %v1958_v1 = vld [vmem:[%s2543_s3 + $0xb0] sm:$0xff]   ;;  %v1967_v6 = vld [vmem:[%s2543_s3 + $0x48] sm:$0xff]  }
  0x12   :  { %v1976_v11 = vld [vmem:[%s2543_s3 + $0xc8] sm:$0xff]  }
  0x16   :  { %1617 = vmatmul.mubr.msk.bf16.gmra.mxu0 %vm250_vm1, %v1686_v12  ;;  %1649 = vmatmul.mubr.msk.bf16.gmra.mxu1 %vm250_vm1, %v1687_v13  ;;  %v1981_v12 = vld [vmem:[%s2543_s3 + $0x40] sm:$0xff]  }
  0x17   :  { %1620 = vmatprep.mubr.msk.bf16.mxu0 %vm250_vm1, %v1688_v14  ;;  %1652 = vmatprep.mubr.msk.bf16.mxu1 %vm250_vm1, %v1689_v15  ;;  %v1986_v13 = vld [vmem:[%s2543_s3 + $0xc0] sm:$0xff]  }
  0x1e   :  { %1621 = vmatmul.mubr.msk.bf16.gmra.mxu0 %vm250_vm1, %v1690_v16  ;;  %1653 = vmatmul.mubr.msk.bf16.gmra.mxu1 %vm250_vm1, %v1691_v17  ;;  %v2060_v16 = vld [vmem:[%s2543_s3 + $0x78] sm:$0xff]   ;;  %v2074_v17 = vld [vmem:[%s2543_s3 + $0x70] sm:$0xff]  }
  0x1f   :  { %1624 = vmatprep.mubr.msk.bf16.mxu0 %vm250_vm1, %v1692_v18  ;;  %1656 = vmatprep.mubr.msk.bf16.mxu1 %vm250_vm1, %v1693_v19  ;;  %v1995_v18 = vld [vmem:[%s2543_s3 + $0x58] sm:$0xff]  }
  0x26   :  { %1625 = vmatmul.mubr.msk.bf16.gmra.mxu0 %vm250_vm1, %v1694_v20  ;;  %1657 = vmatmul.mubr.msk.bf16.gmra.mxu1 %vm250_vm1, %v1695_v21 }
  0x27   :  { %1628 = vmatprep.mubr.msk.bf16.mxu0 %vm250_vm1, %v1696_v22  ;;  %1660 = vmatprep.mubr.msk.bf16.mxu1 %vm250_vm1, %v1697_v23  ;;  %v2004_v23 = vld [vmem:[%s2543_s3 + $0xd8] sm:$0xff]   ;;  %v2079_v22 = vld [vmem:[%s2543_s3 + $0xf0] sm:$0xff]  }
  0x28   :  { %v1537_v8 = vunpack.c.h.bf16 %v2079_v22 }
  0x2e   :  { %1629 = vmatmul.mubr.msk.bf16.gmra.mxu0 %vm250_vm1, %v1698_v24  ;;  %1661 = vmatmul.mubr.msk.bf16.gmra.mxu1 %vm250_vm1, %v1699_v25  ;;  %v2009_v24 = vld [vmem:[%s2543_s3 + $0x50] sm:$0xff]  }
  0x2f   :  { %1632 = vmatprep.mubr.msk.bf16.mxu0 %vm250_vm1, %v1700_v26  ;;  %1664 = vmatprep.mubr.msk.bf16.mxu1 %vm250_vm1, %v1701_v27  ;;  %v2014_v25 = vld [vmem:[%s2543_s3 + $0xd0] sm:$0xff]   ;;  %v2032_v27 = vld [vmem:[%s2543_s3 + $0xe8] sm:$0xff]   ;;  %v1473_v26 = vunpack.c.h.bf16 %v2074_v17 }
  0x36   :  { %1633 = vmatmul.mubr.msk.bf16.gmra.mxu0 %vm250_vm1, %v1702_v28  ;;  %1665 = vmatmul.mubr.msk.bf16.gmra.mxu1 %vm250_vm1, %v1703_v29  ;;  %v2037_v29 = vld [vmem:[%s2543_s3 + $0x60] sm:$0xff]  }
  0x37   :  { %1636 = vmatprep.mubr.msk.bf16.mxu0 %vm250_vm1, %v1704_v30  ;;  %1668 = vmatprep.mubr.msk.bf16.mxu1 %vm250_vm1, %v1705_v31  ;;  %v2023_v30 = vld [vmem:[%s2543_s3 + $0x68] sm:$0xff]   ;;  %v2042_v31 = vld [vmem:[%s2543_s3 + $0xe0] sm:$0xff]  }
  0x3e   :  { %1637 = vmatmul.mubr.msk.bf16.gmra.mxu0 %vm250_vm1, %v1706_v32  ;;  %1669 = vmatmul.mubr.msk.bf16.gmra.mxu1 %vm250_vm1, %v1707_v33  ;;  %v2047_v33 = vld [vmem:[%s2544_s2] ss:$0 sm:$0xff]  ;;  %v2065_v32 = vld [vmem:[%s2543_s3 + $0xf8] sm:$0xff]  }
  0xc6   :  { %v1610_v28 = vpop.f32.mrf.mxu0  ;;  %v1642_v14 = vpop.f32.mrf.mxu1 }
  0xc7   :  { %v394_v15 = vadd.f32 %v1610_v28, %v2047_v33  ;;  %v522_v19 = vadd.f32 %v1642_v14, %v2047_v33 }
  0xc8   :  { %v385_v10 = vpop.f32.mrf.mxu0  ;;  %v513_v4 = vpop.f32.mrf.mxu1 }
  0xc9   :  { %v770_v5 = vadd.f32 %v1420_v42, %v394_v15  ;;  %v386_v28 = vadd.f32 %v2047_v33, %v385_v10  ;;  %v802_v14 = vadd.f32 %v1484_v43, %v522_v19  ;;  %v514_v20 = vadd.f32 %v2047_v33, %v513_v4 }
  0xca   :  { %v1611_v9 = vpop.f32.mrf.mxu0  ;;  %v1643_v15 = vpop.f32.mrf.mxu1 }
  0xcb   :  { %v834_v3 = vmax.f32 %v770_v5, 0.0  ;;  %v768_v42 = vadd.f32 %v1416_v44, %v386_v28  ;;  %v397_v10 = vadd.f32 %v1611_v9, %v2047_v33  ;;  %v866_v21 = vmax.f32 %v802_v14, 0.0 }
  0xcc   :  { %v800_v43 = vadd.f32 %v1480_v45, %v514_v20  ;;  %v525_v4 = vadd.f32 %v1643_v15, %v2047_v33  ;;  %v388_v19 = vpop.f32.mrf.mxu0  ;;  %v516_v9 = vpop.f32.mrf.mxu1 }
  0xcd   :  { %v1352_v2 = vpack.c.bf16 %v834_v3, %v834_v3  ;;  %v832_v7 = vmax.f32 %v768_v42, 0.0  ;;  %v771_v5 = vadd.f32 %v1421_v47, %v397_v10  ;;  %v389_v44 = vadd.f32 %v2047_v33, %v388_v19 }
  0xce   :  { %v1384_v28 = vpack.c.bf16 %v866_v21, %v866_v21  ;;  %v864_v62 = vmax.f32 %v800_v43, 0.0  ;;  %v803_v14 = vadd.f32 %v1485_v48, %v525_v4  ;;  %v517_v45 = vadd.f32 %v2047_v33, %v516_v9  ;;  %v1614_v20 = vpop.f32.mrf.mxu0  ;;  %v1646_v21 = vpop.f32.mrf.mxu1 }
  0xcf   :  { %1155 = vst.msk [vmem:[%s2545_s4 + $0x8] sm:$0xf] %vm1152_vm2, %v1352_v2  ;;  %v1350_v3 = vpack.c.bf16 %v832_v7, %v832_v7  ;;  %v835_v42 = vmax.f32 %v771_v5, 0.0  ;;  %v769_v34 = vadd.f32 %v1417_v49, %v389_v44  ;;  %v410_v47 = vadd.f32 %v1614_v20, %v2047_v33 }
  0xd0   :  { %1187 = vst.msk [vmem:[%s2545_s4 + $0x88] sm:$0xf] %vm1152_vm2, %v1384_v28  ;;  %v1382_v35 = vpack.c.bf16 %v864_v62, %v864_v62  ;;  %v867_v48 = vmax.f32 %v803_v14, 0.0  ;;  %v801_v10 = vadd.f32 %v1481_v50, %v517_v45  ;;  %v538_v2 = vadd.f32 %v1646_v21, %v2047_v33  ;;  %v401_v7 = vpop.f32.mrf.mxu0  ;;  %v529_v62 = vpop.f32.mrf.mxu1 }
  0xd1   :  { %1153 = vst.msk [vmem:[%s2545_s4] sm:$0xf] %vm1152_vm2, %v1350_v3  ;;  %v1353_v36 = vpack.c.bf16 %v835_v42, %v835_v42  ;;  %v833_v49 = vmax.f32 %v769_v34, 0.0  ;;  %v774_v15 = vadd.f32 %v1428_v54, %v410_v47  ;;  %v402_v43 = vadd.f32 %v2047_v33, %v401_v7 }
  0xd2   :  { %1185 = vst.msk [vmem:[%s2545_s4 + $0x80] sm:$0xf] %vm1152_vm2, %v1382_v35  ;;  %v1385_v37 = vpack.c.bf16 %v867_v48, %v867_v48  ;;  %v865_v50 = vmax.f32 %v801_v10, 0.0  ;;  %v806_v4 = vadd.f32 %v1492_v55, %v538_v2  ;;  %v530_v19 = vadd.f32 %v2047_v33, %v529_v62  ;;  %v1615_v5 = vpop.f32.mrf.mxu0  ;;  %v1647_v14 = vpop.f32.mrf.mxu1 }
  0xd3   :  { %1156 = vst.msk [vmem:[%s2545_s4 + $0xc] sm:$0xf] %vm1152_vm2, %v1353_v36  ;;  %v1351_v54 = vpack.c.bf16 %v833_v49, %v833_v49  ;;  %v838_v44 = vmax.f32 %v774_v15, 0.0  ;;  %v772_v9 = vadd.f32 %v1424_v56, %v402_v43  ;;  %v413_v28 = vadd.f32 %v1615_v5, %v2047_v33 }
  0xd4   :  { %1188 = vst.msk [vmem:[%s2545_s4 + $0x8c] sm:$0xf] %vm1152_vm2, %v1385_v37  ;;  %v1383_v55 = vpack.c.bf16 %v865_v50, %v865_v50  ;;  %v870_v45 = vmax.f32 %v806_v4, 0.0  ;;  %v804_v20 = vadd.f32 %v1488_v57, %v530_v19  ;;  %v541_v3 = vadd.f32 %v1647_v14, %v2047_v33  ;;  %v404_v42 = vpop.f32.mrf.mxu0  ;;  %v532_v35 = vpop.f32.mrf.mxu1 }
  0xd5   :  { %1154 = vst.msk [vmem:[%s2545_s4 + $0x4] sm:$0xf] %vm1152_vm2, %v1351_v54  ;;  %v1356_v56 = vpack.c.bf16 %v838_v44, %v838_v44  ;;  %v836_v34 = vmax.f32 %v772_v9, 0.0  ;;  %v775_v47 = vadd.f32 %v1429_v59, %v413_v28  ;;  %v405_v21 = vadd.f32 %v2047_v33, %v404_v42 }
  0xd6   :  { %1186 = vst.msk [vmem:[%s2545_s4 + $0x84] sm:$0xf] %vm1152_vm2, %v1383_v55  ;;  %v1388_v57 = vpack.c.bf16 %v870_v45, %v870_v45  ;;  %v868_v48 = vmax.f32 %v804_v20, 0.0  ;;  %v807_v10 = vadd.f32 %v1493_v60, %v541_v3  ;;  %v533_v2 = vadd.f32 %v2047_v33, %v532_v35  ;;  %v1618_v7 = vpop.f32.mrf.mxu0  ;;  %v1650_v15 = vpop.f32.mrf.mxu1 }
  0xd7   :  { %1159 = vst.msk [vmem:[%s2545_s4 + $0x18] sm:$0xf] %vm1152_vm2, %v1356_v56  ;;  %v1354_v38 = vpack.c.bf16 %v836_v34, %v836_v34  ;;  %v839_v59 = vmax.f32 %v775_v47, 0.0  ;;  %v773_v36 = vadd.f32 %v1425_v61, %v405_v21  ;;  %v426_v49 = vadd.f32 %v1618_v7, %v2047_v33 }
  0xd8   :  { %1191 = vst.msk [vmem:[%s2545_s4 + $0x98] sm:$0xf] %vm1152_vm2, %v1388_v57  ;;  %v1386_v39 = vpack.c.bf16 %v868_v48, %v868_v48  ;;  %v871_v60 = vmax.f32 %v807_v10, 0.0  ;;  %v2546_v43 = vunpack.c.h.bf16 %v1902_v41  ;;  %v554_v37 = vadd.f32 %v1650_v15, %v2047_v33  ;;  %v417_v50 = vpop.f32.mrf.mxu0  ;;  %v545_v54 = vpop.f32.mrf.mxu1 }
  0xd9   :  { %1157 = vst.msk [vmem:[%s2545_s4 + $0x10] sm:$0xf] %vm1152_vm2, %v1354_v38  ;;  %v1357_v40 = vpack.c.bf16 %v839_v59, %v839_v59  ;;  %v837_v61 = vmax.f32 %v773_v36, 0.0  ;;  %v2547_v4 = vunpack.c.l.bf16 %v1911_v46  ;;  %v418_v5 = vadd.f32 %v2047_v33, %v417_v50 }
  0xda   :  { %v805_v62 = vadd.f32 %v2546_v43, %v533_v2  ;;  %1189 = vst.msk [vmem:[%s2545_s4 + $0x90] sm:$0xf] %vm1152_vm2, %v1386_v39  ;;  %v1389_v41 = vpack.c.bf16 %v871_v60, %v871_v60  ;;  %v2548_v9 = vunpack.c.l.bf16 %v1920_v51  ;;  %v546_v14 = vadd.f32 %v2047_v33, %v545_v54  ;;  %v1619_v55 = vpop.f32.mrf.mxu0  ;;  %v1651_v34 = vpop.f32.mrf.mxu1 }
  0xdb   :  { %v778_v19 = vadd.f32 %v2547_v4, %v426_v49  ;;  %1160 = vst.msk [vmem:[%s2545_s4 + $0x1c] sm:$0xf] %vm1152_vm2, %v1357_v40  ;;  %v1355_v45 = vpack.c.bf16 %v837_v61, %v837_v61  ;;  %v2549_v3 = vunpack.c.l.bf16 %v1925_v52  ;;  %v429_v56 = vadd.f32 %v1619_v55, %v2047_v33 }
  0xdc   :  { %v869_v44 = vmax.f32 %v805_v62, 0.0  ;;  %v810_v28 = vadd.f32 %v2548_v9, %v554_v37  ;;  %1192 = vst.msk [vmem:[%s2545_s4 + $0x9c] sm:$0xf] %vm1152_vm2, %v1389_v41  ;;  %v2550_v35 = vunpack.c.l.bf16 %v1930_v53  ;;  %v557_v48 = vadd.f32 %v1651_v34, %v2047_v33  ;;  %v420_v10 = vpop.f32.mrf.mxu0  ;;  %v548_v49 = vpop.f32.mrf.mxu1 }
  0xdd   :  { %v842_v20 = vmax.f32 %v778_v19, 0.0  ;;  %v776_v42 = vadd.f32 %v2549_v3, %v418_v5  ;;  %1158 = vst.msk [vmem:[%s2545_s4 + $0x14] sm:$0xf] %vm1152_vm2, %v1355_v45  ;;  %v2551_v38 = vunpack.c.h.bf16 %v1911_v46  ;;  %v421_v36 = vadd.f32 %v2047_v33, %v420_v10 }
  0xde   :  { %v1387_v47 = vpack.c.bf16 %v869_v44, %v869_v44  ;;  %v874_v21 = vmax.f32 %v810_v28, 0.0  ;;  %v808_v57 = vadd.f32 %v2550_v35, %v546_v14  ;;  %v2552_v60 = vunpack.c.h.bf16 %v1920_v51  ;;  %v1622_v37 = vpop.f32.mrf.mxu0  ;;  %v1654_v19 = vpop.f32.mrf.mxu1 }
  0xdf   :  { %v1360_v2 = vpack.c.bf16 %v842_v20, %v842_v20  ;;  %v840_v7 = vmax.f32 %v776_v42, 0.0  ;;  %v779_v59 = vadd.f32 %v2551_v38, %v429_v56  ;;  %v549_v62 = vadd.f32 %v2047_v33, %v548_v49 }
  0xe0   :  { %1190 = vst.msk [vmem:[%s2545_s4 + $0x94] sm:$0xf] %vm1152_vm2, %v1387_v47  ;;  %v1392_v15 = vpack.c.bf16 %v874_v21, %v874_v21  ;;  %v872_v39 = vmax.f32 %v808_v57, 0.0  ;;  %v811_v43 = vadd.f32 %v2552_v60, %v557_v48  ;;  %v2553_v40 = vunpack.c.h.bf16 %v1925_v52  ;;  %v433_v9 = vpop.f32.mrf.mxu0  ;;  %v561_v20 = vpop.f32.mrf.mxu1 }
  0xe1   :  { %1163 = vst.msk [vmem:[%s2545_s4 + $0x28] sm:$0xf] %vm1152_vm2, %v1360_v2  ;;  %v1358_v46 = vpack.c.bf16 %v840_v7, %v840_v7  ;;  %v843_v50 = vmax.f32 %v779_v59, 0.0  ;;  %v442_v4 = vadd.f32 %v1622_v37, %v2047_v33  ;;  %v2554_v54 = vunpack.c.h.bf16 %v1930_v53 }
  0xe2   :  { %v777_v61 = vadd.f32 %v2553_v40, %v421_v36  ;;  %1195 = vst.msk [vmem:[%s2545_s4 + $0xa8] sm:$0xf] %vm1152_vm2, %v1392_v15  ;;  %v1390_v51 = vpack.c.bf16 %v872_v39, %v872_v39  ;;  %v875_v5 = vmax.f32 %v811_v43, 0.0  ;;  %v570_v44 = vadd.f32 %v1654_v19, %v2047_v33  ;;  %v1623_v47 = vpop.f32.mrf.mxu0  ;;  %v1655_v2 = vpop.f32.mrf.mxu1 }
  0xe3   :  { %v809_v41 = vadd.f32 %v2554_v54, %v549_v62  ;;  %1161 = vst.msk [vmem:[%s2545_s4 + $0x20] sm:$0xf] %vm1152_vm2, %v1358_v46  ;;  %v1361_v52 = vpack.c.bf16 %v843_v50, %v843_v50  ;;  %v2555_v14 = vunpack.c.l.bf16 %v1939_v58  ;;  %v434_v45 = vadd.f32 %v2047_v33, %v433_v9 }
  0xe4   :  { %v841_v28 = vmax.f32 %v777_v61, 0.0  ;;  %1193 = vst.msk [vmem:[%s2545_s4 + $0xa0] sm:$0xf] %vm1152_vm2, %v1390_v51  ;;  %v1393_v53 = vpack.c.bf16 %v875_v5, %v875_v5  ;;  %v2556_v42 = vunpack.c.l.bf16 %v1948_v63  ;;  %v562_v34 = vadd.f32 %v2047_v33, %v561_v20  ;;  %v436_v15 = vpop.f32.mrf.mxu0  ;;  %v564_v46 = vpop.f32.mrf.mxu1 }
  0xe5   :  { %v782_v55 = vadd.f32 %v2555_v14, %v442_v4  ;;  %v873_v3 = vmax.f32 %v809_v41, 0.0  ;;  %1164 = vst.msk [vmem:[%s2545_s4 + $0x2c] sm:$0xf] %vm1152_vm2, %v1361_v52  ;;  %v2557_v57 = vunpack.c.l.bf16 %v1953_v0  ;;  %v445_v10 = vadd.f32 %v1623_v47, %v2047_v33 }
  0xe6   :  { %v814_v56 = vadd.f32 %v2556_v42, %v570_v44  ;;  %v1359_v21 = vpack.c.bf16 %v841_v28, %v841_v28  ;;  %1196 = vst.msk [vmem:[%s2545_s4 + $0xac] sm:$0xf] %vm1152_vm2, %v1393_v53  ;;  %v2558_v59 = vunpack.c.l.bf16 %v1958_v1  ;;  %v573_v49 = vadd.f32 %v1655_v2, %v2047_v33  ;;  %v1626_v51 = vpop.f32.mrf.mxu0  ;;  %v1658_v9 = vpop.f32.mrf.mxu1 }
  0xe7   :  { %v846_v35 = vmax.f32 %v782_v55, 0.0  ;;  %v780_v48 = vadd.f32 %v2557_v57, %v434_v45  ;;  %v1391_v7 = vpack.c.bf16 %v873_v3, %v873_v3  ;;  %v2559_v43 = vunpack.c.h.bf16 %v1939_v58 }
  0xe8   :  { %v878_v38 = vmax.f32 %v814_v56, 0.0  ;;  %v812_v36 = vadd.f32 %v2558_v59, %v562_v34  ;;  %1162 = vst.msk [vmem:[%s2545_s4 + $0x24] sm:$0xf] %vm1152_vm2, %v1359_v21  ;;  %v437_v37 = vadd.f32 %v2047_v33, %v436_v15  ;;  %v2560_v61 = vunpack.c.h.bf16 %v1948_v63  ;;  %v449_v45 = vpop.f32.mrf.mxu0  ;;  %v577_v56 = vpop.f32.mrf.mxu1 }
  0xe9   :  { %v1364_v39 = vpack.c.bf16 %v846_v35, %v846_v35  ;;  %v844_v60 = vmax.f32 %v780_v48, 0.0  ;;  %v783_v62 = vadd.f32 %v2559_v43, %v445_v10  ;;  %1194 = vst.msk [vmem:[%s2545_s4 + $0xa4] sm:$0xf] %vm1152_vm2, %v1391_v7  ;;  %v565_v19 = vadd.f32 %v2047_v33, %v564_v46 }
  0xea   :  { %v1396_v50 = vpack.c.bf16 %v878_v38, %v878_v38  ;;  %v876_v40 = vmax.f32 %v812_v36, 0.0  ;;  %v815_v4 = vadd.f32 %v2560_v61, %v573_v49  ;;  %v2561_v54 = vunpack.c.h.bf16 %v1953_v0  ;;  %v1627_v57 = vpop.f32.mrf.mxu0  ;;  %v1659_v59 = vpop.f32.mrf.mxu1 }
  0xeb   :  { %1167 = vst.msk [vmem:[%s2545_s4 + $0x38] sm:$0xf] %vm1152_vm2, %v1364_v39  ;;  %v1362_v58 = vpack.c.bf16 %v844_v60, %v844_v60  ;;  %v847_v5 = vmax.f32 %v783_v62, 0.0  ;;  %v458_v44 = vadd.f32 %v1626_v51, %v2047_v33  ;;  %v2562_v28 = vunpack.c.h.bf16 %v1958_v1 }
  0xec   :  { %v781_v41 = vadd.f32 %v2561_v54, %v437_v37  ;;  %1199 = vst.msk [vmem:[%s2545_s4 + $0xb8] sm:$0xf] %vm1152_vm2, %v1396_v50  ;;  %v1394_v63 = vpack.c.bf16 %v876_v40, %v876_v40  ;;  %v879_v52 = vmax.f32 %v815_v4, 0.0  ;;  %v586_v55 = vadd.f32 %v1658_v9, %v2047_v33  ;;  %v452_v43 = vpop.f32.mrf.mxu0  ;;  %v580_v61 = vpop.f32.mrf.mxu1 }
  0xed   :  { %v813_v14 = vadd.f32 %v2562_v28, %v565_v19  ;;  %1165 = vst.msk [vmem:[%s2545_s4 + $0x30] sm:$0xf] %vm1152_vm2, %v1362_v58  ;;  %v1365_v0 = vpack.c.bf16 %v847_v5, %v847_v5  ;;  %v2563_v53 = vunpack.c.l.bf16 %v1967_v6  ;;  %v450_v42 = vadd.f32 %v2047_v33, %v449_v45 }
  0xee   :  { %v845_v20 = vmax.f32 %v781_v41, 0.0  ;;  %1197 = vst.msk [vmem:[%s2545_s4 + $0xb0] sm:$0xf] %vm1152_vm2, %v1394_v63  ;;  %v1397_v1 = vpack.c.bf16 %v879_v52, %v879_v52  ;;  %v2564_v47 = vunpack.c.l.bf16 %v1976_v11  ;;  %v578_v35 = vadd.f32 %v2047_v33, %v577_v56  ;;  %v1630_v54 = vpop.f32.mrf.mxu0  ;;  %v1662_v52 = vpop.f32.mrf.mxu1 }
  0xef   :  { %v786_v3 = vadd.f32 %v2563_v53, %v458_v44  ;;  %v877_v34 = vmax.f32 %v813_v14, 0.0  ;;  %1168 = vst.msk [vmem:[%s2545_s4 + $0x3c] sm:$0xf] %vm1152_vm2, %v1365_v0  ;;  %v2565_v2 = vunpack.c.l.bf16 %v1981_v12  ;;  %v461_v38 = vadd.f32 %v1627_v57, %v2047_v33 }
  0xf0   :  { %v818_v21 = vadd.f32 %v2564_v47, %v586_v55  ;;  %v1363_v48 = vpack.c.bf16 %v845_v20, %v845_v20  ;;  %1200 = vst.msk [vmem:[%s2545_s4 + $0xbc] sm:$0xf] %vm1152_vm2, %v1397_v1  ;;  %v2566_v15 = vunpack.c.l.bf16 %v1986_v13  ;;  %v589_v60 = vadd.f32 %v1659_v59, %v2047_v33  ;;  %v465_v0 = vpop.f32.mrf.mxu0  ;;  %v593_v56 = vpop.f32.mrf.mxu1 }
  0xf1   :  { %v850_v10 = vmax.f32 %v786_v3, 0.0  ;;  %v784_v7 = vadd.f32 %v2565_v2, %v450_v42  ;;  %v1395_v36 = vpack.c.bf16 %v877_v34, %v877_v34  ;;  %v2567_v46 = vunpack.c.h.bf16 %v1967_v6 }
  0xf2   :  { %v882_v49 = vmax.f32 %v818_v21, 0.0  ;;  %v816_v39 = vadd.f32 %v2566_v15, %v578_v35  ;;  %1166 = vst.msk [vmem:[%s2545_s4 + $0x34] sm:$0xf] %vm1152_vm2, %v1363_v48  ;;  %v453_v40 = vadd.f32 %v2047_v33, %v452_v43  ;;  %v2568_v51 = vunpack.c.h.bf16 %v1976_v11  ;;  %v1631_v35 = vpop.f32.mrf.mxu0 }
  0xf3   :  { %v1368_v62 = vpack.c.bf16 %v850_v10, %v850_v10  ;;  %v848_v37 = vmax.f32 %v784_v7, 0.0  ;;  %v787_v50 = vadd.f32 %v2567_v46, %v461_v38  ;;  %1198 = vst.msk [vmem:[%s2545_s4 + $0xb4] sm:$0xf] %vm1152_vm2, %v1395_v36  ;;  %v581_v5 = vadd.f32 %v2047_v33, %v580_v61  ;;  %v1663_v38 = vpop.f32.mrf.mxu1 }
  0xf4   :  { %v1400_v4 = vpack.c.bf16 %v882_v49, %v882_v49  ;;  %v880_v19 = vmax.f32 %v816_v39, 0.0  ;;  %v819_v58 = vadd.f32 %v2568_v51, %v589_v60  ;;  %v2569_v44 = vunpack.c.h.bf16 %v1981_v12  ;;  %v468_v60 = vpop.f32.mrf.mxu0 }
  0xf5   :  { %1171 = vst.msk [vmem:[%s2545_s4 + $0x48] sm:$0xf] %vm1152_vm2, %v1368_v62  ;;  %v1366_v6 = vpack.c.bf16 %v848_v37, %v848_v37  ;;  %v851_v41 = vmax.f32 %v787_v50, 0.0  ;;  %v474_v63 = vadd.f32 %v1630_v54, %v2047_v33  ;;  %v2570_v14 = vunpack.c.h.bf16 %v1986_v13 }
  0xf6   :  { %v785_v9 = vadd.f32 %v2569_v44, %v453_v40  ;;  %1203 = vst.msk [vmem:[%s2545_s4 + $0xc8] sm:$0xf] %vm1152_vm2, %v1400_v4  ;;  %v1398_v11 = vpack.c.bf16 %v880_v19, %v880_v19  ;;  %v883_v28 = vmax.f32 %v819_v58, 0.0  ;;  %v602_v45 = vadd.f32 %v1662_v52, %v2047_v33  ;;  %v596_v40 = vpop.f32.mrf.mxu1 }
  0xf7   :  { %v817_v55 = vadd.f32 %v2570_v14, %v581_v5  ;;  %1169 = vst.msk [vmem:[%s2545_s4 + $0x40] sm:$0xf] %vm1152_vm2, %v1366_v6  ;;  %v1369_v12 = vpack.c.bf16 %v851_v41, %v851_v41  ;;  %v2571_v53 = vunpack.c.l.bf16 %v1995_v18  ;;  %v466_v42 = vadd.f32 %v2047_v33, %v465_v0  ;;  %v1634_v5 = vpop.f32.mrf.mxu0 }
  0xf8   :  { %v849_v20 = vmax.f32 %v785_v9, 0.0  ;;  %1201 = vst.msk [vmem:[%s2545_s4 + $0xc0] sm:$0xf] %vm1152_vm2, %v1398_v11  ;;  %v1401_v13 = vpack.c.bf16 %v883_v28, %v883_v28  ;;  %v2572_v34 = vunpack.c.l.bf16 %v2004_v23  ;;  %v594_v21 = vadd.f32 %v2047_v33, %v593_v56  ;;  %v1666_v9 = vpop.f32.mrf.mxu1 }
  0xf9   :  { %v790_v3 = vadd.f32 %v2571_v53, %v474_v63  ;;  %v881_v1 = vmax.f32 %v817_v55, 0.0  ;;  %1172 = vst.msk [vmem:[%s2545_s4 + $0x4c] sm:$0xf] %vm1152_vm2, %v1369_v12  ;;  %v2573_v10 = vunpack.c.l.bf16 %v2009_v24  ;;  %v477_v7 = vadd.f32 %v1631_v35, %v2047_v33  ;;  %v481_v14 = vpop.f32.mrf.mxu0 }
  0xfa   :  { %v822_v47 = vadd.f32 %v2572_v34, %v602_v45  ;;  %v1367_v57 = vpack.c.bf16 %v849_v20, %v849_v20  ;;  %1204 = vst.msk [vmem:[%s2545_s4 + $0xcc] sm:$0xf] %vm1152_vm2, %v1401_v13  ;;  %v2574_v49 = vunpack.c.l.bf16 %v2014_v25  ;;  %v605_v39 = vadd.f32 %v1663_v38, %v2047_v33  ;;  %v609_v20 = vpop.f32.mrf.mxu1 }
  0xfb   :  { %v854_v48 = vmax.f32 %v790_v3, 0.0  ;;  %v788_v2 = vadd.f32 %v2573_v10, %v466_v42  ;;  %v1399_v59 = vpack.c.bf16 %v881_v1, %v881_v1  ;;  %v2575_v37 = vunpack.c.h.bf16 %v1995_v18  ;;  %v1635_v13 = vpop.f32.mrf.mxu0 }
  0xfc   :  { %v886_v36 = vmax.f32 %v822_v47, 0.0  ;;  %v820_v15 = vadd.f32 %v2574_v49, %v594_v21  ;;  %1170 = vst.msk [vmem:[%s2545_s4 + $0x44] sm:$0xf] %vm1152_vm2, %v1367_v57  ;;  %v469_v50 = vadd.f32 %v2047_v33, %v468_v60  ;;  %v2576_v19 = vunpack.c.h.bf16 %v2004_v23  ;;  %v1667_v57 = vpop.f32.mrf.mxu1 }
  0xfd   :  { %v1372_v43 = vpack.c.bf16 %v854_v48, %v854_v48  ;;  %v852_v62 = vmax.f32 %v788_v2, 0.0  ;;  %v791_v46 = vadd.f32 %v2575_v37, %v477_v7  ;;  %1202 = vst.msk [vmem:[%s2545_s4 + $0xc4] sm:$0xf] %vm1152_vm2, %v1399_v59  ;;  %v597_v58 = vadd.f32 %v2047_v33, %v596_v40  ;;  %v484_v59 = vpop.f32.mrf.mxu0 }
  0xfe   :  { %v1404_v61 = vpack.c.bf16 %v886_v36, %v886_v36  ;;  %v884_v4 = vmax.f32 %v820_v15, 0.0  ;;  %v823_v51 = vadd.f32 %v2576_v19, %v605_v39  ;;  %v2577_v6 = vunpack.c.h.bf16 %v2009_v24 }
  0xff   :  { %1175 = vst.msk [vmem:[%s2545_s4 + $0x58] sm:$0xf] %vm1152_vm2, %v1372_v43  ;;  %v1370_v18 = vpack.c.bf16 %v852_v62, %v852_v62  ;;  %v855_v54 = vmax.f32 %v791_v46, 0.0  ;;  %v490_v44 = vadd.f32 %v1634_v5, %v2047_v33  ;;  %v2578_v52 = vunpack.c.h.bf16 %v2014_v25  ;;  %v612_v43 = vpop.f32.mrf.mxu1 }
 0x100   :  { %v789_v41 = vadd.f32 %v2577_v6, %v469_v50  ;;  %1207 = vst.msk [vmem:[%s2545_s4 + $0xd8] sm:$0xf] %vm1152_vm2, %v1404_v61  ;;  %v1402_v23 = vpack.c.bf16 %v884_v4, %v884_v4  ;;  %v887_v63 = vmax.f32 %v823_v51, 0.0  ;;  %v618_v28 = vadd.f32 %v1666_v9, %v2047_v33  ;;  %v1638_v61 = vpop.f32.mrf.mxu0 }
 0x101   :  { %v821_v11 = vadd.f32 %v2578_v52, %v597_v58  ;;  %1173 = vst.msk [vmem:[%s2545_s4 + $0x50] sm:$0xf] %vm1152_vm2, %v1370_v18  ;;  %v1373_v24 = vpack.c.bf16 %v855_v54, %v855_v54  ;;  %v2579_v45 = vunpack.c.l.bf16 %v2023_v30  ;;  %v482_v12 = vadd.f32 %v2047_v33, %v481_v14  ;;  %v1670_v5 = vpop.f32.mrf.mxu1 }
 0x102   :  { %v853_v55 = vmax.f32 %v789_v41, 0.0  ;;  %1205 = vst.msk [vmem:[%s2545_s4 + $0xd0] sm:$0xf] %vm1152_vm2, %v1402_v23  ;;  %v1405_v25 = vpack.c.bf16 %v887_v63, %v887_v63  ;;  %v2580_v3 = vunpack.c.l.bf16 %v2032_v27  ;;  %v610_v56 = vadd.f32 %v2047_v33, %v609_v20 }
 0x103   :  { %v794_v0 = vadd.f32 %v2579_v45, %v490_v44  ;;  %v885_v53 = vmax.f32 %v821_v11, 0.0  ;;  %1176 = vst.msk [vmem:[%s2545_s4 + $0x5c] sm:$0xf] %vm1152_vm2, %v1373_v24  ;;  %v2581_v47 = vunpack.c.l.bf16 %v2037_v29  ;;  %v493_v35 = vadd.f32 %v1635_v13, %v2047_v33  ;;  %v497_v44 = vpop.f32.mrf.mxu0  ;;  %v625_v11 = vpop.f32.mrf.mxu1 }
 0x104   :  { %v826_v42 = vadd.f32 %v2580_v3, %v618_v28  ;;  %v1371_v1 = vpack.c.bf16 %v853_v55, %v853_v55  ;;  %1208 = vst.msk [vmem:[%s2545_s4 + $0xdc] sm:$0xf] %vm1152_vm2, %v1405_v25  ;;  %v2582_v2 = vunpack.c.l.bf16 %v2042_v31  ;;  %v621_v38 = vadd.f32 %v1667_v57, %v2047_v33 }
 0x105   :  { %v858_v34 = vmax.f32 %v794_v0, 0.0  ;;  %v792_v21 = vadd.f32 %v2581_v47, %v482_v12  ;;  %v1403_v48 = vpack.c.bf16 %v885_v53, %v885_v53  ;;  %v2583_v15 = vunpack.c.h.bf16 %v2023_v30  ;;  %v1639_v45 = vpop.f32.mrf.mxu0  ;;  %v1671_v3 = vpop.f32.mrf.mxu1 }
 0x106   :  { %v890_v10 = vmax.f32 %v826_v42, 0.0  ;;  %v824_v7 = vadd.f32 %v2582_v2, %v610_v56  ;;  %1174 = vst.msk [vmem:[%s2545_s4 + $0x54] sm:$0xf] %vm1152_vm2, %v1371_v1  ;;  %v485_v60 = vadd.f32 %v2047_v33, %v484_v59  ;;  %v2584_v46 = vunpack.c.h.bf16 %v2032_v27 }
 0x107   :  { %v1376_v36 = vpack.c.bf16 %v858_v34, %v858_v34  ;;  %v856_v49 = vmax.f32 %v792_v21, 0.0  ;;  %v795_v39 = vadd.f32 %v2583_v15, %v493_v35  ;;  %1206 = vst.msk [vmem:[%s2545_s4 + $0xd4] sm:$0xf] %vm1152_vm2, %v1403_v48  ;;  %v613_v40 = vadd.f32 %v2047_v33, %v612_v43  ;;  %v500_v47 = vpop.f32.mrf.mxu0  ;;  %v628_v2 = vpop.f32.mrf.mxu1 }
 0x108   :  { %v1408_v62 = vpack.c.bf16 %v890_v10, %v890_v10  ;;  %v888_v37 = vmax.f32 %v824_v7, 0.0  ;;  %v827_v50 = vadd.f32 %v2584_v46, %v621_v38  ;;  %v2585_v19 = vunpack.c.h.bf16 %v2037_v29 }
 0x109   :  { %1179 = vst.msk [vmem:[%s2545_s4 + $0x68] sm:$0xf] %vm1152_vm2, %v1376_v36  ;;  %v1374_v30 = vpack.c.bf16 %v856_v49, %v856_v49  ;;  %v859_v4 = vmax.f32 %v795_v39, 0.0  ;;  %v506_v58 = vadd.f32 %v1638_v61, %v2047_v33  ;;  %v2586_v54 = vunpack.c.h.bf16 %v2042_v31 }
 0x10a   :  { %v793_v51 = vadd.f32 %v2585_v19, %v485_v60  ;;  %1211 = vst.msk [vmem:[%s2545_s4 + $0xe8] sm:$0xf] %vm1152_vm2, %v1408_v62  ;;  %v1406_v27 = vpack.c.bf16 %v888_v37, %v888_v37  ;;  %v891_v18 = vmax.f32 %v827_v50, 0.0  ;;  %v634_v41 = vadd.f32 %v1670_v5, %v2047_v33 }
 0x10b   :  { %v825_v6 = vadd.f32 %v2586_v54, %v613_v40  ;;  %1177 = vst.msk [vmem:[%s2545_s4 + $0x60] sm:$0xf] %vm1152_vm2, %v1374_v30  ;;  %v1377_v29 = vpack.c.bf16 %v859_v4, %v859_v4  ;;  %v2587_v23 = vunpack.c.l.bf16 %v2060_v16  ;;  %v498_v52 = vadd.f32 %v2047_v33, %v497_v44 }
 0x10c   :  { %v857_v9 = vmax.f32 %v793_v51, 0.0  ;;  %1209 = vst.msk [vmem:[%s2545_s4 + $0xe0] sm:$0xf] %vm1152_vm2, %v1406_v27  ;;  %v1409_v31 = vpack.c.bf16 %v891_v18, %v891_v18  ;;  %v2588_v14 = vunpack.c.l.bf16 %v2065_v32  ;;  %v626_v55 = vadd.f32 %v2047_v33, %v625_v11 }
 0x10d   :  { %v798_v63 = vadd.f32 %v2587_v23, %v506_v58  ;;  %v889_v28 = vmax.f32 %v825_v6, 0.0  ;;  %1180 = vst.msk [vmem:[%s2545_s4 + $0x6c] sm:$0xf] %vm1152_vm2, %v1377_v29  ;;  %v2589_v20 = vunpack.c.l.bf16 %v2074_v17  ;;  %v509_v53 = vadd.f32 %v1639_v45, %v2047_v33 }
 0x10e   :  { %v830_v24 = vadd.f32 %v2588_v14, %v634_v41  ;;  %v1375_v0 = vpack.c.bf16 %v857_v9, %v857_v9  ;;  %1212 = vst.msk [vmem:[%s2545_s4 + $0xec] sm:$0xf] %vm1152_vm2, %v1409_v31  ;;  %v2590_v13 = vunpack.c.l.bf16 %v2079_v22  ;;  %v637_v34 = vadd.f32 %v1671_v3, %v2047_v33 }
 0x10f   :  { %v862_v12 = vmax.f32 %v798_v63, 0.0  ;;  %v796_v25 = vadd.f32 %v2589_v20, %v498_v52  ;;  %v1407_v42 = vpack.c.bf16 %v889_v28, %v889_v28  ;;  %v2591_v57 = vunpack.c.h.bf16 %v2060_v16 }
 0x110   :  { %v894_v56 = vmax.f32 %v830_v24, 0.0  ;;  %v828_v1 = vadd.f32 %v2590_v13, %v626_v55  ;;  %1178 = vst.msk [vmem:[%s2545_s4 + $0x64] sm:$0xf] %vm1152_vm2, %v1375_v0  ;;  %v501_v10 = vadd.f32 %v2047_v33, %v500_v47  ;;  %v2592_v59 = vunpack.c.h.bf16 %v2065_v32 }
 0x111   :  { %v1380_v21 = vpack.c.bf16 %v862_v12, %v862_v12  ;;  %v860_v35 = vmax.f32 %v796_v25, 0.0  ;;  %v799_v48 = vadd.f32 %v2591_v57, %v509_v53  ;;  %1210 = vst.msk [vmem:[%s2545_s4 + $0xe4] sm:$0xf] %vm1152_vm2, %v1407_v42  ;;  %v629_v49 = vadd.f32 %v2047_v33, %v628_v2 }
 0x112   :  { %v1412_v7 = vpack.c.bf16 %v894_v56, %v894_v56  ;;  %v892_v38 = vmax.f32 %v828_v1, 0.0  ;;  %v831_v36 = vadd.f32 %v2592_v59, %v637_v34  ;;  %v797_v39 = vadd.f32 %v1473_v26, %v501_v10 }
 0x113   :  { %1183 = vst.msk [vmem:[%s2545_s4 + $0x78] sm:$0xf] %vm1152_vm2, %v1380_v21  ;;  %v1378_v16 = vpack.c.bf16 %v860_v35, %v860_v35  ;;  %v863_v15 = vmax.f32 %v799_v48, 0.0  ;;  %v829_v33 = vadd.f32 %v1537_v8, %v629_v49 }
 0x114   :  { %1215 = vst.msk [vmem:[%s2545_s4 + $0xf8] sm:$0xf] %vm1152_vm2, %v1412_v7  ;;  %v1410_v60 = vpack.c.bf16 %v892_v38, %v892_v38  ;;  %v895_v32 = vmax.f32 %v831_v36, 0.0  ;;  %v861_v62 = vmax.f32 %v797_v39, 0.0 }
 0x115   :  { %1181 = vst.msk [vmem:[%s2545_s4 + $0x70] sm:$0xf] %vm1152_vm2, %v1378_v16  ;;  %v1381_v43 = vpack.c.bf16 %v863_v15, %v863_v15  ;;  %v893_v26 = vmax.f32 %v829_v33, 0.0 }
 0x116   :  { %1213 = vst.msk [vmem:[%s2545_s4 + $0xf0] sm:$0xf] %vm1152_vm2, %v1410_v60  ;;  %v1413_v17 = vpack.c.bf16 %v895_v32, %v895_v32  ;;  %v1379_v8 = vpack.c.bf16 %v861_v62, %v861_v62 }
 0x117   :  { %1184 = vst.msk [vmem:[%s2545_s4 + $0x7c] sm:$0xf] %vm1152_vm2, %v1381_v43  ;;  %v1411_v22 = vpack.c.bf16 %v893_v26, %v893_v26 }
 0x118   :  { %1216 = vst.msk [vmem:[%s2545_s4 + $0xfc] sm:$0xf] %vm1152_vm2, %v1413_v17  ;;  %1182 = vst.msk [vmem:[%s2545_s4 + $0x74] sm:$0xf] %vm1152_vm2, %v1379_v8 }
 0x119   :  { %1214 = vst.msk [vmem:[%s2545_s4 + $0xf4] sm:$0xf] %vm1152_vm2, %v1411_v22 }

// kernel: forward.13
= control target key start
LH: loop header
LB: loop body
LE: loop exit
PB: predicated region body
PF: predicated region fallthrough
CT: control target
= control target key end

     0   :  { %s2839_s12 = smov 0   ;;  %s2841_s13 = smov 0   ;;  %s3750_s0 = inlined_call_operand.vmem [shape: bf16[2,18,18,8], index: 0, kind: input, shape index: {}]   ;;  %s3751_s1 = inlined_call_operand.vmem [shape: bf16[9,8,8], index: 1, kind: input, shape index: {}]   ;;  %s3752_s2 = inlined_call_operand.vmem [shape: f32[1,8], index: 2, kind: input, shape index: {}]   ;;  %s3753_s3 = inlined_call_operand.vmem [shape: bf16[2,16,16,8], index: 3, kind: output, shape index: {}]  }
   0x1   :  { %s2843_s14 = smov 0   ;;  %s2845_s15 = smov 0  }
   0x2   :  { %s2847_s16 = smov 0  }
   0x3 LB: > { %s22_s17 = sadd.s32 1, %s2809_s14  ;;  %s25_s18 = sadd.s32 1, %s2813_s15  ;;  %s2817_s16 = sphi %s2847_s16, %s13_s16   ;;  %s2813_s15 = sphi %s2845_s15, %s3777_s15   ;;  %s2809_s14 = sphi %s2843_s14, %s3776_s14   ;;  %s2805_s13 = sphi %s2841_s13, %s3775_s13   ;;  %s2801_s12 = sphi %s2839_s12, %s3774_s12  }
   0x4   : > { %p23_p0 = scmp.ge.s32.totalorder %s22_s17, 2  ;;  %p2308_p1 = scmp.ge.s32.totalorder %s2817_s16, 1 }
   0x5   : > { %p151_p2 = scmp.lt.s32.totalorder %s2817_s16, 5 }
   0x6   : > { %s3779_s17 = smov (%p23_p0, %s22_s17), 0  ;;  %s3781_s18 = smov (!%p23_p0, %s25_s18), %s2813_s15 }
   0x7   : > { %p152_p3 = pnand %p2308_p1, %p151_p2  ;;  %p27_p4 = scmp.ge.s32.totalorder %s3781_s18, 2 }
   0x8   : > { %p180_p5 = scmp.lt.s32.totalorder (!%p152_p3), %s2805_s13, 1  ;;  %s2456_s25 = smul.u32 (!%p152_p3), 96, %s2801_s12 }
   0x9   : > { %s3783_s18 = smov (%p27_p4, %s3781_s18), 0  ;;  %155 = sbr.rel (%p152_p3) target bundleno = 387 (0x183), region = 32 }
   0xa   : > { %s2310_s23 = sshll.u32 (!%p152_p3), %s2801_s12, 3 }
   0xb   : > { %p3633_p6 = scmp.lt.s32.totalorder (!%p152_p3), %s2310_s23, 15 }
   0xe   : > { %v231_v0 = vld [vmem:[%s3751_s1] sm:$0xf]  ;;  %vm297_vm0 = vcmask 1043456   ;;  %v2333_v2 = vld [vmem:[%s3751_s1 + $0xc] sm:$0xf]  ;;  %s3785_s13 = smov (!%p180_p5, %s2805_s13), 1 }
   0xf   : > { %2719 = vmatprep.subr.msk.bf16.mxu1 %vm297_vm0, %v231_v0  ;;  %v299_v1 = vsel %vm297_vm0, %v231_v0, 0  ;;  %2718 = vmatprep.subr.msk.bf16.mxu0 %vm297_vm0, %v231_v0  ;;  %v2343_v3 = vld [vmem:[%s3751_s1 + $0x18] sm:$0xf]  ;;  %s2728_s26 = smul.u32 216, %s3785_s13  ;;  %vm272_vm1 = vcmask 64512   ;;  %v425_v10 = vsel %vm297_vm0, %v2333_v2, 0 }
  0x10   : > { %2717 = vmatpush3.bf16.msra.mxu1 %v299_v1  ;;  %2555 = vmatpush3.bf16.msra.mxu0 %v299_v1  ;;  %v2353_v13 = vld [vmem:[%s3751_s1 + $0x4] sm:$0xf]  ;;  %v583_v18 = vsel %vm297_vm0, %v2343_v3, 0  ;;  %v2370_v19 = vld [vmem:[%s3751_s1 + $0x10] sm:$0xf]  ;;  %vm1491_vm4 = vcmask 1042432  }
  0x11   : > { %2720 = vmatprep.subr.msk.bf16.mxu1 %vm297_vm0, %v2333_v2  ;;  %2721 = vmatprep.subr.msk.bf16.mxu0 %vm297_vm0, %v2343_v3  ;;  %s184_s29 = scalar_lea.vmem %s3750_s0, %s2728_s26  ;;  %v2952_v22 = vsel %vm297_vm0, %v2353_v13, 0  ;;  %v2955_v23 = vsel %vm297_vm0, %v2370_v19, 0  ;;  %v2960_v24 = vld [vmem:[%s3751_s1 + $0x1c] sm:$0xf]  ;;  %v2965_v25 = vld [vmem:[%s3751_s1 + $0x8] sm:$0xf] }
  0x12   : > { %s2892_s30 = scalar_lea.vmem %s184_s29, %s2456_s25  ;;  %v2995_v38 = vsel %vm297_vm0, %v2960_v24, 0  ;;  %v3010_v43 = vsel %vm297_vm0, %v2965_v25, 0  ;;  %vm730_vm2 = vsmask.f32 3328  ;;  %vm731_vm3 = vsmask.f32 7440 }
  0x13   : > { %v2895_v4 = vld [vmem:[%s2892_s30 + $0x30] sm:$0xf]  ;;  %v2898_v5 = vld [vmem:[%s2892_s30 + $0x34] sm:$0xf]  ;;  %v2901_v6 = vld [vmem:[%s2892_s30 + $0x3c] sm:$0xf] }
  0x14   : > { %v2905_v7 = vcombine.low %v2895_v4, %v2898_v5  ;;  %v2908_v8 = vld [vmem:[%s2892_s30 + $0x40] sm:$0xf]  ;;  %v2921_v12 = vld [vmem:[%s2892_s30 + $0x4] sm:$0xf]  ;;  %v2931_v15 = vld [vmem:[%s2892_s30 + $0xc] sm:$0xf] }
  0x15   : > { %v2912_v9 = vcombine.low %v2901_v6, %v2908_v8  ;;  %v2916_v11 = vld [vmem:[%s2892_s30] sm:$0xf]  ;;  %v2934_v16 = vld [vmem:[%s2892_s30 + $0x10] sm:$0xf]  ;;  %v2945_v20 = vld [vmem:[%s2892_s30 + $0x48] sm:$0xf] }
  0x16   : > { %2564 = vmatprep.mubr.msk.bf16.mxu1 %vm272_vm1, %v2905_v7  ;;  %v2317_v14 = vcombine.low %v2916_v11, %v2921_v12  ;;  %v2318_v17 = vcombine.low %v2931_v15, %v2934_v16  ;;  %v2948_v21 = vld [vmem:[%s2892_s30 + $0x4c] sm:$0xf]  ;;  %v734_v26 = vshrl.u32 %v2916_v11, 16  ;;  %v737_v27 = vshll.u32 %v2916_v11, 16  ;;  %v2974_v29 = vld [vmem:[%s2892_s30 + $0x54] sm:$0xf]  ;;  %vm3128_vm6 = vmor %vm730_vm2, %vm731_vm3 }
  0x17   : > { %2565 = vmatmul.mubr.msk.bf16.vlgmr.msra.gmra.mxu1 %vm272_vm1, %v2912_v9  ;;  %v2971_v28 = vcombine.low %v2945_v20, %v2948_v21  ;;  %v2977_v30 = vld [vmem:[%s2892_s30 + $0x58] sm:$0xf]  ;;  %v743_v31 = vshll.u32 %v2921_v12, 16  ;;  %v747_v32 = vshrl.u32 %v2921_v12, 16  ;;  %v2986_v34 = vld [vmem:[%s2892_s30 + $0x1c] sm:$0xf] }
  0x18   : > { %2573 = vmatpush3.bf16.msra.mxu1 %v425_v10  ;;  %2556 = vmatprep.mubr.msk.bf16.mxu0 %vm272_vm1, %v2317_v14  ;;  %v2983_v33 = vld [vmem:[%s2892_s30 + $0x18] sm:$0xf]  ;;  %v830_v35 = vshrl.u32 %v2895_v4, 16  ;;  %v833_v36 = vshll.u32 %v2895_v4, 16  ;;  %v839_v37 = vshll.u32 %v2898_v5, 16  ;;  %v843_v39 = vshrl.u32 %v2898_v5, 16 }
  0x19   : > { %2722 = vmatprep.subr.msk.bf16.mxu1 %vm297_vm0, %v2353_v13  ;;  %2557 = vmatmul.mubr.msk.bf16.vlgmr.msra.gmra.mxu0 %vm272_vm1, %v2318_v17  ;;  %v3000_v40 = vcombine.low %v2974_v29, %v2977_v30  ;;  %v3003_v41 = vld [vmem:[%s2892_s30 + $0x24] sm:$0xf]  ;;  %v3006_v42 = vld [vmem:[%s2892_s30 + $0x28] sm:$0xf]  ;;  %v3755_v46 = vrot.slane %v2921_v12, 5  ;;  %v2319_v47 = vcombine.low %v2983_v33, %v2986_v34  ;;  %v736_v48 = vrot.slane %v734_v26, 4 }
  0x1a   : > { %2591 = vmatpush3.bf16.msra.mxu0 %v583_v18  ;;  %2568 = vmatprep.mubr.msk.bf16.mxu1 %vm272_vm1, %v2971_v28  ;;  %v739_v49 = vrot.slane %v737_v27, 5  ;;  %v3017_v50 = vrot.slane %v743_v31, 5  ;;  %v749_v51 = vrot.slane %v747_v32, 4  ;;  %v3021_v52 = vrot.slane %v830_v35, 4  ;;  %v3070_v44 = vld [vmem:[%s2892_s30 + $0x8] sm:$0x1] }
  0x1b   : > { %2723 = vmatprep.subr.msk.bf16.mxu0 %vm297_vm0, %v2370_v19  ;;  %v3023_v53 = vrot.slane %v833_v36, 5  ;;  %v3025_v54 = vrot.slane %v839_v37, 5  ;;  %2560 = vmatprep.mubr.msk.bf16.mxu0 %vm272_vm1, %v2319_v47  ;;  %v2320_v55 = vcombine.low %v3003_v41, %v3006_v42  ;;  %v3031_v56 = vrot.slane %v843_v39, 4  ;;  %v3119_v45 = vld [vmem:[%s2892_s30 + $0x64] sm:$0xf]  ;;  %s3787_s23 = smov (!%p3633_p6, %s2310_s23), 15 }
  0x1c   : > { %v854_v57 = vshrl.u32 %v2901_v6, 16  ;;  %v857_v58 = vshll.u32 %v2901_v6, 16  ;;  %v758_v59 = vshrl.u32 %v2931_v15, 16  ;;  %v867_v60 = vshrl.u32 %v2908_v8, 16  ;;  %s2311_s12 = sshll.u32 %s3787_s23, 1  ;;  %s2312_s25 = sshll.u32 %s3785_s13, 5 }
  0x1d   : > { %v761_v62 = vshll.u32 %v2931_v15, 16  ;;  %v767_v63 = vshll.u32 %v2934_v16, 16  ;;  %v740_v0 = vor.u32 %v739_v49, %v736_v48  ;;  %v750_v1 = vor.u32 %v749_v51, %v3017_v50  ;;  %s3653_s26 = sadd.s32 %s2312_s25, %s2311_s12 }
  0x1e   : > { %v3044_v2 = vrot.slane %v3755_v46, 4  ;;  %v771_v3 = vshrl.u32 %v2934_v16, 16  ;;  %v782_v10 = vshrl.u32 %v2983_v33, 16  ;;  %v785_v13 = vshll.u32 %v2983_v33, 16  ;;  %s2313_s28 = sshll.u32 %s3653_s26, 2 }
  0x1f   : > { %2569 = vmatmul.mubr.msk.bf16.gmra.mxu1 %vm272_vm1, %v3000_v40  ;;  %v791_v14 = vshll.u32 %v2986_v34, 16  ;;  %v760_v18 = vrot.slane %v758_v59, 4  ;;  %v806_v26 = vshrl.u32 %v3003_v41, 16  ;;  %v809_v27 = vshll.u32 %v3003_v41, 16  ;;  %s3672_s4 = scalar_lea.vmem %s3753_s3, %s2313_s28 }
  0x20   : > { %2574 = vmatprep.mubr.msk.bf16.mxu1 %vm272_vm1, %v2318_v17  ;;  %v795_v17 = vshrl.u32 %v2986_v34, 16  ;;  %v763_v31 = vrot.slane %v761_v62, 5  ;;  %v3055_v32 = vrot.slane %v767_v63, 5  ;;  %v3754_v35 = vrot.slane %v2934_v16, 5 }
  0x21   : > { %2561 = vmatmul.mubr.msk.bf16.gmra.mxu0 %vm272_vm1, %v2320_v55  ;;  %v819_v36 = vshrl.u32 %v3006_v42, 16  ;;  %v3059_v37 = vrot.slane %v740_v0, 4  ;;  %v3061_v39 = vrot.slane %v750_v1, 4  ;;  %v773_v48 = vrot.slane %v771_v3, 4  ;;  %v3075_v0 = vld [vmem:[%s2892_s30 + $0x14] sm:$0x1] }
  0x22   : > { %2592 = vmatprep.mubr.msk.bf16.mxu0 %vm272_vm1, %v2319_v47  ;;  %v815_v49 = vshll.u32 %v3006_v42, 16  ;;  %v784_v51 = vrot.slane %v782_v10, 4  ;;  %v787_v59 = vrot.slane %v785_v13, 5  ;;  %v3065_v62 = vrot.slane %v791_v14, 5  ;;  %v3080_v13 = vld [vmem:[%s2892_s30 + $0x20] sm:$0x1] }
  0x23   : > { %v797_v63 = vrot.slane %v795_v17, 4  ;;  %v811_v1 = vrot.slane %v809_v27, 5  ;;  %v764_v3 = vor.u32 %v763_v31, %v760_v18  ;;  %v878_v10 = vshrl.u32 %v2945_v20, 16  ;;  %v3144_v18 = vld [vmem:[%s2892_s30 + $0x44] sm:$0x1] }
  0x24   : > { %v821_v14 = vrot.slane %v819_v36, 4  ;;  %vm1492_vm5 = vcmask 1046532   ;;  %v3087_v17 = vrot.slane %v3754_v35, 4  ;;  %v788_v27 = vor.u32 %v787_v59, %v784_v51  ;;  %v3109_v59 = vld [vmem:[%s2892_s30 + $0x60] sm:$0xf] }
  0x25   : > { %v798_v31 = vor.u32 %v797_v63, %v3065_v62  ;;  %v753_v36 = vshll.u32 %v3070_v44, 16  ;;  %v765_v51 = vrot.slane %v764_v3, 4  ;;  %v836_v61 = vor.u32 %v3023_v53, %v3021_v52  ;;  %vm3175_vm7 = vmor %vm1491_vm4, %vm1492_vm5 }
  0x26   : > { %v789_v3 = vrot.slane %v788_v27, 4  ;;  %v859_v27 = vrot.slane %v857_v58, 5  ;;  %v863_v58 = vshll.u32 %v2908_v8, 16  ;;  %vm2195_vm8 = vcmask 60416  }
  0x27   : > { %2575 = vmatmul.mubr.msk.bf16.vlgmr.msra.gmra.mxu1 %vm272_vm1, %v2319_v47  ;;  %v808_v47 = vrot.slane %v806_v26, 4  ;;  %v801_v26 = vshll.u32 %v3080_v13, 16  ;;  %v837_v46 = vrot.slane %v836_v61, 4 }
  0x28   : > { %2609 = vmatpush3.bf16.msra.mxu1 %v2952_v22  ;;  %2578 = vmatprep.mubr.msk.bf16.mxu1 %vm272_vm1, %v2320_v55  ;;  %v3082_v22 = vrot.slane %v815_v49, 5  ;;  %v3103_v49 = vld [vmem:[%s2892_s30 + $0x38] sm:$0x1] }
  0x29   : > { %2724 = vmatprep.subr.msk.bf16.mxu1 %vm297_vm0, %v2960_v24  ;;  %2593 = vmatmul.mubr.msk.bf16.vlgmr.msra.gmra.mxu0 %vm272_vm1, %v2320_v55  ;;  %v774_v24 = vor.u32 %v773_v48, %v3055_v32  ;;  %v3095_v55 = vld [vmem:[%s2892_s30 + $0x2c] sm:$0x1]  ;;  %v777_v48 = vshll.u32 %v3075_v0, 16  ;;  %v812_v19 = vor.u32 %v811_v1, %v808_v47  ;;  %v846_v47 = vor.u32 %v3031_v56, %v3025_v54 }
  0x2a   : > { %2627 = vmatpush3.bf16.msra.mxu0 %v2955_v23  ;;  %2596 = vmatprep.mubr.msk.bf16.mxu0 %vm272_vm1, %v2905_v7  ;;  %v822_v63 = vor.u32 %v821_v14, %v3082_v22  ;;  %v825_v35 = vshll.u32 %v3095_v55, 16  ;;  %v849_v1 = vshll.u32 %v3103_v49, 16  ;;  %v799_v14 = vrot.slane %v798_v31, 4 }
  0x2b   : > { %2725 = vmatprep.subr.msk.bf16.mxu0 %vm297_vm0, %v2965_v25  ;;  %v775_v25 = vrot.slane %v774_v24, 4  ;;  %v755_v23 = vrot.slane %v753_v36, 5  ;;  %v779_v52 = vrot.slane %v777_v48, 5  ;;  %v813_v24 = vrot.slane %v812_v19, 4 }
  0x2c   : > { %v856_v56 = vrot.slane %v854_v57, 4  ;;  %v2334_v31 = vcombine.low %v3109_v59, %v3119_v45  ;;  %v823_v36 = vrot.slane %v822_v63, 4  ;;  %v827_v48 = vrot.slane %v825_v35, 5 }
  0x2d   : > { %v847_v57 = vrot.slane %v846_v47, 4  ;;  %v756_v61 = vsel %vm3128_vm6, %v3061_v39, %v755_v23  ;;  %v770_v35 = vsel %vm3128_vm6, %v765_v51, %v3055_v32  ;;  %v794_v63 = vsel %vm3128_vm6, %v789_v3, %v3065_v62  ;;  %v3161_v47 = vld [vmem:[%s2892_s30 + $0x6c] sm:$0xf] }
  0x2e   : > { %v780_v19 = vsel %vm3128_vm6, %v775_v25, %v779_v52  ;;  %v860_v39 = vor.u32 %v859_v27, %v856_v56  ;;  %v828_v62 = vsel %vm3128_vm6, %v823_v36, %v827_v48  ;;  %v842_v23 = vsel %vm3128_vm6, %v837_v46, %v3025_v54 }
  0x2f   : > { %2579 = vmatmul.mubr.msk.bf16.gmra.mxu1 %vm272_vm1, %v2905_v7  ;;  %v803_v7 = vrot.slane %v801_v26, 5  ;;  %v851_v26 = vrot.slane %v849_v1, 5  ;;  %v3164_v1 = vld [vmem:[%s2892_s30 + $0x70] sm:$0xf]  ;;  %v869_v51 = vrot.slane %v867_v60, 4  ;;  %v873_v25 = vshll.u32 %v3144_v18, 16 }
  0x30   : > { %2582 = vmatprep.mubr.msk.bf16.mxu1 %vm272_vm1, %v2912_v9  ;;  %v3191_v3 = vrot.slane %v863_v58, 5  ;;  %v3760_v52 = vshll.u32 %v2945_v20, 16  ;;  %v1127_v54 = vshll.u32 %v3109_v59, 16  ;;  %v1137_v60 = vshrl.u32 %v3119_v45, 16 }
  0x31   : > { %2597 = vmatmul.mubr.msk.bf16.gmra.mxu0 %vm272_vm1, %v2912_v9  ;;  %v746_v9 = vsel %vm3128_vm6, %v3059_v37, %v3017_v50  ;;  %v804_v50 = vsel %vm3128_vm6, %v799_v14, %v803_v7  ;;  %v818_v37 = vsel %vm3128_vm6, %v813_v24, %v3082_v22  ;;  %v852_v22 = vsel %vm3128_vm6, %v847_v57, %v851_v26 }
  0x32   : > { %2600 = vmatprep.mubr.msk.bf16.mxu0 %vm272_vm1, %v2971_v28  ;;  %v880_v14 = vrot.slane %v878_v10, 4  ;;  %v883_v46 = vrot.slane %v3760_v52, 5  ;;  %v3761_v7 = vrot.slane %v2921_v12, 5  ;;  %v3762_v24 = vrot.slane %v2916_v11, 9  ;;  %v3226_v11 = vld [vmem:[%s2892_s30 + $0x50] sm:$0x1] }
  0x33   : > { %v2354_v56 = vcombine.low %v746_v9, %v756_v61  ;;  %v3211_v27 = vcombine.low %v770_v35, %v780_v19  ;;  %v3213_v36 = vcombine.low %v794_v63, %v804_v50  ;;  %v3215_v48 = vrot.slane %v860_v39, 4 }
  0x34   : > { %v3209_v10 = vsel %vm3175_vm7, %v3762_v24, %v3761_v7  ;;  %v3219_v57 = vcombine.low %v818_v37, %v828_v62  ;;  %v3221_v26 = vcombine.low %v842_v23, %v852_v22  ;;  %v3223_v12 = vrot.slane %v873_v25, 5 }
  0x35   : > { %v1499_v58 = vrot.slane %v3070_v44, 5  ;;  %v870_v19 = vor.u32 %v869_v51, %v3191_v3  ;;  %v884_v9 = vor.u32 %v883_v46, %v880_v14  ;;  %v3763_v61 = vrot.slane %v2934_v16, 5 }
  0x36   : > { %v3764_v35 = vrot.slane %v2931_v15, 9  ;;  %v1506_v63 = vrot.slane %v3075_v0, 5  ;;  %v887_v50 = vshll.u32 %v2948_v21, 16  ;;  %v2392_v37 = vrot.slane %v2983_v33, 9 }
  0x37   : > { %2583 = vmatmul.mubr.msk.bf16.gmra.mxu1 %vm272_vm1, %v2971_v28  ;;  %v2344_v28 = vcombine.low %v3161_v47, %v3164_v1  ;;  %v3242_v44 = vsel %vm3175_vm7, %v3044_v2, %v1499_v58  ;;  %v1510_v39 = vrot.slane %v2986_v34, 5  ;;  %v866_v15 = vsel %vm3128_vm6, %v3215_v48, %v3191_v3 }
  0x38   : > { %2586 = vmatprep.mubr.msk.bf16.mxu1 %vm272_vm1, %v3000_v40  ;;  %v3765_v16 = vshrl.u32 %v2948_v21, 16  ;;  %v897_v0 = vshll.u32 %v3226_v11, 16  ;;  %v2399_v23 = vcombine.low %v3209_v10, %v3242_v44  ;;  %v1507_v33 = vsel %vm3175_vm7, %v3087_v17, %v1506_v63 }
  0x39   : > { %2601 = vmatmul.mubr.msk.bf16.gmra.mxu0 %vm272_vm1, %v3000_v40  ;;  %v1504_v40 = vsel %vm3175_vm7, %v3764_v35, %v3763_v61  ;;  %v1511_v34 = vsel %vm3175_vm7, %v2392_v37, %v1510_v39  ;;  %v1512_v2 = vrot.slane %v1510_v39, 4  ;;  %v1513_v51 = vrot.slane %v3080_v13, 5  ;;  %v3302_v39 = vld [vmem:[%s2892_s30 + $0x5c] sm:$0x1] }
  0x3a   : > { %2604 = vmatprep.mubr.msk.bf16.mxu0 %vm272_vm1, %v2334_v31  ;;  %v3252_v62 = vrot.slane %v3765_v16, 4  ;;  %v3766_v25 = vshrl.u32 %v2974_v29, 16  ;;  %v3268_v14 = vcombine.low %v1504_v40, %v1507_v33  ;;  %v2393_v52 = vrot.slane %v3003_v41, 9 }
  0x3b   : > { %v1517_v46 = vrot.slane %v3006_v42, 5  ;;  %v3273_v17 = vrot.slane %v870_v19, 4  ;;  %v1514_v13 = vsel %vm3175_vm7, %v1512_v2, %v1513_v51  ;;  %v3767_v7 = vrot.slane %v2898_v5, 5 }
  0x3c   : > { %v3266_v22 = vrot.slane %v3766_v25, 4  ;;  %v3768_v24 = vrot.slane %v2895_v4, 9  ;;  %v3284_v41 = vcombine.low %v1511_v34, %v1514_v13  ;;  %v2395_v35 = vrot.slane %v2901_v6, 9  ;;  %v3327_v25 = vld [vmem:[%s3751_s1 + $0x14] sm:$0xf] }
  0x3d   : > { %v1518_v42 = vsel %vm3175_vm7, %v2393_v52, %v1517_v46  ;;  %v3769_v19 = vmov %v3767_v7  ;;  %v1531_v4 = vrot.slane %v2908_v8, 5  ;;  %v1534_v40 = vrot.slane %v3144_v18, 5 }
  0x3e   : > { %v1525_v58 = vsel %vm3175_vm7, %v3768_v24, %v3767_v7  ;;  %v1526_v61 = vrot.slane %v3769_v19, 4  ;;  %v3297_v63 = vrot.slane %v884_v9, 4  ;;  %v3299_v37 = vrot.slane %v887_v50, 5 }
  0x3f   : > { %2587 = vmatmul.mubr.msk.bf16.gmra.mxu1 %vm272_vm1, %v2334_v31  ;;  %v1520_v31 = vrot.slane %v3095_v55, 5  ;;  %v1527_v55 = vrot.slane %v3103_v49, 5  ;;  %v3770_v5 = vshll.u32 %v2974_v29, 16  ;;  %v1532_v18 = vsel %vm3175_vm7, %v2395_v35, %v1531_v4 }
  0x40   : > { %2610 = vmatprep.mubr.msk.bf16.mxu1 %vm272_vm1, %v2354_v56  ;;  %v1519_v56 = vrot.slane %v1517_v46, 4  ;;  %v1533_v9 = vrot.slane %v1531_v4, 4  ;;  %v3316_v50 = vrot.slane %v897_v0, 5  ;;  %v911_v16 = vshll.u32 %v2977_v30, 16 }
  0x41   : > { %2605 = vmatmul.mubr.msk.bf16.gmra.mxu0 %vm272_vm1, %v2344_v28  ;;  %v3306_v28 = vrot.slane %v3770_v5, 5  ;;  %v1528_v8 = vsel %vm3175_vm7, %v1526_v61, %v1527_v55  ;;  %v3771_v33 = vshrl.u32 %v2977_v30, 16  ;;  %v921_v51 = vshll.u32 %v3302_v39, 16 }
  0x42   : > { %2628 = vmatprep.mubr.msk.bf16.mxu0 %vm272_vm1, %v3211_v27  ;;  %v1521_v6 = vsel %vm3175_vm7, %v1519_v56, %v1520_v31  ;;  %v3321_v2 = vcombine.low %v1525_v58, %v1528_v8  ;;  %v1535_v52 = vsel %vm3175_vm7, %v1533_v9, %v1534_v40  ;;  %v2396_v0 = vrot.slane %v2945_v20, 9 }
  0x43   : > { %v3310_v49 = vcombine.low %v1518_v42, %v1521_v6  ;;  %v917_v34 = vrot.slane %v3771_v33, 4  ;;  %v1538_v46 = vrot.slane %v2948_v21, 5  ;;  %v876_v13 = vsel %vm3128_vm6, %v3273_v17, %v3223_v12  ;;  %v3352_v21 = vld [vmem:[%s3751_s1 + $0x20] sm:$0xf]  ;;  %v227_v17 = vld [vmem:[%s2892_s30 + $0x68] sm:$0x1] }
  0x44   : > { %v894_v31 = vor.u32 %v3252_v62, %v3299_v37  ;;  %v3341_v7 = vcombine.low %v1532_v18, %v1535_v52  ;;  %v1541_v24 = vrot.slane %v3226_v11, 5  ;;  %v908_v20 = vor.u32 %v3306_v28, %v3266_v22 }
  0x45   : > { %v1540_v12 = vrot.slane %v1538_v46, 4  ;;  %v2397_v62 = vrot.slane %v2974_v29, 9  ;;  %v913_v11 = vrot.slane %v911_v16, 5  ;;  %v1545_v22 = vrot.slane %v2977_v30, 5 }
  0x46   : > { %v1548_v42 = vrot.slane %v3302_v39, 5  ;;  %v2415_v29 = vrot.slane %v3109_v59, 9  ;;  %v1751_v19 = vrot.slane %v3119_v45, 5  ;;  %v1754_v61 = vrot.slane %v227_v17, 5  ;;  %v3381_v39 = vld [vmem:[%s2892_s30 + $0x74] sm:$0x1] }
  0x47   : > { %2611 = vmatmul.mubr.msk.bf16.vlgmr.msra.gmra.mxu1 %vm272_vm1, %v3211_v27  ;;  %v1539_v27 = vsel %vm3175_vm7, %v2396_v0, %v1538_v46  ;;  %v1542_v56 = vsel %vm3175_vm7, %v1540_v12, %v1541_v24  ;;  %v1133_v30 = vshll.u32 %v3119_v45, 16  ;;  %v1546_v35 = vsel %vm3175_vm7, %v2397_v62, %v1545_v22 }
  0x48   : > { %2645 = vmatpush3.bf16.msra.mxu1 %v2995_v38  ;;  %2614 = vmatprep.mubr.msk.bf16.mxu1 %vm272_vm1, %v3213_v36  ;;  %v3772_v38 = vshrl.u32 %v3109_v59, 16  ;;  %v3374_v55 = vcombine.low %v1539_v27, %v1542_v56  ;;  %v1547_v4 = vrot.slane %v1545_v22, 4  ;;  %v895_v40 = vrot.slane %v894_v31, 4 }
  0x49   : > { %2726 = vmatprep.subr.msk.bf16.mxu1 %vm297_vm0, %v3327_v25  ;;  %2629 = vmatmul.mubr.msk.bf16.vlgmr.msra.gmra.mxu0 %vm272_vm1, %v3213_v36  ;;  %v1753_v5 = vrot.slane %v1751_v19, 4  ;;  %v2426_v28 = vrot.slane %v3161_v47, 9  ;;  %v1129_v6 = vrot.slane %v1127_v54, 5  ;;  %v1915_v18 = vrot.slane %v3164_v1, 5 }
  0x4a   : > { %v1126_v58 = vrot.slane %v3772_v38, 4  ;;  %2663 = vmatpush3.bf16.msra.mxu0 %v3010_v43  ;;  %2632 = vmatprep.mubr.msk.bf16.mxu0 %vm272_vm1, %v3219_v57  ;;  %v1752_v43 = vsel %vm3175_vm7, %v2415_v29, %v1751_v19  ;;  %v1549_v8 = vsel %vm3175_vm7, %v1547_v4, %v1548_v42  ;;  %v1918_v9 = vrot.slane %v3381_v39, 5 }
  0x4b   : > { %2727 = vmatprep.subr.msk.bf16.mxu0 %vm297_vm0, %v3352_v21  ;;  %v918_v16 = vor.u32 %v917_v34, %v913_v11  ;;  %v1139_v33 = vrot.slane %v1137_v60, 4  ;;  %v3394_v52 = vcombine.low %v1546_v35, %v1549_v8  ;;  %v1755_v0 = vsel %vm3175_vm7, %v1753_v5, %v1754_v61 }
  0x4c   : > { %v1135_v59 = vrot.slane %v1133_v30, 5  ;;  %v3400_v54 = vcombine.low %v1752_v43, %v1755_v0  ;;  %v3404_v46 = vsel %vm3175_vm7, %v2426_v28, %v1915_v18  ;;  %v1917_v31 = vrot.slane %v1915_v18, 4 }
  0x4d   : > { %v2359_v45 = vcombine.low %v866_v15, %v876_v13  ;;  %v890_v60 = vsel %vm3128_vm6, %v3297_v63, %v3299_v37  ;;  %v909_v24 = vrot.slane %v908_v20, 4  ;;  %v919_v27 = vrot.slane %v918_v16, 4 }
  0x4e   : > { %v3419_v34 = vsel %vm3175_vm7, %v1917_v31, %v1918_v9  ;;  %v923_v12 = vrot.slane %v921_v51, 5  ;;  %v900_v3 = vsel %vm3128_vm6, %v895_v40, %v3316_v50  ;;  %v1130_v48 = vor.u32 %v1129_v6, %v1126_v58 }
  0x4f   : > { %2615 = vmatmul.mubr.msk.bf16.gmra.mxu1 %vm272_vm1, %v3219_v57  ;;  %v2428_v62 = vcombine.low %v3404_v46, %v3419_v34  ;;  %v1140_v15 = vor.u32 %v1139_v33, %v1135_v59  ;;  %v1143_v32 = vshll.u32 %v227_v17, 16  ;;  %v2360_v63 = vcombine.low %v890_v60, %v900_v3 }
  0x50   : > { %2618 = vmatprep.mubr.msk.bf16.mxu1 %vm272_vm1, %v3221_v26  ;;  %v914_v37 = vsel %vm3128_vm6, %v909_v24, %v913_v11  ;;  %v924_v13 = vsel %vm3128_vm6, %v919_v27, %v923_v12  ;;  %v1131_v51 = vrot.slane %v1130_v48, 4  ;;  %v1765_v58 = vsel %vm297_vm0, %v3327_v25, 0 }
  0x51   : > { %2633 = vmatmul.mubr.msk.bf16.gmra.mxu0 %vm272_vm1, %v3221_v26  ;;  %v1141_v20 = vrot.slane %v1140_v15, 4  ;;  %v1145_v38 = vrot.slane %v1143_v32, 5  ;;  %v2361_v22 = vcombine.low %v914_v37, %v924_v13  ;;  %v1929_v42 = vsel %vm297_vm0, %v3352_v21, 0 }
  0x52   : > { %2636 = vmatprep.mubr.msk.bf16.mxu0 %vm272_vm1, %v2359_v45  ;;  %v1136_v50 = vsel %vm3128_vm6, %v1131_v51, %v1135_v59  ;;  %v1304_v56 = vshrl.u32 %v3161_v47, 16  ;;  %v1317_v29 = vshrl.u32 %v3164_v1, 16  ;;  %v1313_v10 = vshll.u32 %v3164_v1, 16 }
  0x53   : > { %v1146_v11 = vsel %vm3128_vm6, %v1141_v20, %v1145_v38 }
  0x54   : > { %v2371_v17 = vcombine.low %v1136_v50, %v1146_v11  ;;  %v1319_v25 = vrot.slane %v1317_v29, 4 }
  0x57   : > { %2619 = vmatmul.mubr.msk.bf16.gmra.mxu1 %vm272_vm1, %v2359_v45 }
  0x58   : > { %2622 = vmatprep.mubr.msk.bf16.mxu1 %vm272_vm1, %v2360_v63 }
  0x59   : > { %2637 = vmatmul.mubr.msk.bf16.gmra.mxu0 %vm272_vm1, %v2360_v63 }
  0x5a   : > { %2640 = vmatprep.mubr.msk.bf16.mxu0 %vm272_vm1, %v2361_v22 }
  0x5f   : > { %2623 = vmatmul.mubr.msk.bf16.gmra.mxu1 %vm272_vm1, %v2361_v22 }
  0x60   : > { %2646 = vmatprep.mubr.msk.bf16.mxu1 %vm272_vm1, %v3213_v36  ;;  %v1307_v36 = vshll.u32 %v3161_v47, 16 }
  0x61   : > { %2641 = vmatmul.mubr.msk.bf16.gmra.mxu0 %vm272_vm1, %v2371_v17 }
  0x62   : > { %2664 = vmatprep.mubr.msk.bf16.mxu0 %vm272_vm1, %v2399_v23  ;;  %v1309_v44 = vrot.slane %v1307_v36, 5  ;;  %v1315_v23 = vrot.slane %v1313_v10, 5 }
  0x64   : > { %v1320_v21 = vor.u32 %v1319_v25, %v1315_v23 }
  0x66   : > { %v1321_v19 = vrot.slane %v1320_v21, 4 }
  0x67   : > { %2647 = vmatmul.mubr.msk.bf16.vlgmr.msra.gmra.mxu1 %vm272_vm1, %v3219_v57  ;;  %v1306_v57 = vrot.slane %v1304_v56, 4 }
  0x68   : > { %2681 = vmatpush3.bf16.msra.mxu1 %v1765_v58  ;;  %2650 = vmatprep.mubr.msk.bf16.mxu1 %vm272_vm1, %v3221_v26  ;;  %v1323_v26 = vshll.u32 %v3381_v39, 16 }
  0x69   : > { %2665 = vmatmul.mubr.msk.bf16.vlgmr.msra.gmra.mxu0 %vm272_vm1, %v3268_v14  ;;  %v1310_v47 = vor.u32 %v1309_v44, %v1306_v57 }
  0x6a   : > { %2699 = vmatpush3.bf16.msra.mxu0 %v1929_v42  ;;  %2668 = vmatprep.mubr.msk.bf16.mxu0 %vm272_vm1, %v3284_v41  ;;  %v1325_v61 = vrot.slane %v1323_v26, 5 }
  0x6b   : > { %v1311_v1 = vrot.slane %v1310_v47, 4 }
  0x6c   : > { %v1326_v35 = vsel %vm3128_vm6, %v1321_v19, %v1325_v61 }
  0x6d   : > { %v1316_v30 = vsel %vm3128_vm6, %v1311_v1, %v1315_v23 }
  0x6e   : > { %v2381_v4 = vcombine.low %v1316_v30, %v1326_v35 }
  0x6f   : > { %2651 = vmatmul.mubr.msk.bf16.gmra.mxu1 %vm272_vm1, %v2359_v45 }
  0x70   : > { %2654 = vmatprep.mubr.msk.bf16.mxu1 %vm272_vm1, %v2360_v63 }
  0x71   : > { %2669 = vmatmul.mubr.msk.bf16.gmra.mxu0 %vm272_vm1, %v3310_v49 }
  0x72   : > { %2672 = vmatprep.mubr.msk.bf16.mxu0 %vm272_vm1, %v3321_v2 }
  0x77   : > { %2655 = vmatmul.mubr.msk.bf16.gmra.mxu1 %vm272_vm1, %v2361_v22 }
  0x78   : > { %2658 = vmatprep.mubr.msk.bf16.mxu1 %vm272_vm1, %v2371_v17 }
  0x79   : > { %2673 = vmatmul.mubr.msk.bf16.gmra.mxu0 %vm272_vm1, %v3341_v7 }
  0x7a   : > { %2676 = vmatprep.mubr.msk.bf16.mxu0 %vm272_vm1, %v3374_v55 }
  0x7f   : > { %2659 = vmatmul.mubr.msk.bf16.gmra.mxu1 %vm272_vm1, %v2381_v4 }
  0x80   : > { %2682 = vmatprep.mubr.msk.bf16.mxu1 %vm272_vm1, %v3268_v14 }
  0x81   : > { %2677 = vmatmul.mubr.msk.bf16.gmra.mxu0 %vm272_vm1, %v3394_v52 }
  0x82   : > { %2700 = vmatprep.mubr.msk.bf16.mxu0 %vm272_vm1, %v3284_v41 }
  0x87   : > { %2683 = vmatmul.mubr.msk.bf16.vlgmr.msra.gmra.mxu1 %vm272_vm1, %v3284_v41 }
  0x88   : > { %2686 = vmatprep.mubr.msk.bf16.mxu1 %vm272_vm1, %v3310_v49 }
  0x89   : > { %2701 = vmatmul.mubr.msk.bf16.vlgmr.msra.gmra.mxu0 %vm272_vm1, %v3310_v49 }
  0x8a   : > { %2704 = vmatprep.mubr.msk.bf16.mxu0 %vm272_vm1, %v3321_v2 }
  0x8f   : > { %2687 = vmatmul.mubr.msk.bf16.gmra.mxu1 %vm272_vm1, %v3321_v2 }
  0x90   : > { %2690 = vmatprep.mubr.msk.bf16.mxu1 %vm272_vm1, %v3341_v7 }
  0x91   : > { %2705 = vmatmul.mubr.msk.bf16.gmra.mxu0 %vm272_vm1, %v3341_v7 }
  0x92   : > { %2708 = vmatprep.mubr.msk.bf16.mxu0 %vm272_vm1, %v3374_v55 }
  0x97   : > { %2691 = vmatmul.mubr.msk.bf16.gmra.mxu1 %vm272_vm1, %v3374_v55 }
  0x98   : > { %2694 = vmatprep.mubr.msk.bf16.mxu1 %vm272_vm1, %v3394_v52 }
  0x99   : > { %2709 = vmatmul.mubr.msk.bf16.gmra.mxu0 %vm272_vm1, %v3394_v52 }
  0x9a   : > { %2712 = vmatprep.mubr.msk.bf16.mxu0 %vm272_vm1, %v3400_v54 }
  0x9f   : > { %2695 = vmatmul.mubr.msk.bf16.gmra.mxu1 %vm272_vm1, %v3400_v54 }
  0xa1   : > { %2713 = vmatmul.mubr.msk.bf16.gmra.mxu0 %vm272_vm1, %v2428_v62 }
  0xd7   : > { %v2566_v53 = vpop.f32.mrf.mxu1 }
  0xd8   : > { %408 = vst.msk [vmem:[#allocation2 + $0x50] sm:$0xff] %vm272_vm1, %v2566_v53 }
  0xd9   : > { %v367_v14 = vpop.f32.mrf.mxu1  ;;  %v2558_v41 = vpop.f32.mrf.mxu0 }
  0xda   : > { %406 = vst.msk [vmem:[#allocation2 + $0x40] sm:$0xff] %vm272_vm1, %v367_v14  ;;  %400 = vst.msk [vmem:[#allocation2 + $0x10] sm:$0xff] %vm272_vm1, %v2558_v41 }
  0xdb   : > { %v2567_v49 = vpop.f32.mrf.mxu1  ;;  %v335_v2 = vpop.f32.mrf.mxu0 }
  0xdc   : > { %409 = vst.msk [vmem:[#allocation2 + $0x58] sm:$0xff] %vm272_vm1, %v2567_v49  ;;  %398 = vst.msk [vmem:[#allocation2] sm:$0xff] %vm272_vm1, %v335_v2 }
  0xdd   : > { %v370_v7 = vpop.f32.mrf.mxu1  ;;  %v2559_v55 = vpop.f32.mrf.mxu0 }
  0xde   : > { %407 = vst.msk [vmem:[#allocation2 + $0x48] sm:$0xff] %vm272_vm1, %v370_v7  ;;  %401 = vst.msk [vmem:[#allocation2 + $0x18] sm:$0xff] %vm272_vm1, %v2559_v55 }
  0xdf   : > { %v338_v40 = vpop.f32.mrf.mxu0  ;;  %v2570_v39 = vpop.f32.mrf.mxu1  ;;  %v534_v47 = vld [vmem:[#allocation2 + $0x50] sm:$0xff] }
  0xe0   : > { %399 = vst.msk [vmem:[#allocation2 + $0x8] sm:$0xff] %vm272_vm1, %v338_v40  ;;  %412 = vst.msk [vmem:[#allocation2 + $0x70] sm:$0xff] %vm272_vm1, %v2570_v39 }
  0xe1   : > { %v383_v43 = vpop.f32.mrf.mxu1  ;;  %v2562_v5 = vpop.f32.mrf.mxu0  ;;  %v526_v18 = vld [vmem:[#allocation2 + $0x10] sm:$0xff]  ;;  %v532_v30 = vld [vmem:[#allocation2 + $0x40] sm:$0xff] }
  0xe2   : > { %410 = vst.msk [vmem:[#allocation2 + $0x60] sm:$0xff] %vm272_vm1, %v383_v43  ;;  %404 = vst.msk [vmem:[#allocation2 + $0x30] sm:$0xff] %vm272_vm1, %v2562_v5 }
  0xe3   : > { %v2571_v28 = vpop.f32.mrf.mxu1  ;;  %v351_v6 = vpop.f32.mrf.mxu0  ;;  %v524_v33 = vld [vmem:[#allocation2] sm:$0xff]  ;;  %v535_v49 = vld [vmem:[#allocation2 + $0x58] sm:$0xff] }
  0xe4   : > { %413 = vst.msk [vmem:[#allocation2 + $0x78] sm:$0xff] %vm272_vm1, %v2571_v28  ;;  %402 = vst.msk [vmem:[#allocation2 + $0x20] sm:$0xff] %vm272_vm1, %v351_v6 }
  0xe5   : > { %v386_v8 = vpop.f32.mrf.mxu1  ;;  %v2563_v9 = vpop.f32.mrf.mxu0  ;;  %v527_v45 = vld [vmem:[#allocation2 + $0x18] sm:$0xff]  ;;  %v533_v43 = vld [vmem:[#allocation2 + $0x48] sm:$0xff] }
  0xe6   : > { %411 = vst.msk [vmem:[#allocation2 + $0x68] sm:$0xff] %vm272_vm1, %v386_v8  ;;  %405 = vst.msk [vmem:[#allocation2 + $0x38] sm:$0xff] %vm272_vm1, %v2563_v9 }
  0xe7   : > { %v2576_v16 = vpop.f32.mrf.mxu1  ;;  %v354_v0 = vpop.f32.mrf.mxu0  ;;  %v525_v27 = vld [vmem:[#allocation2 + $0x8] sm:$0xff]  ;;  %v538_v9 = vld [vmem:[#allocation2 + $0x70] sm:$0xff] }
  0xe8   : > { %v542_v52 = vadd.f32 %v2576_v16, %v526_v18  ;;  %403 = vst.msk [vmem:[#allocation2 + $0x28] sm:$0xff] %vm272_vm1, %v354_v0 }
  0xe9   : > { %v461_v59 = vpop.f32.mrf.mxu1  ;;  %v2594_v46 = vpop.f32.mrf.mxu0  ;;  %v530_v12 = vld [vmem:[#allocation2 + $0x30] sm:$0xff] }
  0xea   : > { %558 = vst.msk [vmem:[#allocation2 + $0x10] sm:$0xff] %vm272_vm1, %v542_v52  ;;  %v540_v54 = vadd.f32 %v524_v33, %v461_v59 }
  0xeb   : > { %v2577_v31 = vpop.f32.mrf.mxu1  ;;  %v619_v34 = vpop.f32.mrf.mxu0  ;;  %v528_v15 = vld [vmem:[#allocation2 + $0x20] sm:$0xff] }
  0xec   : > { %556 = vst.msk [vmem:[#allocation2] sm:$0xff] %vm272_vm1, %v540_v54  ;;  %v543_v60 = vadd.f32 %v2577_v31, %v527_v45  ;;  %v536_v54 = vld [vmem:[#allocation2 + $0x60] sm:$0xff] }
  0xed   : > { %v464_v24 = vpop.f32.mrf.mxu1  ;;  %v2595_v3 = vpop.f32.mrf.mxu0  ;;  %v531_v11 = vld [vmem:[#allocation2 + $0x38] sm:$0xff] }
  0xee   : > { %559 = vst.msk [vmem:[#allocation2 + $0x18] sm:$0xff] %vm272_vm1, %v543_v60  ;;  %v541_v62 = vadd.f32 %v525_v27, %v464_v24  ;;  %v539_v24 = vld [vmem:[#allocation2 + $0x78] sm:$0xff] }
  0xef   : > { %v2580_v48 = vpop.f32.mrf.mxu1  ;;  %v622_v63 = vpop.f32.mrf.mxu0  ;;  %v529_v29 = vld [vmem:[#allocation2 + $0x28] sm:$0xff] }
  0xf0   : > { %557 = vst.msk [vmem:[#allocation2 + $0x8] sm:$0xff] %vm272_vm1, %v541_v62  ;;  %v546_v32 = vadd.f32 %v2580_v48, %v530_v12 }
  0xf1   : > { %v684_v37 = vld [vmem:[#allocation2 + $0x10] sm:$0xff]  ;;  %v477_v13 = vpop.f32.mrf.mxu1  ;;  %v2598_v38 = vpop.f32.mrf.mxu0 }
  0xf2   : > { %v700_v51 = vadd.f32 %v2594_v46, %v684_v37  ;;  %562 = vst.msk [vmem:[#allocation2 + $0x30] sm:$0xff] %vm272_vm1, %v546_v32  ;;  %v544_v20 = vadd.f32 %v528_v15, %v477_v13  ;;  %v537_v15 = vld [vmem:[#allocation2 + $0x68] sm:$0xff] }
  0xf3   : > { %v682_v22 = vld [vmem:[#allocation2] sm:$0xff]  ;;  %v2581_v50 = vpop.f32.mrf.mxu1  ;;  %v635_v42 = vpop.f32.mrf.mxu0 }
  0xf4   : > { %716 = vst.msk [vmem:[#allocation2 + $0x10] sm:$0xff] %vm272_vm1, %v700_v51  ;;  %v698_v17 = vadd.f32 %v682_v22, %v619_v34  ;;  %560 = vst.msk [vmem:[#allocation2 + $0x20] sm:$0xff] %vm272_vm1, %v544_v20  ;;  %v547_v58 = vadd.f32 %v2581_v50, %v531_v11 }
  0xf5   : > { %v685_v56 = vld [vmem:[#allocation2 + $0x18] sm:$0xff]  ;;  %v480_v36 = vpop.f32.mrf.mxu1  ;;  %v2599_v44 = vpop.f32.mrf.mxu0 }
  0xf6   : > { %714 = vst.msk [vmem:[#allocation2] sm:$0xff] %vm272_vm1, %v698_v17  ;;  %v701_v10 = vadd.f32 %v2595_v3, %v685_v56  ;;  %563 = vst.msk [vmem:[#allocation2 + $0x38] sm:$0xff] %vm272_vm1, %v547_v58  ;;  %v545_v57 = vadd.f32 %v529_v29, %v480_v36 }
  0xf7   : > { %v683_v23 = vld [vmem:[#allocation2 + $0x8] sm:$0xff]  ;;  %v2584_v25 = vpop.f32.mrf.mxu1  ;;  %v638_v1 = vpop.f32.mrf.mxu0 }
  0xf8   : > { %717 = vst.msk [vmem:[#allocation2 + $0x18] sm:$0xff] %vm272_vm1, %v701_v10  ;;  %v699_v21 = vadd.f32 %v683_v23, %v622_v63  ;;  %561 = vst.msk [vmem:[#allocation2 + $0x28] sm:$0xff] %vm272_vm1, %v545_v57  ;;  %v550_v26 = vadd.f32 %v2584_v25, %v534_v47 }
  0xf9   : > { %v688_v19 = vld [vmem:[#allocation2 + $0x30] sm:$0xff]  ;;  %v493_v61 = vpop.f32.mrf.mxu1  ;;  %v2602_v53 = vpop.f32.mrf.mxu0 }
  0xfa   : > { %715 = vst.msk [vmem:[#allocation2 + $0x8] sm:$0xff] %vm272_vm1, %v699_v21  ;;  %v704_v35 = vadd.f32 %v2598_v38, %v688_v19  ;;  %566 = vst.msk [vmem:[#allocation2 + $0x50] sm:$0xff] %vm272_vm1, %v550_v26  ;;  %v548_v4 = vadd.f32 %v532_v30, %v493_v61 }
  0xfb   : > { %v686_v14 = vld [vmem:[#allocation2 + $0x20] sm:$0xff]  ;;  %v2585_v41 = vpop.f32.mrf.mxu1  ;;  %v651_v55 = vpop.f32.mrf.mxu0  ;;  %v1077_v20 = vld [vmem:[#allocation2 + $0x10] sm:$0xff] }
  0xfc   : > { %720 = vst.msk [vmem:[#allocation2 + $0x30] sm:$0xff] %vm272_vm1, %v704_v35  ;;  %v702_v2 = vadd.f32 %v686_v14, %v635_v42  ;;  %564 = vst.msk [vmem:[#allocation2 + $0x40] sm:$0xff] %vm272_vm1, %v548_v4  ;;  %v551_v7 = vadd.f32 %v2585_v41, %v535_v49 }
  0xfd   : > { %v689_v40 = vld [vmem:[#allocation2 + $0x38] sm:$0xff]  ;;  %v496_v39 = vpop.f32.mrf.mxu1  ;;  %v2603_v6 = vpop.f32.mrf.mxu0  ;;  %v1075_v58 = vld [vmem:[#allocation2] sm:$0xff] }
  0xfe   : > { %718 = vst.msk [vmem:[#allocation2 + $0x20] sm:$0xff] %vm272_vm1, %v702_v2  ;;  %v705_v5 = vadd.f32 %v2599_v44, %v689_v40  ;;  %567 = vst.msk [vmem:[#allocation2 + $0x58] sm:$0xff] %vm272_vm1, %v551_v7  ;;  %v549_v28 = vadd.f32 %v533_v43, %v496_v39 }
  0xff   : > { %v687_v8 = vld [vmem:[#allocation2 + $0x28] sm:$0xff]  ;;  %v2588_v18 = vpop.f32.mrf.mxu1  ;;  %v654_v52 = vpop.f32.mrf.mxu0  ;;  %v1078_v57 = vld [vmem:[#allocation2 + $0x18] sm:$0xff] }
 0x100   : > { %721 = vst.msk [vmem:[#allocation2 + $0x38] sm:$0xff] %vm272_vm1, %v705_v5  ;;  %v703_v16 = vadd.f32 %v687_v8, %v638_v1  ;;  %565 = vst.msk [vmem:[#allocation2 + $0x48] sm:$0xff] %vm272_vm1, %v549_v28  ;;  %v554_v33 = vadd.f32 %v2588_v18, %v538_v9 }
 0x101   : > { %v692_v0 = vld [vmem:[#allocation2 + $0x50] sm:$0xff]  ;;  %v509_v59 = vpop.f32.mrf.mxu1  ;;  %v2606_v45 = vpop.f32.mrf.mxu0  ;;  %v1076_v26 = vld [vmem:[#allocation2 + $0x8] sm:$0xff] }
 0x102   : > { %719 = vst.msk [vmem:[#allocation2 + $0x28] sm:$0xff] %vm272_vm1, %v703_v16  ;;  %v708_v46 = vadd.f32 %v2602_v53, %v692_v0  ;;  %570 = vst.msk [vmem:[#allocation2 + $0x70] sm:$0xff] %vm272_vm1, %v554_v33  ;;  %v552_v31 = vadd.f32 %v536_v54, %v509_v59 }
 0x103   : > { %v690_v60 = vld [vmem:[#allocation2 + $0x40] sm:$0xff]  ;;  %v2589_v34 = vpop.f32.mrf.mxu1  ;;  %v667_v62 = vpop.f32.mrf.mxu0  ;;  %v1081_v4 = vld [vmem:[#allocation2 + $0x30] sm:$0xff] }
 0x104   : > { %724 = vst.msk [vmem:[#allocation2 + $0x50] sm:$0xff] %vm272_vm1, %v708_v46  ;;  %v706_v27 = vadd.f32 %v690_v60, %v651_v55  ;;  %568 = vst.msk [vmem:[#allocation2 + $0x60] sm:$0xff] %vm272_vm1, %v552_v31  ;;  %v555_v12 = vadd.f32 %v2589_v34, %v539_v24 }
 0x105   : > { %v693_v3 = vld [vmem:[#allocation2 + $0x58] sm:$0xff]  ;;  %v512_v48 = vpop.f32.mrf.mxu1  ;;  %v2607_v37 = vpop.f32.mrf.mxu0  ;;  %v1079_v7 = vld [vmem:[#allocation2 + $0x20] sm:$0xff] }
 0x106   : > { %722 = vst.msk [vmem:[#allocation2 + $0x40] sm:$0xff] %vm272_vm1, %v706_v27  ;;  %v709_v32 = vadd.f32 %v2603_v6, %v693_v3  ;;  %571 = vst.msk [vmem:[#allocation2 + $0x78] sm:$0xff] %vm272_vm1, %v555_v12  ;;  %v553_v63 = vadd.f32 %v537_v15, %v512_v48 }
 0x107   : > { %v691_v13 = vld [vmem:[#allocation2 + $0x48] sm:$0xff]  ;;  %v2612_v51 = vpop.f32.mrf.mxu1  ;;  %v670_v50 = vpop.f32.mrf.mxu0  ;;  %v1082_v28 = vld [vmem:[#allocation2 + $0x38] sm:$0xff] }
 0x108   : > { %725 = vst.msk [vmem:[#allocation2 + $0x58] sm:$0xff] %vm272_vm1, %v709_v32  ;;  %v707_v38 = vadd.f32 %v691_v13, %v654_v52  ;;  %569 = vst.msk [vmem:[#allocation2 + $0x68] sm:$0xff] %vm272_vm1, %v553_v63  ;;  %v1093_v22 = vadd.f32 %v2612_v51, %v1077_v20 }
 0x109   : > { %v696_v11 = vld [vmem:[#allocation2 + $0x70] sm:$0xff]  ;;  %v1012_v17 = vpop.f32.mrf.mxu1  ;;  %v2630_v36 = vpop.f32.mrf.mxu0  ;;  %v1080_v33 = vld [vmem:[#allocation2 + $0x28] sm:$0xff] }
 0x10a   : > { %723 = vst.msk [vmem:[#allocation2 + $0x48] sm:$0xff] %vm272_vm1, %v707_v38  ;;  %v712_v42 = vadd.f32 %v2606_v45, %v696_v11  ;;  %1109 = vst.msk [vmem:[#allocation2 + $0x10] sm:$0xff] %vm272_vm1, %v1093_v22  ;;  %v1091_v56 = vadd.f32 %v1075_v58, %v1012_v17 }
 0x10b   : > { %v694_v29 = vld [vmem:[#allocation2 + $0x60] sm:$0xff]  ;;  %v2613_v10 = vpop.f32.mrf.mxu1  ;;  %v1192_v25 = vpop.f32.mrf.mxu0  ;;  %v1085_v31 = vld [vmem:[#allocation2 + $0x50] sm:$0xff] }
 0x10c   : > { %728 = vst.msk [vmem:[#allocation2 + $0x70] sm:$0xff] %vm272_vm1, %v712_v42  ;;  %v710_v44 = vadd.f32 %v694_v29, %v667_v62  ;;  %1107 = vst.msk [vmem:[#allocation2] sm:$0xff] %vm272_vm1, %v1091_v56  ;;  %v1094_v23 = vadd.f32 %v2613_v10, %v1078_v57 }
 0x10d   : > { %v697_v47 = vld [vmem:[#allocation2 + $0x78] sm:$0xff]  ;;  %v1015_v21 = vpop.f32.mrf.mxu1  ;;  %v2631_v61 = vpop.f32.mrf.mxu0  ;;  %v1083_v12 = vld [vmem:[#allocation2 + $0x40] sm:$0xff] }
 0x10e   : > { %726 = vst.msk [vmem:[#allocation2 + $0x60] sm:$0xff] %vm272_vm1, %v710_v44  ;;  %v713_v1 = vadd.f32 %v2607_v37, %v697_v47  ;;  %1110 = vst.msk [vmem:[#allocation2 + $0x18] sm:$0xff] %vm272_vm1, %v1094_v23  ;;  %v1092_v19 = vadd.f32 %v1076_v26, %v1015_v21 }
 0x10f   : > { %v695_v30 = vld [vmem:[#allocation2 + $0x68] sm:$0xff]  ;;  %v2616_v35 = vpop.f32.mrf.mxu1  ;;  %v1195_v41 = vpop.f32.mrf.mxu0  ;;  %v1086_v63 = vld [vmem:[#allocation2 + $0x58] sm:$0xff] }
 0x110   : > { %729 = vst.msk [vmem:[#allocation2 + $0x78] sm:$0xff] %vm272_vm1, %v713_v1  ;;  %v711_v53 = vadd.f32 %v695_v30, %v670_v50  ;;  %1108 = vst.msk [vmem:[#allocation2 + $0x8] sm:$0xff] %vm272_vm1, %v1092_v19  ;;  %v1097_v14 = vadd.f32 %v2616_v35, %v1081_v4 }
 0x111   : > { %v1257_v49 = vld [vmem:[#allocation2 + $0x10] sm:$0xff]  ;;  %v1028_v2 = vpop.f32.mrf.mxu1  ;;  %v2634_v39 = vpop.f32.mrf.mxu0  ;;  %v1084_v22 = vld [vmem:[#allocation2 + $0x48] sm:$0xff] }
 0x112   : > { %727 = vst.msk [vmem:[#allocation2 + $0x68] sm:$0xff] %vm272_vm1, %v711_v53  ;;  %v1273_v55 = vadd.f32 %v2630_v36, %v1257_v49  ;;  %1113 = vst.msk [vmem:[#allocation2 + $0x30] sm:$0xff] %vm272_vm1, %v1097_v14  ;;  %v1095_v40 = vadd.f32 %v1079_v7, %v1028_v2 }
 0x113   : > { %v1255_v43 = vld [vmem:[#allocation2] sm:$0xff]  ;;  %v2617_v5 = vpop.f32.mrf.mxu1  ;;  %v1208_v18 = vpop.f32.mrf.mxu0  ;;  %v1089_v56 = vld [vmem:[#allocation2 + $0x70] sm:$0xff] }
 0x114   : > { %1289 = vst.msk [vmem:[#allocation2 + $0x10] sm:$0xff] %vm272_vm1, %v1273_v55  ;;  %v1271_v6 = vadd.f32 %v1255_v43, %v1192_v25  ;;  %1111 = vst.msk [vmem:[#allocation2 + $0x20] sm:$0xff] %vm272_vm1, %v1095_v40  ;;  %v1098_v8 = vadd.f32 %v2617_v5, %v1082_v28 }
 0x115   : > { %v1258_v9 = vld [vmem:[#allocation2 + $0x18] sm:$0xff]  ;;  %v1031_v16 = vpop.f32.mrf.mxu1  ;;  %v2635_v59 = vpop.f32.mrf.mxu0  ;;  %v1087_v23 = vld [vmem:[#allocation2 + $0x60] sm:$0xff] }
 0x116   : > { %1287 = vst.msk [vmem:[#allocation2] sm:$0xff] %vm272_vm1, %v1271_v6  ;;  %v1274_v52 = vadd.f32 %v2631_v61, %v1258_v9  ;;  %1114 = vst.msk [vmem:[#allocation2 + $0x38] sm:$0xff] %vm272_vm1, %v1098_v8  ;;  %v1096_v0 = vadd.f32 %v1080_v33, %v1031_v16 }
 0x117   : > { %v1256_v54 = vld [vmem:[#allocation2 + $0x8] sm:$0xff]  ;;  %v2620_v46 = vpop.f32.mrf.mxu1  ;;  %v1211_v34 = vpop.f32.mrf.mxu0  ;;  %v1090_v19 = vld [vmem:[#allocation2 + $0x78] sm:$0xff] }
 0x118   : > { %1290 = vst.msk [vmem:[#allocation2 + $0x18] sm:$0xff] %vm272_vm1, %v1274_v52  ;;  %v1272_v45 = vadd.f32 %v1256_v54, %v1195_v41  ;;  %1112 = vst.msk [vmem:[#allocation2 + $0x28] sm:$0xff] %vm272_vm1, %v1096_v0  ;;  %v1101_v60 = vadd.f32 %v2620_v46, %v1085_v31 }
 0x119   : > { %v1261_v24 = vld [vmem:[#allocation2 + $0x30] sm:$0xff]  ;;  %v1044_v27 = vpop.f32.mrf.mxu1  ;;  %v2638_v48 = vpop.f32.mrf.mxu0  ;;  %v1088_v14 = vld [vmem:[#allocation2 + $0x68] sm:$0xff] }
 0x11a   : > { %1288 = vst.msk [vmem:[#allocation2 + $0x8] sm:$0xff] %vm272_vm1, %v1272_v45  ;;  %v1277_v62 = vadd.f32 %v2634_v39, %v1261_v24  ;;  %1117 = vst.msk [vmem:[#allocation2 + $0x50] sm:$0xff] %vm272_vm1, %v1101_v60  ;;  %v1099_v3 = vadd.f32 %v1083_v12, %v1044_v27 }
 0x11b   : > { %v1259_v15 = vld [vmem:[#allocation2 + $0x20] sm:$0xff]  ;;  %v2621_v32 = vpop.f32.mrf.mxu1  ;;  %v1224_v51 = vpop.f32.mrf.mxu0  ;;  %v1437_v40 = vld [vmem:[#allocation2 + $0x10] sm:$0xff] }
 0x11c   : > { %1293 = vst.msk [vmem:[#allocation2 + $0x30] sm:$0xff] %vm272_vm1, %v1277_v62  ;;  %v1275_v37 = vadd.f32 %v1259_v15, %v1208_v18  ;;  %1115 = vst.msk [vmem:[#allocation2 + $0x40] sm:$0xff] %vm272_vm1, %v1099_v3  ;;  %v1102_v13 = vadd.f32 %v2621_v32, %v1086_v63 }
 0x11d   : > { %v1262_v20 = vld [vmem:[#allocation2 + $0x38] sm:$0xff]  ;;  %v1047_v38 = vpop.f32.mrf.mxu1  ;;  %v2639_v17 = vpop.f32.mrf.mxu0  ;;  %v1435_v8 = vld [vmem:[#allocation2] sm:$0xff] }
 0x11e   : > { %1291 = vst.msk [vmem:[#allocation2 + $0x20] sm:$0xff] %vm272_vm1, %v1275_v37  ;;  %v1278_v50 = vadd.f32 %v2635_v59, %v1262_v20  ;;  %1118 = vst.msk [vmem:[#allocation2 + $0x58] sm:$0xff] %vm272_vm1, %v1102_v13  ;;  %v1100_v11 = vadd.f32 %v1084_v22, %v1047_v38 }
 0x11f   : > { %v1260_v58 = vld [vmem:[#allocation2 + $0x28] sm:$0xff]  ;;  %v2624_v42 = vpop.f32.mrf.mxu1  ;;  %v1227_v10 = vpop.f32.mrf.mxu0  ;;  %v1438_v0 = vld [vmem:[#allocation2 + $0x18] sm:$0xff] }
 0x120   : > { %1294 = vst.msk [vmem:[#allocation2 + $0x38] sm:$0xff] %vm272_vm1, %v1278_v50  ;;  %v1276_v36 = vadd.f32 %v1260_v58, %v1211_v34  ;;  %1116 = vst.msk [vmem:[#allocation2 + $0x48] sm:$0xff] %vm272_vm1, %v1100_v11  ;;  %v1105_v29 = vadd.f32 %v2624_v42, %v1089_v56 }
 0x121   : > { %v1265_v57 = vld [vmem:[#allocation2 + $0x50] sm:$0xff]  ;;  %v1060_v44 = vpop.f32.mrf.mxu1  ;;  %v2642_v21 = vpop.f32.mrf.mxu0  ;;  %v1436_v60 = vld [vmem:[#allocation2 + $0x8] sm:$0xff] }
 0x122   : > { %1292 = vst.msk [vmem:[#allocation2 + $0x28] sm:$0xff] %vm272_vm1, %v1276_v36  ;;  %v1281_v25 = vadd.f32 %v2638_v48, %v1265_v57  ;;  %1121 = vst.msk [vmem:[#allocation2 + $0x70] sm:$0xff] %vm272_vm1, %v1105_v29  ;;  %v1103_v47 = vadd.f32 %v1087_v23, %v1060_v44 }
 0x123   : > { %v1263_v26 = vld [vmem:[#allocation2 + $0x40] sm:$0xff]  ;;  %v2625_v1 = vpop.f32.mrf.mxu1  ;;  %v1240_v35 = vpop.f32.mrf.mxu0  ;;  %v1441_v3 = vld [vmem:[#allocation2 + $0x30] sm:$0xff] }
 0x124   : > { %1297 = vst.msk [vmem:[#allocation2 + $0x50] sm:$0xff] %vm272_vm1, %v1281_v25  ;;  %v1279_v61 = vadd.f32 %v1263_v26, %v1224_v51  ;;  %1119 = vst.msk [vmem:[#allocation2 + $0x60] sm:$0xff] %vm272_vm1, %v1103_v47  ;;  %v1106_v30 = vadd.f32 %v2625_v1, %v1090_v19 }
 0x125   : > { %v1266_v4 = vld [vmem:[#allocation2 + $0x58] sm:$0xff]  ;;  %v1063_v53 = vpop.f32.mrf.mxu1  ;;  %v2643_v2 = vpop.f32.mrf.mxu0  ;;  %v1439_v13 = vld [vmem:[#allocation2 + $0x20] sm:$0xff] }
 0x126   : > { %1295 = vst.msk [vmem:[#allocation2 + $0x40] sm:$0xff] %vm272_vm1, %v1279_v61  ;;  %v1282_v41 = vadd.f32 %v2639_v17, %v1266_v4  ;;  %1122 = vst.msk [vmem:[#allocation2 + $0x78] sm:$0xff] %vm272_vm1, %v1106_v30  ;;  %v1104_v49 = vadd.f32 %v1088_v14, %v1063_v53 }
 0x127   : > { %v1264_v7 = vld [vmem:[#allocation2 + $0x48] sm:$0xff]  ;;  %v2648_v55 = vpop.f32.mrf.mxu1  ;;  %v1243_v5 = vpop.f32.mrf.mxu0  ;;  %v1442_v11 = vld [vmem:[#allocation2 + $0x38] sm:$0xff] }
 0x128   : > { %1298 = vst.msk [vmem:[#allocation2 + $0x58] sm:$0xff] %vm272_vm1, %v1282_v41  ;;  %v1280_v39 = vadd.f32 %v1264_v7, %v1227_v10  ;;  %1120 = vst.msk [vmem:[#allocation2 + $0x68] sm:$0xff] %vm272_vm1, %v1104_v49  ;;  %v1453_v43 = vadd.f32 %v2648_v55, %v1437_v40 }
 0x129   : > { %v1269_v28 = vld [vmem:[#allocation2 + $0x70] sm:$0xff]  ;;  %v1372_v6 = vpop.f32.mrf.mxu1  ;;  %v2666_v16 = vpop.f32.mrf.mxu0  ;;  %v1440_v29 = vld [vmem:[#allocation2 + $0x28] sm:$0xff] }
 0x12a   : > { %1296 = vst.msk [vmem:[#allocation2 + $0x48] sm:$0xff] %vm272_vm1, %v1280_v39  ;;  %v1285_v18 = vadd.f32 %v2642_v21, %v1269_v28  ;;  %1469 = vst.msk [vmem:[#allocation2 + $0x10] sm:$0xff] %vm272_vm1, %v1453_v43  ;;  %v1451_v9 = vadd.f32 %v1435_v8, %v1372_v6 }
 0x12b   : > { %v1267_v33 = vld [vmem:[#allocation2 + $0x60] sm:$0xff]  ;;  %v2649_v52 = vpop.f32.mrf.mxu1  ;;  %v1637_v46 = vpop.f32.mrf.mxu0  ;;  %v1445_v47 = vld [vmem:[#allocation2 + $0x50] sm:$0xff] }
 0x12c   : > { %1301 = vst.msk [vmem:[#allocation2 + $0x70] sm:$0xff] %vm272_vm1, %v1285_v18  ;;  %v1283_v59 = vadd.f32 %v1267_v33, %v1240_v35  ;;  %1467 = vst.msk [vmem:[#allocation2] sm:$0xff] %vm272_vm1, %v1451_v9  ;;  %v1454_v54 = vadd.f32 %v2649_v52, %v1438_v0 }
 0x12d   : > { %v1270_v31 = vld [vmem:[#allocation2 + $0x78] sm:$0xff]  ;;  %v1375_v45 = vpop.f32.mrf.mxu1  ;;  %v2667_v27 = vpop.f32.mrf.mxu0  ;;  %v1443_v30 = vld [vmem:[#allocation2 + $0x40] sm:$0xff] }
 0x12e   : > { %1299 = vst.msk [vmem:[#allocation2 + $0x60] sm:$0xff] %vm272_vm1, %v1283_v59  ;;  %v1286_v34 = vadd.f32 %v2643_v2, %v1270_v31  ;;  %1470 = vst.msk [vmem:[#allocation2 + $0x18] sm:$0xff] %vm272_vm1, %v1454_v54  ;;  %v1452_v24 = vadd.f32 %v1436_v60, %v1375_v45 }
 0x12f   : > { %v1268_v12 = vld [vmem:[#allocation2 + $0x68] sm:$0xff]  ;;  %v2652_v62 = vpop.f32.mrf.mxu1  ;;  %v1640_v32 = vpop.f32.mrf.mxu0  ;;  %v1446_v49 = vld [vmem:[#allocation2 + $0x58] sm:$0xff] }
 0x130   : > { %1302 = vst.msk [vmem:[#allocation2 + $0x78] sm:$0xff] %vm272_vm1, %v1286_v34  ;;  %v1284_v48 = vadd.f32 %v1268_v12, %v1243_v5  ;;  %1468 = vst.msk [vmem:[#allocation2 + $0x8] sm:$0xff] %vm272_vm1, %v1452_v24  ;;  %v1457_v15 = vadd.f32 %v2652_v62, %v1441_v3 }
 0x131   : > { %v1702_v63 = vld [vmem:[#allocation2 + $0x10] sm:$0xff]  ;;  %v1388_v37 = vpop.f32.mrf.mxu1  ;;  %v2670_v38 = vpop.f32.mrf.mxu0  ;;  %v1444_v43 = vld [vmem:[#allocation2 + $0x48] sm:$0xff] }
 0x132   : > { %1300 = vst.msk [vmem:[#allocation2 + $0x68] sm:$0xff] %vm272_vm1, %v1284_v48  ;;  %v1718_v51 = vadd.f32 %v2666_v16, %v1702_v63  ;;  %1473 = vst.msk [vmem:[#allocation2 + $0x30] sm:$0xff] %vm272_vm1, %v1457_v15  ;;  %v1455_v20 = vadd.f32 %v1439_v13, %v1388_v37 }
 0x133   : > { %v1700_v22 = vld [vmem:[#allocation2] sm:$0xff]  ;;  %v2653_v50 = vpop.f32.mrf.mxu1  ;;  %v1653_v42 = vpop.f32.mrf.mxu0  ;;  %v1449_v9 = vld [vmem:[#allocation2 + $0x70] sm:$0xff] }
 0x134   : > { %1734 = vst.msk [vmem:[#allocation2 + $0x10] sm:$0xff] %vm272_vm1, %v1718_v51  ;;  %v1716_v17 = vadd.f32 %v1700_v22, %v1637_v46  ;;  %1471 = vst.msk [vmem:[#allocation2 + $0x20] sm:$0xff] %vm272_vm1, %v1455_v20  ;;  %v1458_v58 = vadd.f32 %v2653_v50, %v1442_v11 }
 0x135   : > { %v1703_v56 = vld [vmem:[#allocation2 + $0x18] sm:$0xff]  ;;  %v1391_v36 = vpop.f32.mrf.mxu1  ;;  %v2671_v44 = vpop.f32.mrf.mxu0  ;;  %v1447_v54 = vld [vmem:[#allocation2 + $0x60] sm:$0xff] }
 0x136   : > { %1732 = vst.msk [vmem:[#allocation2] sm:$0xff] %vm272_vm1, %v1716_v17  ;;  %v1719_v10 = vadd.f32 %v2667_v27, %v1703_v56  ;;  %1474 = vst.msk [vmem:[#allocation2 + $0x38] sm:$0xff] %vm272_vm1, %v1458_v58  ;;  %v1456_v57 = vadd.f32 %v1440_v29, %v1391_v36 }
 0x137   : > { %v1701_v23 = vld [vmem:[#allocation2 + $0x8] sm:$0xff]  ;;  %v2656_v25 = vpop.f32.mrf.mxu1  ;;  %v1656_v1 = vpop.f32.mrf.mxu0  ;;  %v1450_v24 = vld [vmem:[#allocation2 + $0x78] sm:$0xff] }
 0x138   : > { %1735 = vst.msk [vmem:[#allocation2 + $0x18] sm:$0xff] %vm272_vm1, %v1719_v10  ;;  %v1717_v21 = vadd.f32 %v1701_v23, %v1640_v32  ;;  %1472 = vst.msk [vmem:[#allocation2 + $0x28] sm:$0xff] %vm272_vm1, %v1456_v57  ;;  %v1461_v26 = vadd.f32 %v2656_v25, %v1445_v47 }
 0x139   : > { %v1706_v19 = vld [vmem:[#allocation2 + $0x30] sm:$0xff]  ;;  %v1404_v61 = vpop.f32.mrf.mxu1  ;;  %v2674_v53 = vpop.f32.mrf.mxu0  ;;  %v1448_v15 = vld [vmem:[#allocation2 + $0x68] sm:$0xff] }
 0x13a   : > { %1733 = vst.msk [vmem:[#allocation2 + $0x8] sm:$0xff] %vm272_vm1, %v1717_v21  ;;  %v1722_v35 = vadd.f32 %v2670_v38, %v1706_v19  ;;  %1477 = vst.msk [vmem:[#allocation2 + $0x50] sm:$0xff] %vm272_vm1, %v1461_v26  ;;  %v1459_v4 = vadd.f32 %v1443_v30, %v1404_v61 }
 0x13b   : > { %v1704_v14 = vld [vmem:[#allocation2 + $0x20] sm:$0xff]  ;;  %v2657_v41 = vpop.f32.mrf.mxu1  ;;  %v1669_v55 = vpop.f32.mrf.mxu0  ;;  %v1866_v20 = vld [vmem:[#allocation2 + $0x10] sm:$0xff] }
 0x13c   : > { %1738 = vst.msk [vmem:[#allocation2 + $0x30] sm:$0xff] %vm272_vm1, %v1722_v35  ;;  %v1720_v2 = vadd.f32 %v1704_v14, %v1653_v42  ;;  %1475 = vst.msk [vmem:[#allocation2 + $0x40] sm:$0xff] %vm272_vm1, %v1459_v4  ;;  %v1462_v7 = vadd.f32 %v2657_v41, %v1446_v49 }
 0x13d   : > { %v1707_v40 = vld [vmem:[#allocation2 + $0x38] sm:$0xff]  ;;  %v1407_v39 = vpop.f32.mrf.mxu1  ;;  %v2675_v6 = vpop.f32.mrf.mxu0  ;;  %v1864_v58 = vld [vmem:[#allocation2] sm:$0xff] }
 0x13e   : > { %1736 = vst.msk [vmem:[#allocation2 + $0x20] sm:$0xff] %vm272_vm1, %v1720_v2  ;;  %v1723_v5 = vadd.f32 %v2671_v44, %v1707_v40  ;;  %1478 = vst.msk [vmem:[#allocation2 + $0x58] sm:$0xff] %vm272_vm1, %v1462_v7  ;;  %v1460_v28 = vadd.f32 %v1444_v43, %v1407_v39 }
 0x13f   : > { %v1705_v8 = vld [vmem:[#allocation2 + $0x28] sm:$0xff]  ;;  %v2660_v18 = vpop.f32.mrf.mxu1  ;;  %v1672_v52 = vpop.f32.mrf.mxu0  ;;  %v1867_v57 = vld [vmem:[#allocation2 + $0x18] sm:$0xff] }
 0x140   : > { %1739 = vst.msk [vmem:[#allocation2 + $0x38] sm:$0xff] %vm272_vm1, %v1723_v5  ;;  %v1721_v16 = vadd.f32 %v1705_v8, %v1656_v1  ;;  %1476 = vst.msk [vmem:[#allocation2 + $0x48] sm:$0xff] %vm272_vm1, %v1460_v28  ;;  %v1465_v33 = vadd.f32 %v2660_v18, %v1449_v9 }
 0x141   : > { %v1710_v0 = vld [vmem:[#allocation2 + $0x50] sm:$0xff]  ;;  %v1420_v59 = vpop.f32.mrf.mxu1  ;;  %v2678_v45 = vpop.f32.mrf.mxu0  ;;  %v1865_v26 = vld [vmem:[#allocation2 + $0x8] sm:$0xff] }
 0x142   : > { %1737 = vst.msk [vmem:[#allocation2 + $0x28] sm:$0xff] %vm272_vm1, %v1721_v16  ;;  %v1726_v46 = vadd.f32 %v2674_v53, %v1710_v0  ;;  %1481 = vst.msk [vmem:[#allocation2 + $0x70] sm:$0xff] %vm272_vm1, %v1465_v33  ;;  %v1463_v31 = vadd.f32 %v1447_v54, %v1420_v59 }
 0x143   : > { %v1708_v60 = vld [vmem:[#allocation2 + $0x40] sm:$0xff]  ;;  %v2661_v34 = vpop.f32.mrf.mxu1  ;;  %v1685_v62 = vpop.f32.mrf.mxu0  ;;  %v1870_v4 = vld [vmem:[#allocation2 + $0x30] sm:$0xff] }
 0x144   : > { %1742 = vst.msk [vmem:[#allocation2 + $0x50] sm:$0xff] %vm272_vm1, %v1726_v46  ;;  %v1724_v27 = vadd.f32 %v1708_v60, %v1669_v55  ;;  %1479 = vst.msk [vmem:[#allocation2 + $0x60] sm:$0xff] %vm272_vm1, %v1463_v31  ;;  %v1466_v12 = vadd.f32 %v2661_v34, %v1450_v24  ;;  %v3658_v24 = vld [vmem:[%s3752_s2] ss:$0 sm:$0xff] }
 0x145   : > { %v1711_v3 = vld [vmem:[#allocation2 + $0x58] sm:$0xff]  ;;  %v1423_v48 = vpop.f32.mrf.mxu1  ;;  %v2679_v37 = vpop.f32.mrf.mxu0  ;;  %v1868_v7 = vld [vmem:[#allocation2 + $0x20] sm:$0xff] }
 0x146   : > { %1740 = vst.msk [vmem:[#allocation2 + $0x40] sm:$0xff] %vm272_vm1, %v1724_v27  ;;  %v1727_v32 = vadd.f32 %v2675_v6, %v1711_v3  ;;  %1482 = vst.msk [vmem:[#allocation2 + $0x78] sm:$0xff] %vm272_vm1, %v1466_v12  ;;  %v1464_v63 = vadd.f32 %v1448_v15, %v1423_v48 }
 0x147   : > { %v1709_v13 = vld [vmem:[#allocation2 + $0x48] sm:$0xff]  ;;  %v2684_v51 = vpop.f32.mrf.mxu1  ;;  %v1688_v50 = vpop.f32.mrf.mxu0  ;;  %v1871_v28 = vld [vmem:[#allocation2 + $0x38] sm:$0xff] }
 0x148   : > { %1743 = vst.msk [vmem:[#allocation2 + $0x58] sm:$0xff] %vm272_vm1, %v1727_v32  ;;  %v1725_v38 = vadd.f32 %v1709_v13, %v1672_v52  ;;  %1480 = vst.msk [vmem:[#allocation2 + $0x68] sm:$0xff] %vm272_vm1, %v1464_v63  ;;  %v1882_v22 = vadd.f32 %v2684_v51, %v1866_v20 }
 0x149   : > { %v1714_v11 = vld [vmem:[#allocation2 + $0x70] sm:$0xff]  ;;  %v1801_v17 = vpop.f32.mrf.mxu1  ;;  %v2702_v36 = vpop.f32.mrf.mxu0  ;;  %v1869_v33 = vld [vmem:[#allocation2 + $0x28] sm:$0xff] }
 0x14a   : > { %1741 = vst.msk [vmem:[#allocation2 + $0x48] sm:$0xff] %vm272_vm1, %v1725_v38  ;;  %v1730_v42 = vadd.f32 %v2678_v45, %v1714_v11  ;;  %1898 = vst.msk [vmem:[#allocation2 + $0x10] sm:$0xff] %vm272_vm1, %v1882_v22  ;;  %v1880_v56 = vadd.f32 %v1864_v58, %v1801_v17 }
 0x14b   : > { %v1712_v29 = vld [vmem:[#allocation2 + $0x60] sm:$0xff]  ;;  %v2685_v10 = vpop.f32.mrf.mxu1  ;;  %v1965_v25 = vpop.f32.mrf.mxu0  ;;  %v1874_v31 = vld [vmem:[#allocation2 + $0x50] sm:$0xff] }
 0x14c   : > { %1746 = vst.msk [vmem:[#allocation2 + $0x70] sm:$0xff] %vm272_vm1, %v1730_v42  ;;  %v1728_v44 = vadd.f32 %v1712_v29, %v1685_v62  ;;  %1896 = vst.msk [vmem:[#allocation2] sm:$0xff] %vm272_vm1, %v1880_v56  ;;  %v1883_v23 = vadd.f32 %v2685_v10, %v1867_v57 }
 0x14d   : > { %v1715_v47 = vld [vmem:[#allocation2 + $0x78] sm:$0xff]  ;;  %v1804_v21 = vpop.f32.mrf.mxu1  ;;  %v2703_v61 = vpop.f32.mrf.mxu0  ;;  %v1872_v62 = vld [vmem:[#allocation2 + $0x40] sm:$0xff] }
 0x14e   : > { %1744 = vst.msk [vmem:[#allocation2 + $0x60] sm:$0xff] %vm272_vm1, %v1728_v44  ;;  %v1731_v1 = vadd.f32 %v2679_v37, %v1715_v47  ;;  %1899 = vst.msk [vmem:[#allocation2 + $0x18] sm:$0xff] %vm272_vm1, %v1883_v23  ;;  %v1881_v19 = vadd.f32 %v1865_v26, %v1804_v21 }
 0x14f   : > { %v1713_v30 = vld [vmem:[#allocation2 + $0x68] sm:$0xff]  ;;  %v2688_v35 = vpop.f32.mrf.mxu1  ;;  %v1968_v41 = vpop.f32.mrf.mxu0  ;;  %v1875_v13 = vld [vmem:[#allocation2 + $0x58] sm:$0xff] }
 0x150   : > { %1747 = vst.msk [vmem:[#allocation2 + $0x78] sm:$0xff] %vm272_vm1, %v1731_v1  ;;  %v1729_v53 = vadd.f32 %v1713_v30, %v1688_v50  ;;  %1897 = vst.msk [vmem:[#allocation2 + $0x8] sm:$0xff] %vm272_vm1, %v1881_v19  ;;  %v1886_v14 = vadd.f32 %v2688_v35, %v1870_v4 }
 0x151   : > { %v2030_v49 = vld [vmem:[#allocation2 + $0x10] sm:$0xff]  ;;  %v1817_v2 = vpop.f32.mrf.mxu1  ;;  %v2706_v39 = vpop.f32.mrf.mxu0  ;;  %v1873_v58 = vld [vmem:[#allocation2 + $0x48] sm:$0xff] }
 0x152   : > { %1745 = vst.msk [vmem:[#allocation2 + $0x68] sm:$0xff] %vm272_vm1, %v1729_v53  ;;  %v2046_v55 = vadd.f32 %v2702_v36, %v2030_v49  ;;  %1902 = vst.msk [vmem:[#allocation2 + $0x30] sm:$0xff] %vm272_vm1, %v1886_v14  ;;  %v1884_v40 = vadd.f32 %v1868_v7, %v1817_v2 }
 0x153   : > { %v2028_v43 = vld [vmem:[#allocation2] sm:$0xff]  ;;  %v2689_v5 = vpop.f32.mrf.mxu1  ;;  %v1981_v18 = vpop.f32.mrf.mxu0  ;;  %v1878_v1 = vld [vmem:[#allocation2 + $0x70] sm:$0xff] }
 0x154   : > { %2062 = vst.msk [vmem:[#allocation2 + $0x10] sm:$0xff] %vm272_vm1, %v2046_v55  ;;  %v2044_v6 = vadd.f32 %v2028_v43, %v1965_v25  ;;  %1900 = vst.msk [vmem:[#allocation2 + $0x20] sm:$0xff] %vm272_vm1, %v1884_v40  ;;  %v1887_v8 = vadd.f32 %v2689_v5, %v1871_v28 }
 0x155   : > { %v2031_v9 = vld [vmem:[#allocation2 + $0x18] sm:$0xff]  ;;  %v1820_v16 = vpop.f32.mrf.mxu1  ;;  %v2707_v59 = vpop.f32.mrf.mxu0  ;;  %v1876_v2 = vld [vmem:[#allocation2 + $0x60] sm:$0xff] }
 0x156   : > { %2060 = vst.msk [vmem:[#allocation2] sm:$0xff] %vm272_vm1, %v2044_v6  ;;  %v2047_v52 = vadd.f32 %v2703_v61, %v2031_v9  ;;  %1903 = vst.msk [vmem:[#allocation2 + $0x38] sm:$0xff] %vm272_vm1, %v1887_v8  ;;  %v1885_v0 = vadd.f32 %v1869_v33, %v1820_v16 }
 0x157   : > { %v2029_v54 = vld [vmem:[#allocation2 + $0x8] sm:$0xff]  ;;  %v2692_v46 = vpop.f32.mrf.mxu1  ;;  %v1984_v34 = vpop.f32.mrf.mxu0  ;;  %v1879_v8 = vld [vmem:[#allocation2 + $0x78] sm:$0xff] }
 0x158   : > { %2063 = vst.msk [vmem:[#allocation2 + $0x18] sm:$0xff] %vm272_vm1, %v2047_v52  ;;  %v2045_v45 = vadd.f32 %v2029_v54, %v1968_v41  ;;  %1901 = vst.msk [vmem:[#allocation2 + $0x28] sm:$0xff] %vm272_vm1, %v1885_v0  ;;  %v1890_v60 = vadd.f32 %v2692_v46, %v1874_v31 }
 0x159   : > { %v2034_v27 = vld [vmem:[#allocation2 + $0x30] sm:$0xff]  ;;  %v1833_v12 = vpop.f32.mrf.mxu1  ;;  %v2710_v15 = vpop.f32.mrf.mxu0  ;;  %v1877_v31 = vld [vmem:[#allocation2 + $0x68] sm:$0xff] }
 0x15a   : > { %2061 = vst.msk [vmem:[#allocation2 + $0x8] sm:$0xff] %vm272_vm1, %v2045_v45  ;;  %v2050_v3 = vadd.f32 %v2706_v39, %v2034_v27  ;;  %1906 = vst.msk [vmem:[#allocation2 + $0x50] sm:$0xff] %vm272_vm1, %v1890_v60  ;;  %v1888_v48 = vadd.f32 %v1872_v62, %v1833_v12 }
 0x15b   : > { %v2078_v32 = vld [vmem:[#allocation2 + $0x10] sm:$0xff]  ;;  %v2032_v63 = vld [vmem:[#allocation2 + $0x20] sm:$0xff]  ;;  %v2693_v37 = vpop.f32.mrf.mxu1  ;;  %v1997_v22 = vpop.f32.mrf.mxu0 }
 0x15c   : > { %v2101_v51 = vadd.f32 %v3658_v24, %v2078_v32  ;;  %2066 = vst.msk [vmem:[#allocation2 + $0x30] sm:$0xff] %vm272_vm1, %v2050_v3  ;;  %v2048_v20 = vadd.f32 %v2032_v63, %v1981_v18  ;;  %1904 = vst.msk [vmem:[#allocation2 + $0x40] sm:$0xff] %vm272_vm1, %v1888_v48  ;;  %v1891_v38 = vadd.f32 %v2693_v37, %v1875_v13 }
 0x15d   : > { %v2076_v50 = vld [vmem:[#allocation2] sm:$0xff]  ;;  %v2035_v11 = vld [vmem:[#allocation2 + $0x38] sm:$0xff]  ;;  %v1836_v17 = vpop.f32.mrf.mxu1  ;;  %v2711_v10 = vpop.f32.mrf.mxu0 }
 0x15e   : > { %v2117_v42 = vmax.f32 %v2101_v51, 0.0  ;;  %v2099_v56 = vadd.f32 %v3658_v24, %v2076_v50  ;;  %2064 = vst.msk [vmem:[#allocation2 + $0x20] sm:$0xff] %vm272_vm1, %v2048_v20  ;;  %v2051_v36 = vadd.f32 %v2707_v59, %v2035_v11  ;;  %1907 = vst.msk [vmem:[#allocation2 + $0x58] sm:$0xff] %vm272_vm1, %v1891_v38  ;;  %v1889_v29 = vadd.f32 %v1873_v58, %v1836_v17 }
 0x15f   : > { %v2079_v57 = vld [vmem:[#allocation2 + $0x18] sm:$0xff]  ;;  %v2033_v44 = vld [vmem:[#allocation2 + $0x28] sm:$0xff]  ;;  %v2696_v23 = vpop.f32.mrf.mxu1  ;;  %v2000_v19 = vpop.f32.mrf.mxu0 }
 0x160   : > { %v2459_v25 = vpack.c.bf16 %v2117_v42, %v2117_v42  ;;  %v2115_v47 = vmax.f32 %v2099_v56, 0.0  ;;  %v2102_v21 = vadd.f32 %v3658_v24, %v2079_v57  ;;  %2067 = vst.msk [vmem:[#allocation2 + $0x38] sm:$0xff] %vm272_vm1, %v2051_v36  ;;  %v2049_v26 = vadd.f32 %v2033_v44, %v1984_v34  ;;  %1905 = vst.msk [vmem:[#allocation2 + $0x48] sm:$0xff] %vm272_vm1, %v1889_v29 }
 0x161   : > { %v2077_v61 = vld [vmem:[#allocation2 + $0x8] sm:$0xff]  ;;  %v2038_v30 = vld [vmem:[#allocation2 + $0x50] sm:$0xff]  ;;  %v1894_v35 = vadd.f32 %v2696_v23, %v1878_v1  ;;  %v1849_v4 = vpop.f32.mrf.mxu1  ;;  %v2714_v18 = vpop.f32.mrf.mxu0 }
 0x162   : > { %2198 = vst.msk [vmem:[%s3672_s4 + $0x8] sm:$0xf] %vm2195_vm8, %v2459_v25  ;;  %v2457_v53 = vpack.c.bf16 %v2115_v47, %v2115_v47  ;;  %v2118_v14 = vmax.f32 %v2102_v21, 0.0  ;;  %v2100_v41 = vadd.f32 %v3658_v24, %v2077_v61  ;;  %v2054_v49 = vadd.f32 %v2710_v15, %v2038_v30 }
 0x163   : > { %2065 = vst.msk [vmem:[#allocation2 + $0x28] sm:$0xff] %vm272_vm1, %v2049_v26  ;;  %v2082_v7 = vld [vmem:[#allocation2 + $0x30] sm:$0xff]  ;;  %v2036_v55 = vld [vmem:[#allocation2 + $0x40] sm:$0xff]  ;;  %1910 = vst.msk [vmem:[#allocation2 + $0x70] sm:$0xff] %vm272_vm1, %v1894_v35  ;;  %v1892_v40 = vadd.f32 %v1876_v2, %v1849_v4  ;;  %v2697_v39 = vpop.f32.mrf.mxu1  ;;  %v2013_v48 = vpop.f32.mrf.mxu0 }
 0x164   : > { %2196 = vst.msk [vmem:[%s3672_s4] sm:$0xf] %vm2195_vm8, %v2457_v53  ;;  %v2460_v43 = vpack.c.bf16 %v2118_v14, %v2118_v14  ;;  %v2116_v5 = vmax.f32 %v2100_v41, 0.0  ;;  %v2105_v28 = vadd.f32 %v3658_v24, %v2082_v7  ;;  %v2052_v6 = vadd.f32 %v2036_v55, %v1997_v22 }
 0x165   : > { %2070 = vst.msk [vmem:[#allocation2 + $0x50] sm:$0xff] %vm272_vm1, %v2054_v49  ;;  %v2080_v9 = vld [vmem:[#allocation2 + $0x20] sm:$0xff]  ;;  %v2039_v16 = vld [vmem:[#allocation2 + $0x58] sm:$0xff]  ;;  %1908 = vst.msk [vmem:[#allocation2 + $0x60] sm:$0xff] %vm272_vm1, %v1892_v40  ;;  %v1895_v33 = vadd.f32 %v2697_v39, %v1879_v8  ;;  %v1852_v52 = vpop.f32.mrf.mxu1  ;;  %v2715_v17 = vpop.f32.mrf.mxu0 }
 0x166   : > { %2199 = vst.msk [vmem:[%s3672_s4 + $0xc] sm:$0xf] %vm2195_vm8, %v2460_v43  ;;  %v2458_v0 = vpack.c.bf16 %v2116_v5, %v2116_v5  ;;  %v2121_v59 = vmax.f32 %v2105_v28, 0.0  ;;  %v2103_v54 = vadd.f32 %v3658_v24, %v2080_v9  ;;  %v2055_v46 = vadd.f32 %v2711_v10, %v2039_v16 }
 0x167   : > { %2068 = vst.msk [vmem:[#allocation2 + $0x40] sm:$0xff] %vm272_vm1, %v2052_v6  ;;  %v2083_v45 = vld [vmem:[#allocation2 + $0x38] sm:$0xff]  ;;  %v2037_v60 = vld [vmem:[#allocation2 + $0x48] sm:$0xff]  ;;  %1911 = vst.msk [vmem:[#allocation2 + $0x78] sm:$0xff] %vm272_vm1, %v1895_v33  ;;  %v1893_v34 = vadd.f32 %v1877_v31, %v1852_v52  ;;  %v2016_v21 = vpop.f32.mrf.mxu0 }
 0x168   : > { %2197 = vst.msk [vmem:[%s3672_s4 + $0x4] sm:$0xf] %vm2195_vm8, %v2458_v0  ;;  %v2463_v27 = vpack.c.bf16 %v2121_v59, %v2121_v59  ;;  %v2119_v12 = vmax.f32 %v2103_v54, 0.0  ;;  %v2106_v62 = vadd.f32 %v3658_v24, %v2083_v45  ;;  %v2053_v3 = vadd.f32 %v2037_v60, %v2000_v19 }
 0x169   : > { %2071 = vst.msk [vmem:[#allocation2 + $0x58] sm:$0xff] %vm272_vm1, %v2055_v46  ;;  %1909 = vst.msk [vmem:[#allocation2 + $0x68] sm:$0xff] %vm272_vm1, %v1893_v34 }
 0x16a   : > { %v2081_v15 = vld [vmem:[#allocation2 + $0x28] sm:$0xff]  ;;  %2202 = vst.msk [vmem:[%s3672_s4 + $0x18] sm:$0xf] %vm2195_vm8, %v2463_v27  ;;  %v2461_v32 = vpack.c.bf16 %v2119_v12, %v2119_v12  ;;  %v2122_v63 = vmax.f32 %v2106_v62, 0.0  ;;  %v2042_v13 = vld [vmem:[#allocation2 + $0x70] sm:$0xff] }
 0x16b   : > { %v2104_v37 = vadd.f32 %v3658_v24, %v2081_v15  ;;  %2069 = vst.msk [vmem:[#allocation2 + $0x48] sm:$0xff] %vm272_vm1, %v2053_v3  ;;  %v2058_v20 = vadd.f32 %v2714_v18, %v2042_v13 }
 0x16c   : > { %v2086_v51 = vld [vmem:[#allocation2 + $0x50] sm:$0xff]  ;;  %2200 = vst.msk [vmem:[%s3672_s4 + $0x10] sm:$0xf] %vm2195_vm8, %v2461_v32  ;;  %v2464_v38 = vpack.c.bf16 %v2122_v63, %v2122_v63  ;;  %v2040_v11 = vld [vmem:[#allocation2 + $0x60] sm:$0xff] }
 0x16d   : > { %v2120_v22 = vmax.f32 %v2104_v37, 0.0  ;;  %v2109_v50 = vadd.f32 %v3658_v24, %v2086_v51  ;;  %2074 = vst.msk [vmem:[#allocation2 + $0x70] sm:$0xff] %vm272_vm1, %v2058_v20  ;;  %v2056_v42 = vadd.f32 %v2040_v11, %v2013_v48 }
 0x16e   : > { %v2084_v58 = vld [vmem:[#allocation2 + $0x40] sm:$0xff]  ;;  %2203 = vst.msk [vmem:[%s3672_s4 + $0x1c] sm:$0xf] %vm2195_vm8, %v2464_v38  ;;  %v2043_v10 = vld [vmem:[#allocation2 + $0x78] sm:$0xff] }
 0x16f   : > { %v2462_v56 = vpack.c.bf16 %v2120_v22, %v2120_v22  ;;  %v2125_v36 = vmax.f32 %v2109_v50, 0.0  ;;  %v2107_v29 = vadd.f32 %v3658_v24, %v2084_v58  ;;  %2072 = vst.msk [vmem:[#allocation2 + $0x60] sm:$0xff] %vm272_vm1, %v2056_v42  ;;  %v2059_v44 = vadd.f32 %v2715_v17, %v2043_v10 }
 0x170   : > { %v2087_v57 = vld [vmem:[#allocation2 + $0x58] sm:$0xff]  ;;  %v2041_v26 = vld [vmem:[#allocation2 + $0x68] sm:$0xff] }
 0x171   : > { %2201 = vst.msk [vmem:[%s3672_s4 + $0x14] sm:$0xf] %vm2195_vm8, %v2462_v56  ;;  %v2467_v23 = vpack.c.bf16 %v2125_v36, %v2125_v36  ;;  %v2123_v25 = vmax.f32 %v2107_v29, 0.0  ;;  %v2110_v47 = vadd.f32 %v3658_v24, %v2087_v57  ;;  %v2057_v19 = vadd.f32 %v2041_v26, %v2016_v21 }
 0x172   : > { %v2085_v1 = vld [vmem:[#allocation2 + $0x48] sm:$0xff]  ;;  %2075 = vst.msk [vmem:[#allocation2 + $0x78] sm:$0xff] %vm272_vm1, %v2059_v44 }
 0x173   : > { %2206 = vst.msk [vmem:[%s3672_s4 + $0x28] sm:$0xf] %vm2195_vm8, %v2467_v23  ;;  %v2465_v61 = vpack.c.bf16 %v2123_v25, %v2123_v25  ;;  %v2126_v30 = vmax.f32 %v2110_v47, 0.0  ;;  %v2108_v35 = vadd.f32 %v3658_v24, %v2085_v1 }
 0x174   : > { %2073 = vst.msk [vmem:[#allocation2 + $0x68] sm:$0xff] %vm272_vm1, %v2057_v19  ;;  %v2090_v14 = vld [vmem:[#allocation2 + $0x70] sm:$0xff] }
 0x175   : > { %2204 = vst.msk [vmem:[%s3672_s4 + $0x20] sm:$0xf] %vm2195_vm8, %v2465_v61  ;;  %v2468_v4 = vpack.c.bf16 %v2126_v30, %v2126_v30  ;;  %v2124_v53 = vmax.f32 %v2108_v35, 0.0  ;;  %v2113_v41 = vadd.f32 %v3658_v24, %v2090_v14 }
 0x176   : > { %v2088_v2 = vld [vmem:[#allocation2 + $0x60] sm:$0xff] }
 0x177   : > { %2207 = vst.msk [vmem:[%s3672_s4 + $0x2c] sm:$0xf] %vm2195_vm8, %v2468_v4  ;;  %v2466_v49 = vpack.c.bf16 %v2124_v53, %v2124_v53  ;;  %v2129_v7 = vmax.f32 %v2113_v41, 0.0  ;;  %v2111_v55 = vadd.f32 %v3658_v24, %v2088_v2 }
 0x179   : > { %2205 = vst.msk [vmem:[%s3672_s4 + $0x24] sm:$0xf] %vm2195_vm8, %v2466_v49  ;;  %v2091_v40 = vld [vmem:[#allocation2 + $0x78] sm:$0xff]  ;;  %v2471_v39 = vpack.c.bf16 %v2129_v7, %v2129_v7  ;;  %v2127_v43 = vmax.f32 %v2111_v55, 0.0 }
 0x17a   : > { %v2114_v5 = vadd.f32 %v3658_v24, %v2091_v40 }
 0x17b   : > { %v2089_v28 = vld [vmem:[#allocation2 + $0x68] sm:$0xff]  ;;  %2210 = vst.msk [vmem:[%s3672_s4 + $0x38] sm:$0xf] %vm2195_vm8, %v2471_v39  ;;  %v2469_v6 = vpack.c.bf16 %v2127_v43, %v2127_v43 }
 0x17c   : > { %v2130_v8 = vmax.f32 %v2114_v5, 0.0  ;;  %v2112_v18 = vadd.f32 %v3658_v24, %v2089_v28 }
 0x17d   : > { %2208 = vst.msk [vmem:[%s3672_s4 + $0x30] sm:$0xf] %vm2195_vm8, %v2469_v6 }
 0x17e   : > { %v2472_v9 = vpack.c.bf16 %v2130_v8, %v2130_v8  ;;  %v2128_v16 = vmax.f32 %v2112_v18, 0.0 }
 0x180   : > { %2211 = vst.msk [vmem:[%s3672_s4 + $0x3c] sm:$0xf] %vm2195_vm8, %v2472_v9  ;;  %v2470_v33 = vpack.c.bf16 %v2128_v16, %v2128_v16 }
 0x182   : > { %2209 = vst.msk [vmem:[%s3672_s4 + $0x34] sm:$0xf] %vm2195_vm8, %v2470_v33 }
 0x183 PF: > { %s13_s16 = sadd.s32 1, %s2817_s16   ;;  %s3774_s12 = smov %s2809_s14 }
 0x184   : > { %p10_p7 = scmp.ge.s32.totalorder %s13_s16, 6   ;;  %s3775_s13 = smov %s2813_s15 }
 0x185   : > { %s3776_s14 = smov %s3779_s17  ;;  %s3777_s15 = smov %s3783_s18 }
 0x186   :  { %12 = sbr.rel (!%p10_p7) target bundleno = 3 (0x3), region = 71 }

// kernel: forward.21
= control target key start
LH: loop header
LB: loop body
LE: loop exit
PB: predicated region body
PF: predicated region fallthrough
CT: control target
= control target key end

     0   :  { %vm262_vm0 = vcmask 261120   ;;  %vm968_vm1 = vcmask 125952   ;;  %s1851_s1 = inlined_call_operand.vmem [shape: bf16[32,16], index: 1, kind: input, shape index: {}]   ;;  %s1852_s0 = inlined_call_operand.vmem [shape: bf16[512,32], index: 0, kind: input, shape index: {}]   ;;  %s1853_s2 = inlined_call_operand.vmem [shape: f32[1,16], index: 2, kind: input, shape index: {}]   ;;  %s1854_s3 = inlined_call_operand.vmem [shape: bf16[512,16], index: 3, kind: output, shape index: {}]  }
   0x1   :  { %v1338_v0 = vld [vmem:[%s1851_s1 + $0x8] sm:$0xff]   ;;  %v1339_v1 = vld [vmem:[%s1851_s1] sm:$0xff]   ;;  %v1344_v6 = vld [vmem:[%s1852_s0 + $0x10] sm:$0xff]  }
   0x2   :  { %1266 = vmatprep.subr.bf16.mxu0 %v1338_v0  ;;  %1334 = vmatprep.subr.bf16.mxu1 %v1338_v0  ;;  %v1340_v2 = vld [vmem:[%s1852_s0] sm:$0xff]   ;;  %v1342_v4 = vld [vmem:[%s1852_s0 + $0x8] sm:$0xff]   ;;  %v1345_v7 = vld [vmem:[%s1852_s0 + $0x90] sm:$0xff]  }
   0x3   :  { %1267 = vmatpush3.bf16.msra.mxu0 %v1338_v0  ;;  %1336 = vmatpush3.bf16.msra.mxu1 %v1338_v0  ;;  %v1341_v3 = vld [vmem:[%s1852_s0 + $0x80] sm:$0xff]   ;;  %v1343_v5 = vld [vmem:[%s1852_s0 + $0x88] sm:$0xff]   ;;  %v1346_v8 = vld [vmem:[%s1852_s0 + $0x18] sm:$0xff]  }
   0x4   :  { %1268 = vmatprep.subr.bf16.mxu0 %v1339_v1  ;;  %1335 = vmatprep.subr.bf16.mxu1 %v1339_v1  ;;  %v1347_v9 = vld [vmem:[%s1852_s0 + $0x98] sm:$0xff]   ;;  %v1348_v10 = vld [vmem:[%s1852_s0 + $0x20] sm:$0xff]   ;;  %v1350_v12 = vld [vmem:[%s1852_s0 + $0x28] sm:$0xff]  }
   0x5   :  { %1270 = vmatprep.mubr.msk.bf16.mxu0 %vm262_vm0, %v1340_v2  ;;  %1302 = vmatprep.mubr.msk.bf16.mxu1 %vm262_vm0, %v1341_v3  ;;  %v1349_v11 = vld [vmem:[%s1852_s0 + $0xa0] sm:$0xff]   ;;  %v1351_v13 = vld [vmem:[%s1852_s0 + $0xa8] sm:$0xff]   ;;  %v1352_v14 = vld [vmem:[%s1852_s0 + $0x30] sm:$0xff]  }
   0x6   :  { %v1353_v15 = vld [vmem:[%s1852_s0 + $0xb0] sm:$0xff]   ;;  %v1354_v16 = vld [vmem:[%s1852_s0 + $0x38] sm:$0xff]   ;;  %v1356_v18 = vld [vmem:[%s1852_s0 + $0x40] sm:$0xff]  }
   0x7   :  { %1269 = vmatpush3.bf16.msra.mxu0 %v1339_v1  ;;  %1337 = vmatpush3.bf16.msra.mxu1 %v1339_v1  ;;  %v1355_v17 = vld [vmem:[%s1852_s0 + $0xb8] sm:$0xff]   ;;  %v1357_v19 = vld [vmem:[%s1852_s0 + $0xc0] sm:$0xff]   ;;  %v1358_v20 = vld [vmem:[%s1852_s0 + $0x48] sm:$0xff]  }
   0x8   :  { %v1359_v21 = vld [vmem:[%s1852_s0 + $0xc8] sm:$0xff]   ;;  %v1360_v22 = vld [vmem:[%s1852_s0 + $0x50] sm:$0xff]   ;;  %v1362_v24 = vld [vmem:[%s1852_s0 + $0x58] sm:$0xff]  }
   0x9   :  { %v1361_v23 = vld [vmem:[%s1852_s0 + $0xd0] sm:$0xff]   ;;  %v1363_v25 = vld [vmem:[%s1852_s0 + $0xd8] sm:$0xff]   ;;  %v1364_v26 = vld [vmem:[%s1852_s0 + $0x60] sm:$0xff]  }
   0xa   :  { %1271 = vmatmul.mubr.msk.bf16.vlgmr.msra.gmra.mxu0 %vm262_vm0, %v1342_v4  ;;  %1303 = vmatmul.mubr.msk.bf16.vlgmr.msra.gmra.mxu1 %vm262_vm0, %v1343_v5  ;;  %v1365_v27 = vld [vmem:[%s1852_s0 + $0xe0] sm:$0xff]   ;;  %v1366_v28 = vld [vmem:[%s1852_s0 + $0x68] sm:$0xff]   ;;  %v1368_v30 = vld [vmem:[%s1852_s0 + $0x70] sm:$0xff]  }
   0xb   :  { %1274 = vmatprep.mubr.msk.bf16.mxu0 %vm262_vm0, %v1344_v6  ;;  %1306 = vmatprep.mubr.msk.bf16.mxu1 %vm262_vm0, %v1345_v7  ;;  %v1367_v29 = vld [vmem:[%s1852_s0 + $0xe8] sm:$0xff]   ;;  %v1369_v31 = vld [vmem:[%s1852_s0 + $0xf0] sm:$0xff]   ;;  %v1370_v32 = vld [vmem:[%s1852_s0 + $0x78] sm:$0xff]  }
   0xc   :  { %v1371_v33 = vld [vmem:[%s1852_s0 + $0xf8] sm:$0xff]   ;;  %v1529_v34 = vld [vmem:[%s1853_s2] ss:$0 sm:$0xff] }
  0x12   :  { %1275 = vmatmul.mubr.msk.bf16.gmra.mxu0 %vm262_vm0, %v1346_v8  ;;  %1307 = vmatmul.mubr.msk.bf16.gmra.mxu1 %vm262_vm0, %v1347_v9 }
  0x13   :  { %1278 = vmatprep.mubr.msk.bf16.mxu0 %vm262_vm0, %v1348_v10  ;;  %1310 = vmatprep.mubr.msk.bf16.mxu1 %vm262_vm0, %v1349_v11 }
  0x1a   :  { %1279 = vmatmul.mubr.msk.bf16.gmra.mxu0 %vm262_vm0, %v1350_v12  ;;  %1311 = vmatmul.mubr.msk.bf16.gmra.mxu1 %vm262_vm0, %v1351_v13 }
  0x1b   :  { %1282 = vmatprep.mubr.msk.bf16.mxu0 %vm262_vm0, %v1352_v14  ;;  %1314 = vmatprep.mubr.msk.bf16.mxu1 %vm262_vm0, %v1353_v15 }
  0x22   :  { %1283 = vmatmul.mubr.msk.bf16.gmra.mxu0 %vm262_vm0, %v1354_v16  ;;  %1315 = vmatmul.mubr.msk.bf16.gmra.mxu1 %vm262_vm0, %v1355_v17 }
  0x23   :  { %1286 = vmatprep.mubr.msk.bf16.mxu0 %vm262_vm0, %v1356_v18  ;;  %1318 = vmatprep.mubr.msk.bf16.mxu1 %vm262_vm0, %v1357_v19 }
  0x2a   :  { %1287 = vmatmul.mubr.msk.bf16.gmra.mxu0 %vm262_vm0, %v1358_v20  ;;  %1319 = vmatmul.mubr.msk.bf16.gmra.mxu1 %vm262_vm0, %v1359_v21 }
  0x2b   :  { %1290 = vmatprep.mubr.msk.bf16.mxu0 %vm262_vm0, %v1360_v22  ;;  %1322 = vmatprep.mubr.msk.bf16.mxu1 %vm262_vm0, %v1361_v23 }
  0x32   :  { %1291 = vmatmul.mubr.msk.bf16.gmra.mxu0 %vm262_vm0, %v1362_v24  ;;  %1323 = vmatmul.mubr.msk.bf16.gmra.mxu1 %vm262_vm0, %v1363_v25 }
  0x33   :  { %1294 = vmatprep.mubr.msk.bf16.mxu0 %vm262_vm0, %v1364_v26  ;;  %1326 = vmatprep.mubr.msk.bf16.mxu1 %vm262_vm0, %v1365_v27 }
  0x3a   :  { %1295 = vmatmul.mubr.msk.bf16.gmra.mxu0 %vm262_vm0, %v1366_v28  ;;  %1327 = vmatmul.mubr.msk.bf16.gmra.mxu1 %vm262_vm0, %v1367_v29 }
  0x3b   :  { %1298 = vmatprep.mubr.msk.bf16.mxu0 %vm262_vm0, %v1368_v30  ;;  %1330 = vmatprep.mubr.msk.bf16.mxu1 %vm262_vm0, %v1369_v31 }
  0x42   :  { %1299 = vmatmul.mubr.msk.bf16.gmra.mxu0 %vm262_vm0, %v1370_v32  ;;  %1331 = vmatmul.mubr.msk.bf16.gmra.mxu1 %vm262_vm0, %v1371_v33 }
  0xca   :  { %v1272_v35 = vpop.f32.mrf.mxu0  ;;  %v1304_v36 = vpop.f32.mrf.mxu1 }
  0xcb   :  { %v402_v37 = vadd.f32 %v1272_v35, %v1529_v34  ;;  %v530_v38 = vadd.f32 %v1304_v36, %v1529_v34 }
  0xcc   :  { %v393_v39 = vpop.f32.mrf.mxu0  ;;  %v521_v40 = vpop.f32.mrf.mxu1 }
  0xcd   :  { %v650_v41 = vmax.f32 %v402_v37, 0.0  ;;  %v682_v42 = vmax.f32 %v530_v38, 0.0  ;;  %v394_v43 = vadd.f32 %v1529_v34, %v393_v39  ;;  %v522_v44 = vadd.f32 %v1529_v34, %v521_v40 }
  0xce   :  { %v1273_v45 = vpop.f32.mrf.mxu0  ;;  %v1305_v46 = vpop.f32.mrf.mxu1 }
  0xcf   :  { %v1170_v47 = vpack.c.bf16 %v650_v41, %v650_v41  ;;  %v1202_v48 = vpack.c.bf16 %v682_v42, %v682_v42  ;;  %v648_v49 = vmax.f32 %v394_v43, 0.0  ;;  %v680_v50 = vmax.f32 %v522_v44, 0.0 }
  0xd0   :  { %v405_v51 = vadd.f32 %v1273_v45, %v1529_v34  ;;  %v533_v52 = vadd.f32 %v1305_v46, %v1529_v34  ;;  %v396_v53 = vpop.f32.mrf.mxu0  ;;  %v524_v54 = vpop.f32.mrf.mxu1 }
  0xd1   :  { %971 = vst.msk [vmem:[%s1854_s3 + $0x8] sm:$0xf] %vm968_vm1, %v1170_v47  ;;  %1003 = vst.msk [vmem:[%s1854_s3 + $0x88] sm:$0xf] %vm968_vm1, %v1202_v48  ;;  %v1168_v55 = vpack.c.bf16 %v648_v49, %v648_v49  ;;  %v1200_v56 = vpack.c.bf16 %v680_v50, %v680_v50  ;;  %v397_v57 = vadd.f32 %v1529_v34, %v396_v53 }
  0xd2   :  { %v525_v58 = vadd.f32 %v1529_v34, %v524_v54  ;;  %v651_v59 = vmax.f32 %v405_v51, 0.0  ;;  %v683_v60 = vmax.f32 %v533_v52, 0.0  ;;  %v1276_v61 = vpop.f32.mrf.mxu0  ;;  %v1308_v62 = vpop.f32.mrf.mxu1 }
  0xd3   :  { %969 = vst.msk [vmem:[%s1854_s3] sm:$0xf] %vm968_vm1, %v1168_v55  ;;  %1001 = vst.msk [vmem:[%s1854_s3 + $0x80] sm:$0xf] %vm968_vm1, %v1200_v56  ;;  %v649_v63 = vmax.f32 %v397_v57, 0.0  ;;  %v418_v1 = vadd.f32 %v1276_v61, %v1529_v34  ;;  %v546_v2 = vadd.f32 %v1308_v62, %v1529_v34 }
  0xd4   :  { %v681_v0 = vmax.f32 %v525_v58, 0.0  ;;  %v1171_v3 = vpack.c.bf16 %v651_v59, %v651_v59  ;;  %v1203_v4 = vpack.c.bf16 %v683_v60, %v683_v60  ;;  %v409_v5 = vpop.f32.mrf.mxu0  ;;  %v537_v6 = vpop.f32.mrf.mxu1 }
  0xd5   :  { %v1169_v7 = vpack.c.bf16 %v649_v63, %v649_v63  ;;  %v654_v9 = vmax.f32 %v418_v1, 0.0  ;;  %v686_v10 = vmax.f32 %v546_v2, 0.0  ;;  %v410_v11 = vadd.f32 %v1529_v34, %v409_v5 }
  0xd6   :  { %v1201_v8 = vpack.c.bf16 %v681_v0, %v681_v0  ;;  %972 = vst.msk [vmem:[%s1854_s3 + $0xc] sm:$0xf] %vm968_vm1, %v1171_v3  ;;  %1004 = vst.msk [vmem:[%s1854_s3 + $0x8c] sm:$0xf] %vm968_vm1, %v1203_v4  ;;  %v538_v12 = vadd.f32 %v1529_v34, %v537_v6  ;;  %v1277_v13 = vpop.f32.mrf.mxu0  ;;  %v1309_v14 = vpop.f32.mrf.mxu1 }
  0xd7   :  { %970 = vst.msk [vmem:[%s1854_s3 + $0x4] sm:$0xf] %vm968_vm1, %v1169_v7  ;;  %v1174_v15 = vpack.c.bf16 %v654_v9, %v654_v9  ;;  %v1206_v16 = vpack.c.bf16 %v686_v10, %v686_v10  ;;  %v421_v17 = vadd.f32 %v1277_v13, %v1529_v34  ;;  %v549_v18 = vadd.f32 %v1309_v14, %v1529_v34 }
  0xd8   :  { %1002 = vst.msk [vmem:[%s1854_s3 + $0x84] sm:$0xf] %vm968_vm1, %v1201_v8  ;;  %v652_v19 = vmax.f32 %v410_v11, 0.0  ;;  %v684_v20 = vmax.f32 %v538_v12, 0.0  ;;  %v412_v21 = vpop.f32.mrf.mxu0  ;;  %v540_v22 = vpop.f32.mrf.mxu1 }
  0xd9   :  { %975 = vst.msk [vmem:[%s1854_s3 + $0x18] sm:$0xf] %vm968_vm1, %v1174_v15  ;;  %1007 = vst.msk [vmem:[%s1854_s3 + $0x98] sm:$0xf] %vm968_vm1, %v1206_v16  ;;  %v655_v23 = vmax.f32 %v421_v17, 0.0  ;;  %v687_v24 = vmax.f32 %v549_v18, 0.0  ;;  %v413_v25 = vadd.f32 %v1529_v34, %v412_v21  ;;  %v541_v26 = vadd.f32 %v1529_v34, %v540_v22 }
  0xda   :  { %v1172_v27 = vpack.c.bf16 %v652_v19, %v652_v19  ;;  %v1204_v28 = vpack.c.bf16 %v684_v20, %v684_v20  ;;  %v1280_v29 = vpop.f32.mrf.mxu0  ;;  %v1312_v30 = vpop.f32.mrf.mxu1 }
  0xdb   :  { %v1175_v31 = vpack.c.bf16 %v655_v23, %v655_v23  ;;  %v1207_v32 = vpack.c.bf16 %v687_v24, %v687_v24  ;;  %v653_v33 = vmax.f32 %v413_v25, 0.0  ;;  %v685_v35 = vmax.f32 %v541_v26, 0.0 }
  0xdc   :  { %973 = vst.msk [vmem:[%s1854_s3 + $0x10] sm:$0xf] %vm968_vm1, %v1172_v27  ;;  %1005 = vst.msk [vmem:[%s1854_s3 + $0x90] sm:$0xf] %vm968_vm1, %v1204_v28  ;;  %v434_v36 = vadd.f32 %v1280_v29, %v1529_v34  ;;  %v562_v37 = vadd.f32 %v1312_v30, %v1529_v34  ;;  %v425_v38 = vpop.f32.mrf.mxu0  ;;  %v553_v39 = vpop.f32.mrf.mxu1 }
  0xdd   :  { %976 = vst.msk [vmem:[%s1854_s3 + $0x1c] sm:$0xf] %vm968_vm1, %v1175_v31  ;;  %1008 = vst.msk [vmem:[%s1854_s3 + $0x9c] sm:$0xf] %vm968_vm1, %v1207_v32  ;;  %v1173_v40 = vpack.c.bf16 %v653_v33, %v653_v33  ;;  %v1205_v41 = vpack.c.bf16 %v685_v35, %v685_v35  ;;  %v426_v42 = vadd.f32 %v1529_v34, %v425_v38 }
  0xde   :  { %v554_v43 = vadd.f32 %v1529_v34, %v553_v39  ;;  %v658_v44 = vmax.f32 %v434_v36, 0.0  ;;  %v690_v45 = vmax.f32 %v562_v37, 0.0  ;;  %v1281_v46 = vpop.f32.mrf.mxu0  ;;  %v1313_v47 = vpop.f32.mrf.mxu1 }
  0xdf   :  { %974 = vst.msk [vmem:[%s1854_s3 + $0x14] sm:$0xf] %vm968_vm1, %v1173_v40  ;;  %1006 = vst.msk [vmem:[%s1854_s3 + $0x94] sm:$0xf] %vm968_vm1, %v1205_v41  ;;  %v656_v48 = vmax.f32 %v426_v42, 0.0  ;;  %v437_v50 = vadd.f32 %v1281_v46, %v1529_v34  ;;  %v565_v51 = vadd.f32 %v1313_v47, %v1529_v34 }
  0xe0   :  { %v688_v49 = vmax.f32 %v554_v43, 0.0  ;;  %v1178_v52 = vpack.c.bf16 %v658_v44, %v658_v44  ;;  %v1210_v53 = vpack.c.bf16 %v690_v45, %v690_v45  ;;  %v428_v54 = vpop.f32.mrf.mxu0  ;;  %v556_v55 = vpop.f32.mrf.mxu1 }
  0xe1   :  { %v1176_v56 = vpack.c.bf16 %v656_v48, %v656_v48  ;;  %v659_v58 = vmax.f32 %v437_v50, 0.0  ;;  %v691_v59 = vmax.f32 %v565_v51, 0.0  ;;  %v429_v60 = vadd.f32 %v1529_v34, %v428_v54 }
  0xe2   :  { %v1208_v57 = vpack.c.bf16 %v688_v49, %v688_v49  ;;  %979 = vst.msk [vmem:[%s1854_s3 + $0x28] sm:$0xf] %vm968_vm1, %v1178_v52  ;;  %1011 = vst.msk [vmem:[%s1854_s3 + $0xa8] sm:$0xf] %vm968_vm1, %v1210_v53  ;;  %v557_v61 = vadd.f32 %v1529_v34, %v556_v55  ;;  %v1284_v62 = vpop.f32.mrf.mxu0  ;;  %v1316_v63 = vpop.f32.mrf.mxu1 }
  0xe3   :  { %977 = vst.msk [vmem:[%s1854_s3 + $0x20] sm:$0xf] %vm968_vm1, %v1176_v56  ;;  %v1179_v0 = vpack.c.bf16 %v659_v58, %v659_v58  ;;  %v1211_v1 = vpack.c.bf16 %v691_v59, %v691_v59  ;;  %v450_v2 = vadd.f32 %v1284_v62, %v1529_v34  ;;  %v578_v3 = vadd.f32 %v1316_v63, %v1529_v34 }
  0xe4   :  { %1009 = vst.msk [vmem:[%s1854_s3 + $0xa0] sm:$0xf] %vm968_vm1, %v1208_v57  ;;  %v657_v4 = vmax.f32 %v429_v60, 0.0  ;;  %v689_v5 = vmax.f32 %v557_v61, 0.0  ;;  %v441_v6 = vpop.f32.mrf.mxu0  ;;  %v569_v7 = vpop.f32.mrf.mxu1 }
  0xe5   :  { %980 = vst.msk [vmem:[%s1854_s3 + $0x2c] sm:$0xf] %vm968_vm1, %v1179_v0  ;;  %1012 = vst.msk [vmem:[%s1854_s3 + $0xac] sm:$0xf] %vm968_vm1, %v1211_v1  ;;  %v662_v8 = vmax.f32 %v450_v2, 0.0  ;;  %v694_v9 = vmax.f32 %v578_v3, 0.0  ;;  %v442_v10 = vadd.f32 %v1529_v34, %v441_v6  ;;  %v570_v11 = vadd.f32 %v1529_v34, %v569_v7 }
  0xe6   :  { %v1177_v12 = vpack.c.bf16 %v657_v4, %v657_v4  ;;  %v1209_v13 = vpack.c.bf16 %v689_v5, %v689_v5  ;;  %v1285_v14 = vpop.f32.mrf.mxu0  ;;  %v1317_v15 = vpop.f32.mrf.mxu1 }
  0xe7   :  { %v1182_v16 = vpack.c.bf16 %v662_v8, %v662_v8  ;;  %v1214_v17 = vpack.c.bf16 %v694_v9, %v694_v9  ;;  %v660_v18 = vmax.f32 %v442_v10, 0.0  ;;  %v692_v19 = vmax.f32 %v570_v11, 0.0 }
  0xe8   :  { %978 = vst.msk [vmem:[%s1854_s3 + $0x24] sm:$0xf] %vm968_vm1, %v1177_v12  ;;  %1010 = vst.msk [vmem:[%s1854_s3 + $0xa4] sm:$0xf] %vm968_vm1, %v1209_v13  ;;  %v453_v20 = vadd.f32 %v1285_v14, %v1529_v34  ;;  %v581_v21 = vadd.f32 %v1317_v15, %v1529_v34  ;;  %v444_v22 = vpop.f32.mrf.mxu0  ;;  %v572_v23 = vpop.f32.mrf.mxu1 }
  0xe9   :  { %983 = vst.msk [vmem:[%s1854_s3 + $0x38] sm:$0xf] %vm968_vm1, %v1182_v16  ;;  %1015 = vst.msk [vmem:[%s1854_s3 + $0xb8] sm:$0xf] %vm968_vm1, %v1214_v17  ;;  %v1180_v24 = vpack.c.bf16 %v660_v18, %v660_v18  ;;  %v1212_v25 = vpack.c.bf16 %v692_v19, %v692_v19  ;;  %v445_v26 = vadd.f32 %v1529_v34, %v444_v22 }
  0xea   :  { %v573_v27 = vadd.f32 %v1529_v34, %v572_v23  ;;  %v663_v28 = vmax.f32 %v453_v20, 0.0  ;;  %v695_v29 = vmax.f32 %v581_v21, 0.0  ;;  %v1288_v30 = vpop.f32.mrf.mxu0  ;;  %v1320_v31 = vpop.f32.mrf.mxu1 }
  0xeb   :  { %981 = vst.msk [vmem:[%s1854_s3 + $0x30] sm:$0xf] %vm968_vm1, %v1180_v24  ;;  %1013 = vst.msk [vmem:[%s1854_s3 + $0xb0] sm:$0xf] %vm968_vm1, %v1212_v25  ;;  %v661_v32 = vmax.f32 %v445_v26, 0.0  ;;  %v466_v35 = vadd.f32 %v1288_v30, %v1529_v34  ;;  %v594_v36 = vadd.f32 %v1320_v31, %v1529_v34 }
  0xec   :  { %v693_v33 = vmax.f32 %v573_v27, 0.0  ;;  %v1183_v37 = vpack.c.bf16 %v663_v28, %v663_v28  ;;  %v1215_v38 = vpack.c.bf16 %v695_v29, %v695_v29  ;;  %v457_v39 = vpop.f32.mrf.mxu0  ;;  %v585_v40 = vpop.f32.mrf.mxu1 }
  0xed   :  { %v1181_v41 = vpack.c.bf16 %v661_v32, %v661_v32  ;;  %v666_v43 = vmax.f32 %v466_v35, 0.0  ;;  %v698_v44 = vmax.f32 %v594_v36, 0.0  ;;  %v458_v45 = vadd.f32 %v1529_v34, %v457_v39 }
  0xee   :  { %v1213_v42 = vpack.c.bf16 %v693_v33, %v693_v33  ;;  %984 = vst.msk [vmem:[%s1854_s3 + $0x3c] sm:$0xf] %vm968_vm1, %v1183_v37  ;;  %1016 = vst.msk [vmem:[%s1854_s3 + $0xbc] sm:$0xf] %vm968_vm1, %v1215_v38  ;;  %v586_v46 = vadd.f32 %v1529_v34, %v585_v40  ;;  %v1289_v47 = vpop.f32.mrf.mxu0  ;;  %v1321_v48 = vpop.f32.mrf.mxu1 }
  0xef   :  { %982 = vst.msk [vmem:[%s1854_s3 + $0x34] sm:$0xf] %vm968_vm1, %v1181_v41  ;;  %v1186_v49 = vpack.c.bf16 %v666_v43, %v666_v43  ;;  %v1218_v50 = vpack.c.bf16 %v698_v44, %v698_v44  ;;  %v469_v51 = vadd.f32 %v1289_v47, %v1529_v34  ;;  %v597_v52 = vadd.f32 %v1321_v48, %v1529_v34 }
  0xf0   :  { %1014 = vst.msk [vmem:[%s1854_s3 + $0xb4] sm:$0xf] %vm968_vm1, %v1213_v42  ;;  %v664_v53 = vmax.f32 %v458_v45, 0.0  ;;  %v696_v54 = vmax.f32 %v586_v46, 0.0  ;;  %v460_v55 = vpop.f32.mrf.mxu0  ;;  %v588_v56 = vpop.f32.mrf.mxu1 }
  0xf1   :  { %987 = vst.msk [vmem:[%s1854_s3 + $0x48] sm:$0xf] %vm968_vm1, %v1186_v49  ;;  %1019 = vst.msk [vmem:[%s1854_s3 + $0xc8] sm:$0xf] %vm968_vm1, %v1218_v50  ;;  %v667_v57 = vmax.f32 %v469_v51, 0.0  ;;  %v699_v58 = vmax.f32 %v597_v52, 0.0  ;;  %v461_v59 = vadd.f32 %v1529_v34, %v460_v55  ;;  %v589_v60 = vadd.f32 %v1529_v34, %v588_v56 }
  0xf2   :  { %v1184_v61 = vpack.c.bf16 %v664_v53, %v664_v53  ;;  %v1216_v62 = vpack.c.bf16 %v696_v54, %v696_v54  ;;  %v1292_v63 = vpop.f32.mrf.mxu0  ;;  %v1324_v0 = vpop.f32.mrf.mxu1 }
  0xf3   :  { %v1187_v1 = vpack.c.bf16 %v667_v57, %v667_v57  ;;  %v1219_v2 = vpack.c.bf16 %v699_v58, %v699_v58  ;;  %v665_v3 = vmax.f32 %v461_v59, 0.0  ;;  %v697_v4 = vmax.f32 %v589_v60, 0.0 }
  0xf4   :  { %985 = vst.msk [vmem:[%s1854_s3 + $0x40] sm:$0xf] %vm968_vm1, %v1184_v61  ;;  %1017 = vst.msk [vmem:[%s1854_s3 + $0xc0] sm:$0xf] %vm968_vm1, %v1216_v62  ;;  %v482_v5 = vadd.f32 %v1292_v63, %v1529_v34  ;;  %v610_v6 = vadd.f32 %v1324_v0, %v1529_v34  ;;  %v473_v7 = vpop.f32.mrf.mxu0  ;;  %v601_v8 = vpop.f32.mrf.mxu1 }
  0xf5   :  { %988 = vst.msk [vmem:[%s1854_s3 + $0x4c] sm:$0xf] %vm968_vm1, %v1187_v1  ;;  %1020 = vst.msk [vmem:[%s1854_s3 + $0xcc] sm:$0xf] %vm968_vm1, %v1219_v2  ;;  %v1185_v9 = vpack.c.bf16 %v665_v3, %v665_v3  ;;  %v1217_v10 = vpack.c.bf16 %v697_v4, %v697_v4  ;;  %v474_v11 = vadd.f32 %v1529_v34, %v473_v7 }
  0xf6   :  { %v602_v12 = vadd.f32 %v1529_v34, %v601_v8  ;;  %v670_v13 = vmax.f32 %v482_v5, 0.0  ;;  %v702_v14 = vmax.f32 %v610_v6, 0.0  ;;  %v1293_v15 = vpop.f32.mrf.mxu0  ;;  %v1325_v16 = vpop.f32.mrf.mxu1 }
  0xf7   :  { %986 = vst.msk [vmem:[%s1854_s3 + $0x44] sm:$0xf] %vm968_vm1, %v1185_v9  ;;  %1018 = vst.msk [vmem:[%s1854_s3 + $0xc4] sm:$0xf] %vm968_vm1, %v1217_v10  ;;  %v668_v17 = vmax.f32 %v474_v11, 0.0  ;;  %v485_v19 = vadd.f32 %v1293_v15, %v1529_v34  ;;  %v613_v20 = vadd.f32 %v1325_v16, %v1529_v34 }
  0xf8   :  { %v700_v18 = vmax.f32 %v602_v12, 0.0  ;;  %v1190_v21 = vpack.c.bf16 %v670_v13, %v670_v13  ;;  %v1222_v22 = vpack.c.bf16 %v702_v14, %v702_v14  ;;  %v476_v23 = vpop.f32.mrf.mxu0  ;;  %v604_v24 = vpop.f32.mrf.mxu1 }
  0xf9   :  { %v1188_v25 = vpack.c.bf16 %v668_v17, %v668_v17  ;;  %v671_v27 = vmax.f32 %v485_v19, 0.0  ;;  %v703_v28 = vmax.f32 %v613_v20, 0.0  ;;  %v477_v29 = vadd.f32 %v1529_v34, %v476_v23 }
  0xfa   :  { %v1220_v26 = vpack.c.bf16 %v700_v18, %v700_v18  ;;  %991 = vst.msk [vmem:[%s1854_s3 + $0x58] sm:$0xf] %vm968_vm1, %v1190_v21  ;;  %1023 = vst.msk [vmem:[%s1854_s3 + $0xd8] sm:$0xf] %vm968_vm1, %v1222_v22  ;;  %v605_v30 = vadd.f32 %v1529_v34, %v604_v24  ;;  %v1296_v31 = vpop.f32.mrf.mxu0  ;;  %v1328_v32 = vpop.f32.mrf.mxu1 }
  0xfb   :  { %989 = vst.msk [vmem:[%s1854_s3 + $0x50] sm:$0xf] %vm968_vm1, %v1188_v25  ;;  %v1191_v33 = vpack.c.bf16 %v671_v27, %v671_v27  ;;  %v1223_v35 = vpack.c.bf16 %v703_v28, %v703_v28  ;;  %v498_v36 = vadd.f32 %v1296_v31, %v1529_v34  ;;  %v626_v37 = vadd.f32 %v1328_v32, %v1529_v34 }
  0xfc   :  { %1021 = vst.msk [vmem:[%s1854_s3 + $0xd0] sm:$0xf] %vm968_vm1, %v1220_v26  ;;  %v669_v38 = vmax.f32 %v477_v29, 0.0  ;;  %v701_v39 = vmax.f32 %v605_v30, 0.0  ;;  %v489_v40 = vpop.f32.mrf.mxu0  ;;  %v617_v41 = vpop.f32.mrf.mxu1 }
  0xfd   :  { %992 = vst.msk [vmem:[%s1854_s3 + $0x5c] sm:$0xf] %vm968_vm1, %v1191_v33  ;;  %1024 = vst.msk [vmem:[%s1854_s3 + $0xdc] sm:$0xf] %vm968_vm1, %v1223_v35  ;;  %v674_v42 = vmax.f32 %v498_v36, 0.0  ;;  %v706_v43 = vmax.f32 %v626_v37, 0.0  ;;  %v490_v44 = vadd.f32 %v1529_v34, %v489_v40  ;;  %v618_v45 = vadd.f32 %v1529_v34, %v617_v41 }
  0xfe   :  { %v1189_v46 = vpack.c.bf16 %v669_v38, %v669_v38  ;;  %v1221_v47 = vpack.c.bf16 %v701_v39, %v701_v39  ;;  %v1297_v48 = vpop.f32.mrf.mxu0  ;;  %v1329_v49 = vpop.f32.mrf.mxu1 }
  0xff   :  { %v1194_v50 = vpack.c.bf16 %v674_v42, %v674_v42  ;;  %v1226_v51 = vpack.c.bf16 %v706_v43, %v706_v43  ;;  %v672_v52 = vmax.f32 %v490_v44, 0.0  ;;  %v704_v53 = vmax.f32 %v618_v45, 0.0 }
 0x100   :  { %990 = vst.msk [vmem:[%s1854_s3 + $0x54] sm:$0xf] %vm968_vm1, %v1189_v46  ;;  %1022 = vst.msk [vmem:[%s1854_s3 + $0xd4] sm:$0xf] %vm968_vm1, %v1221_v47  ;;  %v501_v54 = vadd.f32 %v1297_v48, %v1529_v34  ;;  %v629_v55 = vadd.f32 %v1329_v49, %v1529_v34  ;;  %v492_v56 = vpop.f32.mrf.mxu0  ;;  %v620_v57 = vpop.f32.mrf.mxu1 }
 0x101   :  { %995 = vst.msk [vmem:[%s1854_s3 + $0x68] sm:$0xf] %vm968_vm1, %v1194_v50  ;;  %1027 = vst.msk [vmem:[%s1854_s3 + $0xe8] sm:$0xf] %vm968_vm1, %v1226_v51  ;;  %v1192_v58 = vpack.c.bf16 %v672_v52, %v672_v52  ;;  %v1224_v59 = vpack.c.bf16 %v704_v53, %v704_v53  ;;  %v493_v60 = vadd.f32 %v1529_v34, %v492_v56 }
 0x102   :  { %v621_v61 = vadd.f32 %v1529_v34, %v620_v57  ;;  %v675_v62 = vmax.f32 %v501_v54, 0.0  ;;  %v707_v63 = vmax.f32 %v629_v55, 0.0  ;;  %v1300_v0 = vpop.f32.mrf.mxu0  ;;  %v1332_v1 = vpop.f32.mrf.mxu1 }
 0x103   :  { %993 = vst.msk [vmem:[%s1854_s3 + $0x60] sm:$0xf] %vm968_vm1, %v1192_v58  ;;  %1025 = vst.msk [vmem:[%s1854_s3 + $0xe0] sm:$0xf] %vm968_vm1, %v1224_v59  ;;  %v673_v2 = vmax.f32 %v493_v60, 0.0  ;;  %v514_v4 = vadd.f32 %v1300_v0, %v1529_v34  ;;  %v642_v5 = vadd.f32 %v1332_v1, %v1529_v34 }
 0x104   :  { %v705_v3 = vmax.f32 %v621_v61, 0.0  ;;  %v1195_v6 = vpack.c.bf16 %v675_v62, %v675_v62  ;;  %v1227_v7 = vpack.c.bf16 %v707_v63, %v707_v63  ;;  %v505_v8 = vpop.f32.mrf.mxu0  ;;  %v633_v9 = vpop.f32.mrf.mxu1 }
 0x105   :  { %v1193_v10 = vpack.c.bf16 %v673_v2, %v673_v2  ;;  %v678_v12 = vmax.f32 %v514_v4, 0.0  ;;  %v710_v13 = vmax.f32 %v642_v5, 0.0  ;;  %v506_v14 = vadd.f32 %v1529_v34, %v505_v8 }
 0x106   :  { %v1225_v11 = vpack.c.bf16 %v705_v3, %v705_v3  ;;  %996 = vst.msk [vmem:[%s1854_s3 + $0x6c] sm:$0xf] %vm968_vm1, %v1195_v6  ;;  %1028 = vst.msk [vmem:[%s1854_s3 + $0xec] sm:$0xf] %vm968_vm1, %v1227_v7  ;;  %v634_v15 = vadd.f32 %v1529_v34, %v633_v9  ;;  %v1301_v16 = vpop.f32.mrf.mxu0  ;;  %v1333_v17 = vpop.f32.mrf.mxu1 }
 0x107   :  { %994 = vst.msk [vmem:[%s1854_s3 + $0x64] sm:$0xf] %vm968_vm1, %v1193_v10  ;;  %v1198_v18 = vpack.c.bf16 %v678_v12, %v678_v12  ;;  %v1230_v19 = vpack.c.bf16 %v710_v13, %v710_v13  ;;  %v517_v20 = vadd.f32 %v1301_v16, %v1529_v34  ;;  %v645_v21 = vadd.f32 %v1333_v17, %v1529_v34 }
 0x108   :  { %1026 = vst.msk [vmem:[%s1854_s3 + $0xe4] sm:$0xf] %vm968_vm1, %v1225_v11  ;;  %v676_v22 = vmax.f32 %v506_v14, 0.0  ;;  %v708_v23 = vmax.f32 %v634_v15, 0.0  ;;  %v508_v24 = vpop.f32.mrf.mxu0  ;;  %v636_v25 = vpop.f32.mrf.mxu1 }
 0x109   :  { %999 = vst.msk [vmem:[%s1854_s3 + $0x78] sm:$0xf] %vm968_vm1, %v1198_v18  ;;  %1031 = vst.msk [vmem:[%s1854_s3 + $0xf8] sm:$0xf] %vm968_vm1, %v1230_v19  ;;  %v679_v26 = vmax.f32 %v517_v20, 0.0  ;;  %v711_v27 = vmax.f32 %v645_v21, 0.0  ;;  %v509_v28 = vadd.f32 %v1529_v34, %v508_v24  ;;  %v637_v29 = vadd.f32 %v1529_v34, %v636_v25 }
 0x10a   :  { %v1196_v30 = vpack.c.bf16 %v676_v22, %v676_v22  ;;  %v1228_v31 = vpack.c.bf16 %v708_v23, %v708_v23 }
 0x10b   :  { %v1199_v32 = vpack.c.bf16 %v679_v26, %v679_v26  ;;  %v1231_v33 = vpack.c.bf16 %v711_v27, %v711_v27  ;;  %v677_v35 = vmax.f32 %v509_v28, 0.0  ;;  %v709_v36 = vmax.f32 %v637_v29, 0.0 }
 0x10c   :  { %997 = vst.msk [vmem:[%s1854_s3 + $0x70] sm:$0xf] %vm968_vm1, %v1196_v30  ;;  %1029 = vst.msk [vmem:[%s1854_s3 + $0xf0] sm:$0xf] %vm968_vm1, %v1228_v31 }
 0x10d   :  { %1000 = vst.msk [vmem:[%s1854_s3 + $0x7c] sm:$0xf] %vm968_vm1, %v1199_v32  ;;  %1032 = vst.msk [vmem:[%s1854_s3 + $0xfc] sm:$0xf] %vm968_vm1, %v1231_v33  ;;  %v1197_v34 = vpack.c.bf16 %v677_v35, %v677_v35  ;;  %v1229_v37 = vpack.c.bf16 %v709_v36, %v709_v36 }
 0x10f   :  { %998 = vst.msk [vmem:[%s1854_s3 + $0x74] sm:$0xf] %vm968_vm1, %v1197_v34  ;;  %1030 = vst.msk [vmem:[%s1854_s3 + $0xf4] sm:$0xf] %vm968_vm1, %v1229_v37 }

// kernel: forward.23
= control target key start
LH: loop header
LB: loop body
LE: loop exit
PB: predicated region body
PF: predicated region fallthrough
CT: control target
= control target key end

     0   :  { %v143_v1 = vmov 0.0   ;;  %vm144_vm0 = vmmov 0   ;;  %s181_s0 = inlined_call_operand.vmem [shape: bf16[6,32], index: 0, kind: input, shape index: {}]   ;;  %s182_s1 = inlined_call_operand.vmem [shape: bf16[32,32], index: 1, kind: input, shape index: {}]   ;;  %s183_s2 = inlined_call_operand.vmem [shape: f32[1,32], index: 2, kind: input, shape index: {}]   ;;  %s184_s3 = inlined_call_operand.hbm [shape: f32[6,32], index: 3, kind: output, shape index: {}]  }
   0x1   :  { %v119_v0 = vld [vmem:[%s182_s1 + $0x8] sm:$0xff]   ;;  %108 = vmatprep.subr.bf16.mxu0 %v143_v1  ;;  %v120_v2 = vld [vmem:[%s182_s1] sm:$0xff]   ;;  %112 = vmatprep.mubr.msk.bf16.mxu0 %vm144_vm0, %v143_v1 }
   0x2   :  { %109 = vmatpush3.bf16.msra.mxu0 %v119_v0 }
   0x3   :  { %110 = vmatprep.subr.bf16.mxu0 %v143_v1 }
   0x4   :  { %8 = vsyncpa [#allocation3], 0  ;;  %v16_v3 = vld [vmem:[%s181_s0] sm:$0x7]  ;;  %vm40_vm1 = vcmask 261120   ;;  %s145_s20 = smov [#allocation2]  }
   0x5   :  { %v101_v4 = vld [vmem:[%s183_s2] ss:$0 sm:$0xff]  ;;  %s93_s21 = sshll.u32 %s145_s20, 4  ;;  %vm85_vm2 = vcmask 259072   ;;  %s94_s21 = int_to_ptr.vmem [resolvable:$true] %s93_s21 }
   0x6   :  { %111 = vmatpush3.bf16.msra.mxu0 %v120_v2  ;;  %s121_s1 = scalar_lea.vmem %s94_s21, 128  ;;  %p126_p1 = scmp.lt.s32.totalorder %s94_s21, %s94_s21 }
   0x7   :  { %p122_p0 = scmp.ne.s32.totalorder %s94_s21, %s121_s1  ;;  %p127_p2 = scmp.lt.s32.totalorder %s121_s1, %s121_s1 }
   0x9   :  { %113 = vmatmul.mubr.msk.bf16.vlgmr.msra.gmra.mxu0 %vm40_vm1, %v16_v3  ;;  %p128_p3 = por %p127_p2, %p126_p1 }
   0xb   :  { %p129_p4 = pnand %p128_p3, %p122_p0 }
  0xc9   :  { %v78_v5 = vpop.f32.mrf.mxu0 }
  0xca   :  { %v79_v6 = vadd.f32 %v101_v4, %v78_v5 }
  0xcb   :  { %v114_v7 = vpop.f32.mrf.mxu0 }
  0xcc   :  { %v84_v8 = vmax.f32 %v79_v6, 0.0 }
  0xcd   :  { %v81_v9 = vpop.f32.mrf.mxu0 }
  0xce   :  { %86 = vst.msk [vmem:[#allocation2] sm:$0x3f] %vm85_vm2, %v84_v8 }
  0xcf   :  { %v115_v10 = vpop.f32.mrf.mxu0 }
  0xd0   :  { %132 = shalt.err (!%p129_p4)
}
  0xd1   :  { %96 = dma.vmem_to_hbm [thread:$0]  %s94_s21, 128, %s184_s3, [#allocation3]  }
  0xd2   :  { %141 = dma.done.wait [#allocation3], 128  }
  0xd3   :  { %142 = vsyncadd [#allocation3], 4294967168 }
  0xd4   :  { %100 = vsyncpa [#allocation3], 1 }

// kernel: forward.22
= control target key start
LH: loop header
LB: loop body
LE: loop exit
PB: predicated region body
PF: predicated region fallthrough
CT: control target
= control target key end

     0   :  { %vm200_vm0 = vcmask 256000   ;;  %s342_s1 = inlined_call_operand.vmem [shape: bf16[256,32], index: 1, kind: input, shape index: {}]   ;;  %s343_s0 = inlined_call_operand.vmem [shape: bf16[6,256], index: 0, kind: input, shape index: {}]   ;;  %s344_s2 = inlined_call_operand.vmem [shape: f32[1,32], index: 2, kind: input, shape index: {}]   ;;  %s345_s3 = inlined_call_operand.vmem [shape: bf16[6,32], index: 3, kind: output, shape index: {}]  }
   0x1   :  { %v247_v0 = vld [vmem:[%s342_s1 + $0x78] sm:$0xff]   ;;  %v249_v2 = vld [vmem:[%s342_s1 + $0x70] sm:$0xff]   ;;  %v251_v4 = vld [vmem:[%s342_s1 + $0x68] sm:$0xff]  }
   0x2   :  { %v248_v1 = vld [vmem:[%s342_s1 + $0x38] sm:$0xff]   ;;  %225 = vmatprep.subr.bf16.mxu0 %v247_v0  ;;  %v250_v3 = vld [vmem:[%s342_s1 + $0x30] sm:$0xff]   ;;  %v252_v5 = vld [vmem:[%s342_s1 + $0x28] sm:$0xff]  }
   0x3   :  { %226 = vmatpush3.bf16.msra.mxu0 %v248_v1  ;;  %v253_v6 = vld [vmem:[%s342_s1 + $0x60] sm:$0xff]   ;;  %v255_v8 = vld [vmem:[%s342_s1 + $0x58] sm:$0xff]   ;;  %v257_v10 = vld [vmem:[%s342_s1 + $0x50] sm:$0xff]  }
   0x4   :  { %227 = vmatprep.subr.bf16.mxu0 %v249_v2  ;;  %v254_v7 = vld [vmem:[%s342_s1 + $0x20] sm:$0xff]   ;;  %v256_v9 = vld [vmem:[%s342_s1 + $0x18] sm:$0xff]   ;;  %v258_v13 = vld [vmem:[%s342_s1 + $0x10] sm:$0xff]  }
   0x5   :  { %v15_v11 = vld [vmem:[%s343_s0] sm:$0x77]  ;;  %v259_v14 = vld [vmem:[%s342_s1 + $0x48] sm:$0xff]  }
   0x6   :  { %v208_v12 = vcombine.high %v15_v11, %v15_v11  ;;  %v260_v15 = vld [vmem:[%s342_s1 + $0x8] sm:$0xff]   ;;  %v261_v16 = vld [vmem:[%s342_s1 + $0x40] sm:$0xff]   ;;  %v207_v18 = vcombine.low %v15_v11, %v15_v11 }
   0x7   :  { %228 = vmatpush3.bf16.msra.mxu0 %v250_v3  ;;  %v262_v17 = vld [vmem:[%s342_s1] sm:$0xff]  }
   0x8   :  { %229 = vmatprep.subr.bf16.mxu0 %v251_v4  ;;  %190 = vmatprep.mubr.bf16.mxu0 %v208_v12  ;;  %v206_v20 = vld [vmem:[%s344_s2] ss:$0 sm:$0xff] }
   0xb   :  { %230 = vmatpush3.bf16.msra.mxu0 %v252_v5 }
   0xc   :  { %231 = vmatprep.subr.bf16.mxu0 %v253_v6 }
   0xf   :  { %232 = vmatpush3.bf16.msra.mxu0 %v254_v7 }
  0x10   :  { %233 = vmatprep.subr.bf16.mxu0 %v255_v8 }
  0x13   :  { %234 = vmatpush3.bf16.msra.mxu0 %v256_v9 }
  0x14   :  { %235 = vmatprep.subr.bf16.mxu0 %v257_v10 }
  0x17   :  { %236 = vmatpush3.bf16.msra.mxu0 %v258_v13 }
  0x18   :  { %237 = vmatprep.subr.bf16.mxu0 %v259_v14 }
  0x1b   :  { %238 = vmatpush3.bf16.msra.mxu0 %v260_v15 }
  0x1c   :  { %239 = vmatprep.subr.bf16.mxu0 %v261_v16 }
  0x1f   :  { %240 = vmatpush3.bf16.msra.mxu0 %v262_v17 }
  0x22   :  { %191 = vmatmul.mubr.bf16.vlgmr.msra.gmra.mxu0 %v207_v18 }
  0xe2   :  { %v241_v19 = vpop.f32.mrf.mxu0 }
  0xe4   :  { %v242_v21 = vpop.f32.mrf.mxu0 }
  0xe5   :  { %v243_v22 = vadd.f32 %v242_v21, %v241_v19 }
  0xe6   :  { %v244_v23 = vpop.f32.mrf.mxu0 }
  0xe7   :  { %v193_v24 = vadd.f32 %v243_v22, %v206_v20 }
  0xe8   :  { %v245_v25 = vpop.f32.mrf.mxu0 }
  0xe9   :  { %v198_v26 = vmax.f32 %v193_v24, 0.0 }
  0xeb   :  { %v199_v27 = vpack.c.bf16 %v198_v26, %v198_v26 }
  0xed   :  { %201 = vst.msk [vmem:[%s345_s3] sm:$0x7] %vm200_vm0, %v199_v27 }

</bundles_post_ra>
